<compile_context>
chip_gen: v7x
topology: tpu7x:2x2x1
jax: 0.10.0
libtpu: 0.0.40
codegen_flags: <defaults>
</compile_context>

<pallas_src>
import numpy as np
import jax
import jax.numpy as jnp
from jax.experimental import pallas as pl
from jax.experimental.pallas import tpu as pltpu

SEG_LEN   = 16000      # hard-coded in the PyTorch forward (reshape(..., 16000))
WIN       = 256        # analysis window / DFT size
HOP       = 160
ROWS      = SEG_LEN // HOP           # 100 hop-rows per segment
TAIL      = WIN - HOP                # 96 samples taken from the next row
N_FREQ    = 128        # DFT bins kept
N_MELS    = 80         # mel bins
N_MELS_PAD = 128       # lane-padded mel width
HIDDEN    = 128
N_OUT     = 128        # synthetic classifier width (>= N_CLASS * MAP_NUM)
N_CLASS   = 16
N_CLS_PAD = 128        # lane-padded class width (real classes in cols [:16])
MAP_NUM   = 5
T         = (SEG_LEN - WIN) // HOP + 1   # valid frames per segment (99)
T_PAD128  = 128                          # sublane/lane pad for delta_proj / one-hot
B_SEG     = 32         # segments per grid step (clamped per call)

_LOG10_SCALE = float(10.0 / np.log(10.0))


def _v2s_kernel(x_ref, cwa_ref, cwb_ref, onehot_ref, dproj_ref, pool_ref,
                mel_ref, w1_ref, b1_ref, w2_ref, b2_ref, grp_ref, out_ref):
    m = x_ref.shape[1]                       # b_seg * ROWS

    # Raw wav rows (f32) -> bf16 operands; the "next row" view is a sublane
    # roll (XLU, free slot while the MXU is busy).  The wrap row only feeds
    # frame t=99 of a segment, which the pooling mask zeroes out.
    x = x_ref[0]                                              # (m, HOP) f32
    xb      = x.astype(jnp.bfloat16)
    xb_next = pltpu.roll(x, shift=m - 1, axis=0).astype(jnp.bfloat16)

    # In-kernel framing + Hann window + [cos|sin] DFT, fused into two bf16
    # MXU matmuls with f32 accumulation.
    re_im = jnp.dot(xb, cwa_ref[...], preferred_element_type=jnp.float32)
    re_im = re_im + jnp.dot(xb_next, cwb_ref[...],
                            preferred_element_type=jnp.float32)

    # wav = wav + delta (uni_noise), folded through the linear front-end and
    # broadcast per frame index t = row mod ROWS via a 0/1 one-hot matmul.
    re_im = re_im + jnp.dot(onehot_ref[...], dproj_ref[...],
                            preferred_element_type=jnp.float32)

    # cls_model.mel_extr: |STFT|^2 then mel filterbank.
    re = re_im[:, :N_FREQ]
    im = re_im[:, N_FREQ:]
    power = re * re + im * im                                  # f32 (m, N_FREQ)
    mel = jnp.dot(power.astype(jnp.bfloat16), mel_ref[...],
                  preferred_element_type=jnp.float32)          # (m, N_MELS_PAD)

    # cls_model.mag2db: 10 * log10(max(x, amin))
    # TODO(synk): the checkpointed mag2db may also apply ref/top_db normalization.
    db = _LOG10_SCALE * jnp.log(jnp.maximum(mel, 1e-10))

    # TODO(synk): real AttRNNSpeechModel.transform (CNN+LSTM+attention) is
    # checkpoint-defined; replaced by mean-pool over time + 2-layer MLP head.
    # Per-segment sum over the T valid frames via a 0/1 bf16 pooling matmul
    # (exact; frame t=99 and zero-padded segments are masked), then exact f32
    # 1/T scaling.
    pooled = jnp.dot(pool_ref[...], db.astype(jnp.bfloat16),
                     preferred_element_type=jnp.float32) * (1.0 / T)

    h = jnp.maximum(
        jnp.dot(pooled.astype(jnp.bfloat16), w1_ref[...],
                preferred_element_type=jnp.float32) + b1_ref[...], 0.0)
    logits = jnp.dot(h.astype(jnp.bfloat16), w2_ref[...],
                     preferred_element_type=jnp.float32) + b2_ref[...]

    # predicted[:, :N_CLASS*MAP_NUM].view(-1, N_CLASS, MAP_NUM).sum(-1),
    # as a 0/1 bf16 grouping matmul (padded class columns are all-zero).
    out_ref[...] = jnp.dot(logits.astype(jnp.bfloat16), grp_ref[...],
                           preferred_element_type=jnp.float32)   # (b_seg, N_CLS_PAD)


def _frame(wav_2d):
    # Only used for the tiny (1, 16000) delta parameter (99x256 gather).
    idx = jnp.arange(T)[:, None] * HOP + jnp.arange(WIN)[None, :]
    return wav_2d[:, idx]


def _mel_filterbank(n_freq, n_mels):
    fb = np.zeros((n_freq, n_mels), np.float32)
    centers = np.linspace(0.0, n_freq - 1, n_mels + 2)
    f = np.arange(n_freq, dtype=np.float32)
    for m in range(n_mels):
        lo, ce, hi = centers[m], centers[m + 1], centers[m + 2]
        up = (f - lo) / max(ce - lo, 1e-6)
        dn = (hi - f) / max(hi - ce, 1e-6)
        fb[:, m] = np.maximum(0.0, np.minimum(up, dn))
    return fb


def init_params(key):
    k_delta, k_w1, k_b1, k_w2, k_b2 = jax.random.split(key, 5)

    n = np.arange(WIN, dtype=np.float32)
    window = (0.5 - 0.5 * np.cos(2.0 * np.pi * n / WIN)).astype(np.float32)  # Hann
    k = np.arange(N_FREQ, dtype=np.float32)
    phase = 2.0 * np.pi * np.outer(n, k) / float(WIN)
    # Fused, windowed [cos | sin] DFT matrix: (WIN, 2*N_FREQ) = (256, 256).
    cw = (window[:, None] *
          np.concatenate([np.cos(phase), np.sin(phase)], axis=1)).astype(np.float32)

    melfb = np.zeros((N_FREQ, N_MELS_PAD), np.float32)           # lane-padded to 128
    melfb[:, :N_MELS] = _mel_filterbank(N_FREQ, N_MELS)

    grp = np.zeros((N_OUT, N_CLS_PAD), np.float32)               # lane-padded to 128
    for c in range(N_CLASS):
        grp[c * MAP_NUM:(c + 1) * MAP_NUM, c] = 1.0

    # w1 rows for padded mel columns are zero, so the -100 dB padding lanes
    # contribute exactly nothing to the MLP.
    w1 = jnp.zeros((N_MELS_PAD, HIDDEN), jnp.float32)
    w1 = w1.at[:N_MELS].set(0.05 * jax.random.normal(k_w1, (N_MELS, HIDDEN), jnp.float32))

    params = {
        "delta": 0.01 * jax.random.normal(k_delta, (1, 1, SEG_LEN), jnp.float32),
        "cw":    jnp.asarray(cw),
        "melfb": jnp.asarray(melfb),
        "w1": w1,
        "b1": 0.05 * jax.random.normal(k_b1, (1, HIDDEN), jnp.float32),
        "w2": 0.05 * jax.random.normal(k_w2, (HIDDEN, N_OUT), jnp.float32),
        "b2": 0.05 * jax.random.normal(k_b2, (1, N_OUT), jnp.float32),
        "grp": jnp.asarray(grp),
    }
    return params


def v2s_reprog_forward(wav, params, b_seg=B_SEG):
    """wav: (n_batch, segs*16000) float32 -> (n_batch, N_CLASS) float32."""
    bf16 = jnp.bfloat16
    n_batch = wav.shape[0]
    wav = wav.reshape(n_batch, -1, SEG_LEN).reshape(-1, SEG_LEN)     # (n_seg, 16000)
    n_seg = wav.shape[0]

    # Clamp b_seg for short batches (round n_seg up to a multiple of 8, not of
    # B_SEG) so tiny inputs don't run a mostly-padded block.
    b_seg = min(b_seg, max(8, -(-n_seg // 8) * 8))
    n_blocks = -(-n_seg // b_seg)
    n_seg_pad = n_blocks * b_seg

    # Raw wav, reshaped only (free: 16000 = 100 * 160) -> kernel does the
    # overlapping framing itself.  Padding (a copy) only happens for ragged /
    # tiny batches.
    x = wav.reshape(n_seg, ROWS, HOP)
    if n_seg_pad != n_seg:
        x = jnp.pad(x, ((0, n_seg_pad - n_seg), (0, 0), (0, 0)))
    x = x.reshape(n_blocks, b_seg * ROWS, HOP)                       # f32

    # Split windowed-DFT matrix for the two-slice framing decomposition.
    cw = params["cw"]                                                # (256, 256) f32
    cw_a = cw[:HOP].astype(bf16)                                     # (160, 256)
    cw_b = jnp.pad(cw[HOP:], ((0, HOP - TAIL), (0, 0))).astype(bf16)  # (160, 256), rows 96: zero

    # Fold the uni_noise delta through the (linear) framing+window+DFT front-end;
    # a single UNTILED (128, 256) block, broadcast in-kernel via the one-hot matmul.
    delta_frames = _frame(params["delta"].reshape(1, SEG_LEN))[0]    # (T, WIN) f32
    delta_proj = delta_frames @ cw                                   # (T, 256) f32
    delta_proj = jnp.pad(delta_proj, ((0, T_PAD128 - T), (0, 0))).astype(bf16)

    # 0/1 map: row r -> frame index t = r mod ROWS (exact in bf16).
    r = np.arange(b_seg * ROWS)
    onehot = np.zeros((b_seg * ROWS, T_PAD128), np.float32)
    onehot[r, r % ROWS] = 1.0
    onehot = jnp.asarray(onehot, bf16)

    # 0/1 per-segment pooling mask over the T valid frames (frame 99 and
    # sublane-wrap rows excluded exactly); 1/T applied in f32 in-kernel.
    pool_np = np.zeros((b_seg, b_seg * ROWS), np.float32)
    for s in range(b_seg):
        pool_np[s, s * ROWS: s * ROWS + T] = 1.0
    pool = jnp.asarray(pool_np, bf16)

    melfb_bf = params["melfb"].astype(bf16)
    w1_bf = params["w1"].astype(bf16)
    w2_bf = params["w2"].astype(bf16)
    grp_bf = params["grp"].astype(bf16)

    def const_spec(arr):
        nd = arr.ndim
        return pl.BlockSpec(arr.shape, lambda i, nd=nd: (0,) * nd)

    out = pl.pallas_call(
        _v2s_kernel,
        out_shape=jax.ShapeDtypeStruct((n_seg_pad, N_CLS_PAD), jnp.float32),
        grid=(n_blocks,),
        in_specs=[
            pl.BlockSpec((1, b_seg * ROWS, HOP), lambda i: (i, 0, 0)),   # raw wav rows (f32)
            const_spec(cw_a),        # windowed DFT, rows [0:160)   (bf16)
            const_spec(cw_b),        # windowed DFT, rows [160:256) (bf16)
            const_spec(onehot),      # row -> frame-index one-hot   (bf16)
            const_spec(delta_proj),  # untiled delta projection     (bf16)
            const_spec(pool),        # 0/1 pooling mask             (bf16)
            const_spec(melfb_bf),    # mel filterbank               (bf16)
            const_spec(w1_bf),       # MLP w1                       (bf16)
            const_spec(params["b1"]),
            const_spec(w2_bf),       # MLP w2                       (bf16)
            const_spec(params["b2"]),
            const_spec(grp_bf),      # class-grouping matrix        (bf16)
        ],
        out_specs=pl.BlockSpec((b_seg, N_CLS_PAD), lambda i: (i, 0)),
        compiler_params=pltpu.CompilerParams(
            dimension_semantics=("parallel",),
            vmem_limit_bytes=64 * 1024 * 1024),
    )(x, cw_a, cw_b, onehot, delta_proj, pool, melfb_bf, w1_bf, params["b1"],
      w2_bf, params["b2"], grp_bf)

    # Drop segment/class padding, then predicted.reshape(n_batch, -1, class_num).mean(1)
    per_seg = out[:n_seg, :N_CLASS]
    return per_seg.reshape(n_batch, -1, N_CLASS).mean(axis=1)


if __name__ == "__main__":
    key = jax.random.PRNGKey(0)
    k_wav, k_params = jax.random.split(key)

    # n_batch=2, two 16000-sample segments per batch element
    wav = jax.random.normal(k_wav, (2, 2 * SEG_LEN), jnp.float32)
    params = init_params(k_params)

    out = jax.jit(v2s_reprog_forward)(wav, params)
    out = jax.block_until_ready(out)

    assert out.shape == (2, N_CLASS), out.shape
    assert bool(jnp.isfinite(out).all())
    print("KERNEL_OK")
</pallas_src>

<mosaic_0001>
module attributes {stable_mosaic.version = 11 : i64} {
  func.func private @main(%arg0: i32) attributes {dimension_semantics = [#tpu.dimension_semantics<core_parallel>], iteration_bounds = array<i64: 2>, tpu.core_type = #tpu.core_type<sc_scalar_subcore>, window_params = []} {
    return
  }
}

module attributes {stable_mosaic.version = 11 : i64} {
  func.func private @main(%arg0: i32) attributes {dimension_semantics = [#tpu.dimension_semantics<core_parallel>], iteration_bounds = array<i64: 2>, tpu.core_type = #tpu.core_type<sc_scalar_subcore>, window_params = []} {
    return
  }
}

module attributes {stable_mosaic.version = 11 : i64} {
  func.func @_v2s_kernel(%arg0: i32, %arg1: memref<1x800x160xf32, #tpu.memory_space<vmem>>, %arg2: memref<160x256xbf16, #tpu.memory_space<vmem>>, %arg3: memref<160x256xbf16, #tpu.memory_space<vmem>>, %arg4: memref<800x128xbf16, #tpu.memory_space<vmem>>, %arg5: memref<128x256xbf16, #tpu.memory_space<vmem>>, %arg6: memref<8x800xbf16, #tpu.memory_space<vmem>>, %arg7: memref<128x128xbf16, #tpu.memory_space<vmem>>, %arg8: memref<128x128xbf16, #tpu.memory_space<vmem>>, %arg9: memref<1x128xf32, #tpu.memory_space<vmem>>, %arg10: memref<128x128xbf16, #tpu.memory_space<vmem>>, %arg11: memref<1x128xf32, #tpu.memory_space<vmem>>, %arg12: memref<128x128xbf16, #tpu.memory_space<vmem>>, %arg13: memref<8x128xf32, #tpu.memory_space<vmem>>) attributes {dimension_semantics = [#tpu.dimension_semantics<parallel>], iteration_bounds = array<i64: 1>, scalar_prefetch = 0 : i64, scratch_operands = 0 : i64, tpu.core_type = #tpu.core_type<tc>, window_params = [{transform_indices = @transform_0, window_bounds = array<i64: 1, 800, 160>}, {pipeline_mode = #tpu.pipeline_mode<synchronous>, transform_indices = @transform_1, window_bounds = array<i64: 160, 256>}, {pipeline_mode = #tpu.pipeline_mode<synchronous>, transform_indices = @transform_2, window_bounds = array<i64: 160, 256>}, {pipeline_mode = #tpu.pipeline_mode<synchronous>, transform_indices = @transform_3, window_bounds = array<i64: 800, 128>}, {pipeline_mode = #tpu.pipeline_mode<synchronous>, transform_indices = @transform_4, window_bounds = array<i64: 128, 256>}, {pipeline_mode = #tpu.pipeline_mode<synchronous>, transform_indices = @transform_5, window_bounds = array<i64: 8, 800>}, {pipeline_mode = #tpu.pipeline_mode<synchronous>, transform_indices = @transform_6, window_bounds = array<i64: 128, 128>}, {pipeline_mode = #tpu.pipeline_mode<synchronous>, transform_indices = @transform_7, window_bounds = array<i64: 128, 128>}, {pipeline_mode = #tpu.pipeline_mode<synchronous>, transform_indices = @transform_8, window_bounds = array<i64: 1, 128>}, {pipeline_mode = #tpu.pipeline_mode<synchronous>, transform_indices = @transform_9, window_bounds = array<i64: 128, 128>}, {pipeline_mode = #tpu.pipeline_mode<synchronous>, transform_indices = @transform_10, window_bounds = array<i64: 1, 128>}, {pipeline_mode = #tpu.pipeline_mode<synchronous>, transform_indices = @transform_11, window_bounds = array<i64: 128, 128>}, {transform_indices = @transform_12, window_bounds = array<i64: 8, 128>}]} {
    %c0 = arith.constant 0 : index
    %c0_0 = arith.constant 0 : index
    %c0_1 = arith.constant 0 : index
    %0 = vector.load %arg1[%c0, %c0_0, %c0_1] : memref<1x800x160xf32, #tpu.memory_space<vmem>>, vector<1x800x160xf32>
    %1 = vector.shape_cast %0 : vector<1x800x160xf32> to vector<800x160xf32>
    %2 = arith.truncf %1 : vector<800x160xf32> to vector<800x160xbf16>
    %c799_i32 = arith.constant 799 : i32
    %3 = tpu.dynamic_rotate %1 by %c799_i32 dim 0 : vector<800x160xf32>, i32 -> vector<800x160xf32>
    %4 = arith.truncf %3 : vector<800x160xf32> to vector<800x160xbf16>
    %c0_2 = arith.constant 0 : index
    %c0_3 = arith.constant 0 : index
    %5 = vector.load %arg2[%c0_2, %c0_3] : memref<160x256xbf16, #tpu.memory_space<vmem>>, vector<160x256xbf16>
    %cst = arith.constant dense<0.000000e+00> : vector<800x256xf32>
    %6 = tpu.matmul %2, %5, %cst {dimension_numbers = #tpu.dot_dimension_numbers<[1], [0], [0], [1], [0, 0, 1, 1], [], []>} : vector<800x160xbf16>, vector<160x256xbf16>, vector<800x256xf32> -> vector<800x256xf32>
    %c0_4 = arith.constant 0 : index
    %c0_5 = arith.constant 0 : index
    %7 = vector.load %arg3[%c0_4, %c0_5] : memref<160x256xbf16, #tpu.memory_space<vmem>>, vector<160x256xbf16>
    %cst_6 = arith.constant dense<0.000000e+00> : vector<800x256xf32>
    %8 = tpu.matmul %4, %7, %cst_6 {dimension_numbers = #tpu.dot_dimension_numbers<[1], [0], [0], [1], [0, 0, 1, 1], [], []>} : vector<800x160xbf16>, vector<160x256xbf16>, vector<800x256xf32> -> vector<800x256xf32>
    %9 = arith.addf %6, %8 : vector<800x256xf32>
    %c0_7 = arith.constant 0 : index
    %c0_8 = arith.constant 0 : index
    %10 = vector.load %arg4[%c0_7, %c0_8] : memref<800x128xbf16, #tpu.memory_space<vmem>>, vector<800x128xbf16>
    %c0_9 = arith.constant 0 : index
    %c0_10 = arith.constant 0 : index
    %11 = vector.load %arg5[%c0_9, %c0_10] : memref<128x256xbf16, #tpu.memory_space<vmem>>, vector<128x256xbf16>
    %cst_11 = arith.constant dense<0.000000e+00> : vector<800x256xf32>
    %12 = tpu.matmul %10, %11, %cst_11 {dimension_numbers = #tpu.dot_dimension_numbers<[1], [0], [0], [1], [0, 0, 1, 1], [], []>} : vector<800x128xbf16>, vector<128x256xbf16>, vector<800x256xf32> -> vector<800x256xf32>
    %13 = arith.addf %9, %12 : vector<800x256xf32>
    %14 = vector.extract_strided_slice %13 {offsets = [0, 0], sizes = [800, 128], strides = [1, 1]} : vector<800x256xf32> to vector<800x128xf32>
    %15 = vector.extract_strided_slice %13 {offsets = [0, 128], sizes = [800, 128], strides = [1, 1]} : vector<800x256xf32> to vector<800x128xf32>
    %16 = arith.mulf %14, %14 : vector<800x128xf32>
    %17 = arith.mulf %15, %15 : vector<800x128xf32>
    %18 = arith.addf %16, %17 : vector<800x128xf32>
    %19 = arith.truncf %18 : vector<800x128xf32> to vector<800x128xbf16>
    %c0_12 = arith.constant 0 : index
    %c0_13 = arith.constant 0 : index
    %20 = vector.load %arg7[%c0_12, %c0_13] : memref<128x128xbf16, #tpu.memory_space<vmem>>, vector<128x128xbf16>
    %cst_14 = arith.constant dense<0.000000e+00> : vector<800x128xf32>
    %21 = tpu.matmul %19, %20, %cst_14 {dimension_numbers = #tpu.dot_dimension_numbers<[1], [0], [0], [1], [0, 0, 1, 1], [], []>} : vector<800x128xbf16>, vector<128x128xbf16>, vector<800x128xf32> -> vector<800x128xf32>
    %cst_15 = arith.constant 1.000000e-10 : f32
    %22 = vector.broadcast %cst_15 : f32 to vector<800x128xf32>
    %23 = arith.maximumf %21, %22 : vector<800x128xf32>
    %24 = math.log %23 : vector<800x128xf32>
    %cst_16 = arith.constant 4.34294462 : f32
    %25 = vector.broadcast %cst_16 : f32 to vector<800x128xf32>
    %26 = arith.mulf %25, %24 : vector<800x128xf32>
    %c0_17 = arith.constant 0 : index
    %c0_18 = arith.constant 0 : index
    %27 = vector.load %arg6[%c0_17, %c0_18] : memref<8x800xbf16, #tpu.memory_space<vmem>>, vector<8x800xbf16>
    %28 = arith.truncf %26 : vector<800x128xf32> to vector<800x128xbf16>
    %cst_19 = arith.constant dense<0.000000e+00> : vector<8x128xf32>
    %29 = tpu.matmul %27, %28, %cst_19 {dimension_numbers = #tpu.dot_dimension_numbers<[1], [0], [0], [1], [0, 0, 1, 1], [], []>} : vector<8x800xbf16>, vector<800x128xbf16>, vector<8x128xf32> -> vector<8x128xf32>
    %cst_20 = arith.constant 0.0101010101 : f32
    %30 = vector.broadcast %cst_20 : f32 to vector<8x128xf32>
    %31 = arith.mulf %29, %30 : vector<8x128xf32>
    %32 = arith.truncf %31 : vector<8x128xf32> to vector<8x128xbf16>
    %c0_21 = arith.constant 0 : index
    %c0_22 = arith.constant 0 : index
    %33 = vector.load %arg8[%c0_21, %c0_22] : memref<128x128xbf16, #tpu.memory_space<vmem>>, vector<128x128xbf16>
    %cst_23 = arith.constant dense<0.000000e+00> : vector<8x128xf32>
    %34 = tpu.matmul %32, %33, %cst_23 {dimension_numbers = #tpu.dot_dimension_numbers<[1], [0], [0], [1], [0, 0, 1, 1], [], []>} : vector<8x128xbf16>, vector<128x128xbf16>, vector<8x128xf32> -> vector<8x128xf32>
    %c0_24 = arith.constant 0 : index
    %c0_25 = arith.constant 0 : index
    %35 = vector.load %arg9[%c0_24, %c0_25] : memref<1x128xf32, #tpu.memory_space<vmem>>, vector<1x128xf32>
    %36 = vector.broadcast %35 : vector<1x128xf32> to vector<8x128xf32>
    %37 = arith.addf %34, %36 : vector<8x128xf32>
    %cst_26 = arith.constant 0.000000e+00 : f32
    %38 = vector.broadcast %cst_26 : f32 to vector<8x128xf32>
    %39 = arith.maximumf %37, %38 : vector<8x128xf32>
    %40 = arith.truncf %39 : vector<8x128xf32> to vector<8x128xbf16>
    %c0_27 = arith.constant 0 : index
    %c0_28 = arith.constant 0 : index
    %41 = vector.load %arg10[%c0_27, %c0_28] : memref<128x128xbf16, #tpu.memory_space<vmem>>, vector<128x128xbf16>
    %cst_29 = arith.constant dense<0.000000e+00> : vector<8x128xf32>
    %42 = tpu.matmul %40, %41, %cst_29 {dimension_numbers = #tpu.dot_dimension_numbers<[1], [0], [0], [1], [0, 0, 1, 1], [], []>} : vector<8x128xbf16>, vector<128x128xbf16>, vector<8x128xf32> -> vector<8x128xf32>
    %c0_30 = arith.constant 0 : index
    %c0_31 = arith.constant 0 : index
    %43 = vector.load %arg11[%c0_30, %c0_31] : memref<1x128xf32, #tpu.memory_space<vmem>>, vector<1x128xf32>
    %44 = vector.broadcast %43 : vector<1x128xf32> to vector<8x128xf32>
    %45 = arith.addf %42, %44 : vector<8x128xf32>
    %46 = arith.truncf %45 : vector<8x128xf32> to vector<8x128xbf16>
    %c0_32 = arith.constant 0 : index
    %c0_33 = arith.constant 0 : index
    %47 = vector.load %arg12[%c0_32, %c0_33] : memref<128x128xbf16, #tpu.memory_space<vmem>>, vector<128x128xbf16>
    %cst_34 = arith.constant dense<0.000000e+00> : vector<8x128xf32>
    %48 = tpu.matmul %46, %47, %cst_34 {dimension_numbers = #tpu.dot_dimension_numbers<[1], [0], [0], [1], [0, 0, 1, 1], [], []>} : vector<8x128xbf16>, vector<128x128xbf16>, vector<8x128xf32> -> vector<8x128xf32>
    %c0_35 = arith.constant 0 : index
    %c0_36 = arith.constant 0 : index
    %49 = vector.load %arg13[%c0_35, %c0_36] : memref<8x128xf32, #tpu.memory_space<vmem>>, vector<8x128xf32>
    tpu.vector_store %arg13[%c0_35, %c0_36], %48 {strides = array<i32>} : memref<8x128xf32, #tpu.memory_space<vmem>>, vector<8x128xf32>,
    return
  }
  func.func @transform_0(%arg0: i32) -> (i32, i32, i32) {
    %c0_i32 = arith.constant 0 : i32
    %c0_i32_0 = arith.constant 0 : i32
    %c0_i32_1 = arith.constant 0 : i32
    return %arg0, %c0_i32, %c0_i32_0 : i32, i32, i32
  }
  func.func @transform_1(%arg0: i32) -> (i32, i32) {
    %c0_i32 = arith.constant 0 : i32
    %c0_i32_0 = arith.constant 0 : i32
    %c0_i32_1 = arith.constant 0 : i32
    return %c0_i32, %c0_i32_0 : i32, i32
  }
  func.func @transform_2(%arg0: i32) -> (i32, i32) {
    %c0_i32 = arith.constant 0 : i32
    %c0_i32_0 = arith.constant 0 : i32
    %c0_i32_1 = arith.constant 0 : i32
    return %c0_i32, %c0_i32_0 : i32, i32
  }
  func.func @transform_3(%arg0: i32) -> (i32, i32) {
    %c0_i32 = arith.constant 0 : i32
    %c0_i32_0 = arith.constant 0 : i32
    %c0_i32_1 = arith.constant 0 : i32
    return %c0_i32, %c0_i32_0 : i32, i32
  }
  func.func @transform_4(%arg0: i32) -> (i32, i32) {
    %c0_i32 = arith.constant 0 : i32
    %c0_i32_0 = arith.constant 0 : i32
    %c0_i32_1 = arith.constant 0 : i32
    return %c0_i32, %c0_i32_0 : i32, i32
  }
  func.func @transform_5(%arg0: i32) -> (i32, i32) {
    %c0_i32 = arith.constant 0 : i32
    %c0_i32_0 = arith.constant 0 : i32
    %c0_i32_1 = arith.constant 0 : i32
    return %c0_i32, %c0_i32_0 : i32, i32
  }
  func.func @transform_6(%arg0: i32) -> (i32, i32) {
    %c0_i32 = arith.constant 0 : i32
    %c0_i32_0 = arith.constant 0 : i32
    %c0_i32_1 = arith.constant 0 : i32
    return %c0_i32, %c0_i32_0 : i32, i32
  }
  func.func @transform_7(%arg0: i32) -> (i32, i32) {
    %c0_i32 = arith.constant 0 : i32
    %c0_i32_0 = arith.constant 0 : i32
    %c0_i32_1 = arith.constant 0 : i32
    return %c0_i32, %c0_i32_0 : i32, i32
  }
  func.func @transform_8(%arg0: i32) -> (i32, i32) {
    %c0_i32 = arith.constant 0 : i32
    %c0_i32_0 = arith.constant 0 : i32
    %c0_i32_1 = arith.constant 0 : i32
    return %c0_i32, %c0_i32_0 : i32, i32
  }
  func.func @transform_9(%arg0: i32) -> (i32, i32) {
    %c0_i32 = arith.constant 0 : i32
    %c0_i32_0 = arith.constant 0 : i32
    %c0_i32_1 = arith.constant 0 : i32
    return %c0_i32, %c0_i32_0 : i32, i32
  }
  func.func @transform_10(%arg0: i32) -> (i32, i32) {
    %c0_i32 = arith.constant 0 : i32
    %c0_i32_0 = arith.constant 0 : i32
    %c0_i32_1 = arith.constant 0 : i32
    return %c0_i32, %c0_i32_0 : i32, i32
  }
  func.func @transform_11(%arg0: i32) -> (i32, i32) {
    %c0_i32 = arith.constant 0 : i32
    %c0_i32_0 = arith.constant 0 : i32
    %c0_i32_1 = arith.constant 0 : i32
    return %c0_i32, %c0_i32_0 : i32, i32
  }
  func.func @transform_12(%arg0: i32) -> (i32, i32) {
    %c0_i32 = arith.constant 0 : i32
    %c0_i32_0 = arith.constant 0 : i32
    return %arg0, %c0_i32 : i32, i32
  }
}

</mosaic_0001>

<bundles_post_ra>
// kernel: squeeze.1
= control target key start
LH: loop header
LB: loop body
LE: loop exit
PB: predicated region body
PF: predicated region fallthrough
CT: control target
= control target key end

     0   :  { %2 = vsyncpa [#allocation1], 0  ;;  %s1062_s6 = smov [#allocation0]   ;;  %s1124_s0 = inlined_call_operand.hbm [shape: bf16[25344], index: 0, kind: input, shape index: {}]   ;;  %s1125_s1 = inlined_call_operand.vmem [shape: bf16[99,256], index: 1, kind: output, shape index: {}]  }
   0x1   :  { %s7_s7 = sshll.u32 %s1062_s6, 4  ;;  %s1038_s10 = scalar_lea.hbm %s1124_s0, 1600  ;;  %s8_s7 = int_to_ptr.vmem [resolvable:$true] %s7_s7 }
   0x2   :  { %p1039_p0 = scmp.ne.s32.totalorder %s1124_s0, %s1038_s10  ;;  %p1042_p1 = scmp.lt.u32.totalorder %s1038_s10, %s1124_s0 }
   0x4   :  { %p1044_p2 = pnand %p1042_p1, %p1039_p0 }
   0x6   :  { %1047 = shalt.err (!%p1044_p2)
}
   0x7   :  { %s1048_s15 = scalar_lea.vmem %s8_s7, 1600  ;;  %p1053_p4 = scmp.lt.s32.totalorder %s8_s7, %s8_s7 }
   0x8   :  { %p1049_p3 = scmp.ne.s32.totalorder %s8_s7, %s1048_s15  ;;  %p1054_p5 = scmp.lt.s32.totalorder %s1048_s15, %s1048_s15 }
   0xa   :  { %p1055_p6 = por %p1054_p5, %p1053_p4 }
   0xc   :  { %p1056_p7 = pnand %p1055_p6, %p1049_p3 }
   0xe   :  { %1059 = shalt.err (!%p1056_p7)
}
   0xf   :  { %10 = dma.hbm_to_vmem [thread:$0]  %s1124_s0, 1600, %s8_s7, [#allocation1]  }
  0x10   :  { %1060 = dma.done.wait [#allocation1], 1600  }
  0x11   :  { %1061 = vsyncadd [#allocation1], 4294965696  ;;  %v26_v0 = vld [vmem:[#allocation0 + $0x60] sm:$0xf]  ;;  %v913_v1 = vld [vmem:[#allocation0 + $0x58] sm:$0xff]  }
  0x12   :  { %v917_v2 = vld [vmem:[#allocation0 + $0x50] sm:$0xff]   ;;  %v27_v3 = vunpack.c.l.bf16 %v26_v0  ;;  %v914_v4 = vunpack.c.l.bf16 %v913_v1  ;;  %v915_v5 = vunpack.c.h.bf16 %v913_v1  ;;  %v921_v7 = vld [vmem:[#allocation0 + $0x48] sm:$0xff]   ;;  %v925_v8 = vld [vmem:[#allocation0 + $0x40] sm:$0xff]  }
  0x13   :  { %v918_v6 = vunpack.c.l.bf16 %v917_v2  ;;  %v929_v9 = vld [vmem:[#allocation0 + $0x38] sm:$0xff]   ;;  %v919_v10 = vunpack.c.h.bf16 %v917_v2  ;;  %v922_v11 = vunpack.c.l.bf16 %v921_v7  ;;  %v923_v12 = vunpack.c.h.bf16 %v921_v7  ;;  %v933_v14 = vld [vmem:[#allocation0 + $0x30] sm:$0xff]   ;;  %v937_v15 = vld [vmem:[#allocation0 + $0x28] sm:$0xff]  }
  0x14   :  { %v926_v13 = vunpack.c.l.bf16 %v925_v8  ;;  %v941_v16 = vld [vmem:[#allocation0 + $0x20] sm:$0xff]   ;;  %30 = vst [vmem:[#allocation3 + $0xc0] sm:$0xff] %v27_v3  ;;  %v927_v17 = vunpack.c.h.bf16 %v925_v8  ;;  %v930_v18 = vunpack.c.l.bf16 %v929_v9  ;;  %v931_v19 = vunpack.c.h.bf16 %v929_v9  ;;  %v945_v21 = vld [vmem:[#allocation0 + $0x18] sm:$0xff]   ;;  %v949_v22 = vld [vmem:[#allocation0 + $0x10] sm:$0xff]  }
  0x15   :  { %v934_v20 = vunpack.c.l.bf16 %v933_v14  ;;  %v953_v23 = vld [vmem:[#allocation0 + $0x8] sm:$0xff]   ;;  %612 = vst [vmem:[#allocation2 + $0xa0] ss:$8 sm:$0x3] %v918_v6   ;;  %v935_v24 = vunpack.c.h.bf16 %v933_v14  ;;  %v938_v25 = vunpack.c.l.bf16 %v937_v15  ;;  %v939_v26 = vunpack.c.h.bf16 %v937_v15  ;;  %v957_v28 = vld [vmem:[#allocation0] sm:$0xff]  }
  0x16   :  { %614 = vst [vmem:[#allocation2 + $0x91] ss:$8 sm:$0xc] %v918_v6   ;;  %616 = vst [vmem:[#allocation2 + $0x82] ss:$8 sm:$0x30] %v918_v6   ;;  %v942_v27 = vunpack.c.l.bf16 %v941_v16  ;;  %v943_v29 = vunpack.c.h.bf16 %v941_v16  ;;  %v946_v30 = vunpack.c.l.bf16 %v945_v21  ;;  %v947_v31 = vunpack.c.h.bf16 %v945_v21 }
  0x17   :  { %618 = vst [vmem:[#allocation2 + $0x73] ss:$8 sm:$0xc0] %v918_v6   ;;  %632 = vst [vmem:[#allocation2 + $0xb0] ss:$8 sm:$0x3] %v914_v4   ;;  %v950_v32 = vunpack.c.l.bf16 %v949_v22  ;;  %v951_v33 = vunpack.c.h.bf16 %v949_v22  ;;  %v954_v34 = vunpack.c.l.bf16 %v953_v23  ;;  %v955_v35 = vunpack.c.h.bf16 %v953_v23 }
  0x18   :  { %634 = vst [vmem:[#allocation2 + $0xa1] ss:$8 sm:$0xc] %v914_v4   ;;  %636 = vst [vmem:[#allocation2 + $0x92] ss:$8 sm:$0x30] %v914_v4   ;;  %v958_v36 = vunpack.c.l.bf16 %v957_v28  ;;  %v959_v37 = vunpack.c.h.bf16 %v957_v28 }
  0x19   :  { %638 = vst [vmem:[#allocation2 + $0x83] ss:$8 sm:$0xc0] %v914_v4   ;;  %642 = vst [vmem:[#allocation2 + $0xb4] ss:$8 sm:$0x3] %v915_v5  }
  0x1a   :  { %644 = vst [vmem:[#allocation2 + $0xa5] ss:$8 sm:$0xc] %v915_v5   ;;  %646 = vst [vmem:[#allocation2 + $0x96] ss:$8 sm:$0x30] %v915_v5  }
  0x1b   :  { %648 = vst [vmem:[#allocation2 + $0x87] ss:$8 sm:$0xc0] %v915_v5   ;;  %572 = vst [vmem:[#allocation2 + $0x80] ss:$8 sm:$0x3] %v926_v13  }
  0x1c   :  { %574 = vst [vmem:[#allocation2 + $0x71] ss:$8 sm:$0xc] %v926_v13   ;;  %576 = vst [vmem:[#allocation2 + $0x62] ss:$8 sm:$0x30] %v926_v13  }
  0x1d   :  { %578 = vst [vmem:[#allocation2 + $0x53] ss:$8 sm:$0xc0] %v926_v13   ;;  %592 = vst [vmem:[#allocation2 + $0x90] ss:$8 sm:$0x3] %v922_v11  }
  0x1e   :  { %594 = vst [vmem:[#allocation2 + $0x81] ss:$8 sm:$0xc] %v922_v11   ;;  %596 = vst [vmem:[#allocation2 + $0x72] ss:$8 sm:$0x30] %v922_v11  }
  0x1f   :  { %598 = vst [vmem:[#allocation2 + $0x63] ss:$8 sm:$0xc0] %v922_v11   ;;  %602 = vst [vmem:[#allocation2 + $0x94] ss:$8 sm:$0x3] %v923_v12  }
  0x20   :  { %604 = vst [vmem:[#allocation2 + $0x85] ss:$8 sm:$0xc] %v923_v12   ;;  %606 = vst [vmem:[#allocation2 + $0x76] ss:$8 sm:$0x30] %v923_v12  }
  0x21   :  { %608 = vst [vmem:[#allocation2 + $0x67] ss:$8 sm:$0xc0] %v923_v12   ;;  %622 = vst [vmem:[#allocation2 + $0xa4] ss:$8 sm:$0x3] %v919_v10  }
  0x22   :  { %624 = vst [vmem:[#allocation2 + $0x95] ss:$8 sm:$0xc] %v919_v10   ;;  %626 = vst [vmem:[#allocation2 + $0x86] ss:$8 sm:$0x30] %v919_v10  }
  0x23   :  { %628 = vst [vmem:[#allocation2 + $0x77] ss:$8 sm:$0xc0] %v919_v10   ;;  %532 = vst [vmem:[#allocation2 + $0x60] ss:$8 sm:$0x3] %v934_v20  }
  0x24   :  { %534 = vst [vmem:[#allocation2 + $0x51] ss:$8 sm:$0xc] %v934_v20   ;;  %536 = vst [vmem:[#allocation2 + $0x42] ss:$8 sm:$0x30] %v934_v20  }
  0x25   :  { %538 = vst [vmem:[#allocation2 + $0x33] ss:$8 sm:$0xc0] %v934_v20   ;;  %552 = vst [vmem:[#allocation2 + $0x70] ss:$8 sm:$0x3] %v930_v18  }
  0x26   :  { %554 = vst [vmem:[#allocation2 + $0x61] ss:$8 sm:$0xc] %v930_v18   ;;  %556 = vst [vmem:[#allocation2 + $0x52] ss:$8 sm:$0x30] %v930_v18  }
  0x27   :  { %558 = vst [vmem:[#allocation2 + $0x43] ss:$8 sm:$0xc0] %v930_v18   ;;  %562 = vst [vmem:[#allocation2 + $0x74] ss:$8 sm:$0x3] %v931_v19  }
  0x28   :  { %564 = vst [vmem:[#allocation2 + $0x65] ss:$8 sm:$0xc] %v931_v19   ;;  %566 = vst [vmem:[#allocation2 + $0x56] ss:$8 sm:$0x30] %v931_v19  }
  0x29   :  { %568 = vst [vmem:[#allocation2 + $0x47] ss:$8 sm:$0xc0] %v931_v19   ;;  %582 = vst [vmem:[#allocation2 + $0x84] ss:$8 sm:$0x3] %v927_v17  }
  0x2a   :  { %584 = vst [vmem:[#allocation2 + $0x75] ss:$8 sm:$0xc] %v927_v17   ;;  %586 = vst [vmem:[#allocation2 + $0x66] ss:$8 sm:$0x30] %v927_v17  }
  0x2b   :  { %588 = vst [vmem:[#allocation2 + $0x57] ss:$8 sm:$0xc0] %v927_v17   ;;  %492 = vst [vmem:[#allocation2 + $0x40] ss:$8 sm:$0x3] %v942_v27  }
  0x2c   :  { %494 = vst [vmem:[#allocation2 + $0x31] ss:$8 sm:$0xc] %v942_v27   ;;  %496 = vst [vmem:[#allocation2 + $0x22] ss:$8 sm:$0x30] %v942_v27  }
  0x2d   :  { %498 = vst [vmem:[#allocation2 + $0x13] ss:$8 sm:$0xc0] %v942_v27   ;;  %512 = vst [vmem:[#allocation2 + $0x50] ss:$8 sm:$0x3] %v938_v25  }
  0x2e   :  { %514 = vst [vmem:[#allocation2 + $0x41] ss:$8 sm:$0xc] %v938_v25   ;;  %516 = vst [vmem:[#allocation2 + $0x32] ss:$8 sm:$0x30] %v938_v25  }
  0x2f   :  { %518 = vst [vmem:[#allocation2 + $0x23] ss:$8 sm:$0xc0] %v938_v25   ;;  %522 = vst [vmem:[#allocation2 + $0x54] ss:$8 sm:$0x3] %v939_v26  }
  0x30   :  { %524 = vst [vmem:[#allocation2 + $0x45] ss:$8 sm:$0xc] %v939_v26   ;;  %526 = vst [vmem:[#allocation2 + $0x36] ss:$8 sm:$0x30] %v939_v26  }
  0x31   :  { %528 = vst [vmem:[#allocation2 + $0x27] ss:$8 sm:$0xc0] %v939_v26   ;;  %542 = vst [vmem:[#allocation2 + $0x64] ss:$8 sm:$0x3] %v935_v24  }
  0x32   :  { %544 = vst [vmem:[#allocation2 + $0x55] ss:$8 sm:$0xc] %v935_v24   ;;  %546 = vst [vmem:[#allocation2 + $0x46] ss:$8 sm:$0x30] %v935_v24  }
  0x33   :  { %548 = vst [vmem:[#allocation2 + $0x37] ss:$8 sm:$0xc0] %v935_v24   ;;  %452 = vst [vmem:[#allocation2 + $0x20] ss:$8 sm:$0x3] %v950_v32  }
  0x34   :  { %454 = vst [vmem:[#allocation2 + $0x11] ss:$8 sm:$0xc] %v950_v32   ;;  %456 = vst [vmem:[#allocation2 + $0x2] ss:$8 sm:$0x30] %v950_v32  }
  0x35   :  { %458 = vst [vmem:[#allocation2 - $0xd] ss:$8 sm:$0xc0] %v950_v32   ;;  %472 = vst [vmem:[#allocation2 + $0x30] ss:$8 sm:$0x3] %v946_v30  }
  0x36   :  { %474 = vst [vmem:[#allocation2 + $0x21] ss:$8 sm:$0xc] %v946_v30   ;;  %476 = vst [vmem:[#allocation2 + $0x12] ss:$8 sm:$0x30] %v946_v30  }
  0x37   :  { %478 = vst [vmem:[#allocation2 + $0x3] ss:$8 sm:$0xc0] %v946_v30   ;;  %482 = vst [vmem:[#allocation2 + $0x34] ss:$8 sm:$0x3] %v947_v31  }
  0x38   :  { %484 = vst [vmem:[#allocation2 + $0x25] ss:$8 sm:$0xc] %v947_v31   ;;  %486 = vst [vmem:[#allocation2 + $0x16] ss:$8 sm:$0x30] %v947_v31  }
  0x39   :  { %488 = vst [vmem:[#allocation2 + $0x7] ss:$8 sm:$0xc0] %v947_v31   ;;  %502 = vst [vmem:[#allocation2 + $0x44] ss:$8 sm:$0x3] %v943_v29  }
  0x3a   :  { %504 = vst [vmem:[#allocation2 + $0x35] ss:$8 sm:$0xc] %v943_v29   ;;  %506 = vst [vmem:[#allocation2 + $0x26] ss:$8 sm:$0x30] %v943_v29  }
  0x3b   :  { %508 = vst [vmem:[#allocation2 + $0x17] ss:$8 sm:$0xc0] %v943_v29   ;;  %412 = vst [vmem:[#allocation2] ss:$8 sm:$0x3] %v958_v36  }
  0x3c   :  { %414 = vst [vmem:[#allocation2 - $0xf] ss:$8 sm:$0xc] %v958_v36   ;;  %416 = vst [vmem:[#allocation2 - $0x1e] ss:$8 sm:$0x30] %v958_v36  }
  0x3d   :  { %418 = vst [vmem:[#allocation2 - $0x2d] ss:$8 sm:$0xc0] %v958_v36   ;;  %432 = vst [vmem:[#allocation2 + $0x10] ss:$8 sm:$0x3] %v954_v34  }
  0x3e   :  { %434 = vst [vmem:[#allocation2 + $0x1] ss:$8 sm:$0xc] %v954_v34   ;;  %436 = vst [vmem:[#allocation2 - $0xe] ss:$8 sm:$0x30] %v954_v34  }
  0x3f   :  { %438 = vst [vmem:[#allocation2 - $0x1d] ss:$8 sm:$0xc0] %v954_v34   ;;  %442 = vst [vmem:[#allocation2 + $0x14] ss:$8 sm:$0x3] %v955_v35  }
  0x40   :  { %444 = vst [vmem:[#allocation2 + $0x5] ss:$8 sm:$0xc] %v955_v35   ;;  %446 = vst [vmem:[#allocation2 - $0xa] ss:$8 sm:$0x30] %v955_v35  }
  0x41   :  { %448 = vst [vmem:[#allocation2 - $0x19] ss:$8 sm:$0xc0] %v955_v35   ;;  %462 = vst [vmem:[#allocation2 + $0x24] ss:$8 sm:$0x3] %v951_v33  }
  0x42   :  { %464 = vst [vmem:[#allocation2 + $0x15] ss:$8 sm:$0xc] %v951_v33   ;;  %466 = vst [vmem:[#allocation2 + $0x6] ss:$8 sm:$0x30] %v951_v33  }
  0x43   :  { %468 = vst [vmem:[#allocation2 - $0x9] ss:$8 sm:$0xc0] %v951_v33   ;;  %422 = vst [vmem:[#allocation2 + $0x4] ss:$8 sm:$0x3] %v959_v37  }
  0x44   :  { %424 = vst [vmem:[#allocation2 - $0xb] ss:$8 sm:$0xc] %v959_v37   ;;  %426 = vst [vmem:[#allocation2 - $0x1a] ss:$8 sm:$0x30] %v959_v37  }
  0x45   :  { %428 = vst [vmem:[#allocation2 - $0x29] ss:$8 sm:$0xc0] %v959_v37   ;;  %v650_v38 = vld [vmem:[#allocation3 + $0xc0] sm:$0x3f]   ;;  %v819_v40 = vld [vmem:[#allocation2 + $0xb8] sm:$0xff] }
  0x46   :  { %v812_v39 = vld [vmem:[#allocation2 + $0xb0] sm:$0xff]  ;;  %652 = vst [vmem:[#allocation2 + $0xc0] ss:$8 sm:$0x3] %v650_v38   ;;  %v791_v42 = vld [vmem:[#allocation2 + $0x98] sm:$0xff]  ;;  %v742_v49 = vld [vmem:[#allocation2 + $0x60] sm:$0xff] }
  0x47   :  { %654 = vst [vmem:[#allocation2 + $0xb1] ss:$8 sm:$0xc] %v650_v38   ;;  %656 = vst [vmem:[#allocation2 + $0xa2] ss:$8 sm:$0x30] %v650_v38   ;;  %v1018_v43 = vpack.c.bf16 %v819_v40, %v812_v39 }
  0x48   :  { %v784_v41 = vld [vmem:[#allocation2 + $0x90] sm:$0xff]  ;;  %v763_v45 = vld [vmem:[#allocation2 + $0x78] sm:$0xff]  ;;  %v770_v51 = vld [vmem:[#allocation2 + $0x80] sm:$0xff] }
  0x49   :  { %v756_v44 = vld [vmem:[#allocation2 + $0x70] sm:$0xff]  ;;  %v1008_v46 = vpack.c.bf16 %v791_v42, %v784_v41  ;;  %v735_v48 = vld [vmem:[#allocation2 + $0x58] sm:$0xff]  ;;  %1035 = vst [vmem:[%s1125_s1 + $0x58] sm:$0xff] %v1018_v43   ;;  %v714_v54 = vld [vmem:[#allocation2 + $0x40] sm:$0xff] }
  0x4a   :  { %v728_v47 = vld [vmem:[#allocation2 + $0x50] sm:$0xff]  ;;  %v998_v50 = vpack.c.bf16 %v763_v45, %v756_v44  ;;  %v707_v53 = vld [vmem:[#allocation2 + $0x38] sm:$0xff]  ;;  %v798_v56 = vld [vmem:[#allocation2 + $0xa0] sm:$0xff] }
  0x4b   :  { %v700_v52 = vld [vmem:[#allocation2 + $0x30] sm:$0xff]  ;;  %v988_v55 = vpack.c.bf16 %v735_v48, %v728_v47  ;;  %1033 = vst [vmem:[%s1125_s1 + $0x48] sm:$0xff] %v1008_v46   ;;  %v679_v58 = vld [vmem:[#allocation2 + $0x18] sm:$0xff]  ;;  %v686_v59 = vld [vmem:[#allocation2 + $0x20] sm:$0xff] }
  0x4c   :  { %v672_v57 = vld [vmem:[#allocation2 + $0x10] sm:$0xff]  ;;  %v978_v60 = vpack.c.bf16 %v707_v53, %v700_v52  ;;  %1031 = vst [vmem:[%s1125_s1 + $0x38] sm:$0xff] %v998_v50   ;;  %v661_v61 = vld [vmem:[#allocation2] sm:$0xff]  ;;  %v666_v62 = vld [vmem:[#allocation2 + $0x8] sm:$0xff] }
  0x4d   :  { %v968_v63 = vpack.c.bf16 %v679_v58, %v672_v57  ;;  %v693_v0 = vld [vmem:[#allocation2 + $0x28] sm:$0xff]  ;;  %1029 = vst [vmem:[%s1125_s1 + $0x28] sm:$0xff] %v988_v55   ;;  %v963_v1 = vpack.c.bf16 %v666_v62, %v661_v61 }
  0x4e   :  { %v973_v2 = vpack.c.bf16 %v693_v0, %v686_v59  ;;  %1027 = vst [vmem:[%s1125_s1 + $0x18] sm:$0xff] %v978_v60   ;;  %v721_v3 = vld [vmem:[#allocation2 + $0x48] sm:$0xff]  ;;  %v826_v10 = vld [vmem:[#allocation2 + $0xc0] sm:$0xff] }
  0x4f   :  { %v749_v4 = vld [vmem:[#allocation2 + $0x68] sm:$0xff]  ;;  %1025 = vst [vmem:[%s1125_s1 + $0x8] sm:$0xff] %v968_v63   ;;  %v983_v6 = vpack.c.bf16 %v721_v3, %v714_v54  ;;  %964 = vst [vmem:[%s1125_s1] sm:$0xff] %v963_v1  }
  0x50   :  { %v777_v5 = vld [vmem:[#allocation2 + $0x88] sm:$0xff]  ;;  %v993_v7 = vpack.c.bf16 %v749_v4, %v742_v49  ;;  %1026 = vst [vmem:[%s1125_s1 + $0x10] sm:$0xff] %v973_v2  }
  0x51   :  { %v1003_v8 = vpack.c.bf16 %v777_v5, %v770_v51  ;;  %v805_v9 = vld [vmem:[#allocation2 + $0xa8] sm:$0xff]  ;;  %1028 = vst [vmem:[%s1125_s1 + $0x20] sm:$0xff] %v983_v6  }
  0x52   :  { %v833_v11 = vld [vmem:[#allocation2 + $0xc8] sm:$0xff]  ;;  %v1013_v12 = vpack.c.bf16 %v805_v9, %v798_v56  ;;  %1030 = vst [vmem:[%s1125_s1 + $0x30] sm:$0xff] %v993_v7  }
  0x53   :  { %v1023_v13 = vpack.c.bf16 %v833_v11, %v826_v10  ;;  %1032 = vst [vmem:[%s1125_s1 + $0x40] sm:$0xff] %v1003_v8  }
  0x54   :  { %1034 = vst [vmem:[%s1125_s1 + $0x50] sm:$0xff] %v1013_v12  }
  0x55   :  { %1036 = vst [vmem:[%s1125_s1 + $0x60] sm:$0xff] %v1023_v13  }
  0x56   :  { %839 = vsyncpa [#allocation1], 1 }

// kernel: v2s_reprog_forward.1
= control target key start
LH: loop header
LB: loop body
LE: loop exit
PB: predicated region body
PF: predicated region fallthrough
CT: control target
= control target key end

     0   :  { %17 = vsyncpa [#allocation3], 0  ;;  %s9882_s0 = inlined_call_operand.hbm [shape: f32[1,800,160], index: 0, kind: input, shape index: {}]   ;;  %s9883_s1 = inlined_call_operand.hbm [shape: bf16[160,256], index: 1, kind: input, shape index: {}]   ;;  %s9884_s2 = inlined_call_operand.hbm [shape: bf16[160,256], index: 2, kind: input, shape index: {}]   ;;  %s9885_s3 = inlined_call_operand.hbm [shape: bf16[800,128], index: 3, kind: input, shape index: {}]   ;;  %s9886_s4 = inlined_call_operand.hbm [shape: bf16[128,256], index: 4, kind: input, shape index: {}]   ;;  %s9887_s5 = inlined_call_operand.hbm [shape: bf16[8,800], index: 5, kind: input, shape index: {}]   ;;  %s9888_s6 = inlined_call_operand.hbm [shape: bf16[128,128], index: 6, kind: input, shape index: {}]   ;;  %s9889_s7 = inlined_call_operand.hbm [shape: bf16[128,128], index: 7, kind: input, shape index: {}]   ;;  %s9890_s8 = inlined_call_operand.hbm [shape: f32[1,128], index: 8, kind: input, shape index: {}]   ;;  %s9891_s9 = inlined_call_operand.hbm [shape: bf16[128,128], index: 9, kind: input, shape index: {}]   ;;  %s9892_s10 = inlined_call_operand.hbm [shape: f32[1,128], index: 10, kind: input, shape index: {}]   ;;  %s9893_s11 = inlined_call_operand.hbm [shape: bf16[128,128], index: 11, kind: input, shape index: {}]   ;;  %s9894_s12 = inlined_call_operand.hbm [shape: f32[8,128], index: 12, kind: output, shape index: {}]  }
   0x1   :  { %18 = vsyncpa [#allocation6], 0 }
   0x2   :  { %19 = vsyncpa [#allocation9], 0 }
   0x3   :  { %20 = vsyncpa [#allocation12], 0 }
   0x4   :  { %21 = vsyncpa [#allocation15], 0 }
   0x5   :  { %22 = vsyncpa [#allocation18], 0 }
   0x6   :  { %23 = vsyncpa [#allocation21], 0 }
   0x7   :  { %24 = vsyncpa [#allocation4], 0  ;;  %s7363_s21 = smov [#allocation5]   ;;  %s7061_s25 = scalar_lea.hbm %s9883_s1, 2560 }
   0x8   :  { %s42_s22 = sshll.u32 %s7363_s21, 4  ;;  %p7062_p0 = scmp.ne.s32.totalorder %s9883_s1, %s7061_s25  ;;  %s43_s22 = int_to_ptr.vmem [resolvable:$true] %s42_s22 }
   0x9   :  { %p7065_p1 = scmp.lt.u32.totalorder %s7061_s25, %s9883_s1 }
   0xb   :  { %p7067_p2 = pnand %p7065_p1, %p7062_p0 }
   0xd   :  { %7070 = shalt.err (!%p7067_p2)
}
   0xe   :  { %s7071_s30 = scalar_lea.vmem %s43_s22, 2560  ;;  %p7076_p4 = scmp.lt.s32.totalorder %s43_s22, %s43_s22 }
   0xf   :  { %p7072_p3 = scmp.ne.s32.totalorder %s43_s22, %s7071_s30  ;;  %p7077_p5 = scmp.lt.s32.totalorder %s7071_s30, %s7071_s30 }
  0x11   :  { %p7078_p6 = por %p7077_p5, %p7076_p4 }
  0x13   :  { %p7079_p7 = pnand %p7078_p6, %p7072_p3 }
  0x15   :  { %7082 = shalt.err (!%p7079_p7)
}
  0x16   :  { %s7364_s13 = smov 128   ;;  %s7365_s14 = smov 8  }
  0x17   :  { %48 = dma.hbm_to_vmem [thread:$0]  %s9883_s1, 2560, %s43_s22, [#allocation6], %s7364_s13, %s7364_s13, %s7365_s14  }
  0x18   :  { %s7366_s17 = smov [#allocation8]   ;;  %s7083_s21 = scalar_lea.hbm %s9885_s3, 6400 }
  0x19   :  { %s66_s18 = sshll.u32 %s7366_s17, 4  ;;  %p7084_p8 = scmp.ne.s32.totalorder %s9885_s3, %s7083_s21  ;;  %s67_s18 = int_to_ptr.vmem [resolvable:$true] %s66_s18 }
  0x1a   :  { %p7087_p9 = scmp.lt.u32.totalorder %s7083_s21, %s9885_s3 }
  0x1c   :  { %p7089_p10 = pnand %p7087_p9, %p7084_p8 }
  0x1e   :  { %7092 = shalt.err (!%p7089_p10)
}
  0x1f   :  { %s7093_s27 = scalar_lea.vmem %s67_s18, 6400  ;;  %p7098_p12 = scmp.lt.s32.totalorder %s67_s18, %s67_s18 }
  0x20   :  { %p7094_p11 = scmp.ne.s32.totalorder %s67_s18, %s7093_s27  ;;  %p7099_p13 = scmp.lt.s32.totalorder %s7093_s27, %s7093_s27 }
  0x22   :  { %p7100_p0 = por %p7099_p13, %p7098_p12 }
  0x24   :  { %p7101_p1 = pnand %p7100_p0, %p7094_p11 }
  0x26   :  { %7104 = shalt.err (!%p7101_p1)
}
  0x27   :  { %s7367_s1 = smov 64   ;;  %s7368_s22 = smov 4  }
  0x28   :  { %72 = dma.hbm_to_vmem [thread:$0]  %s9885_s3, 6400, %s67_s18, [#allocation9], %s7367_s1, %s7367_s1, %s7368_s22  }
  0x29   :  { %s7369_s30 = smov [#allocation11]   ;;  %s7370_s16 = smov [#allocation14]  }
  0x2a   :  { %s91_s15 = sshll.u32 %s7369_s30, 4  ;;  %s112_s17 = sshll.u32 %s7370_s16, 4  ;;  %s92_s15 = int_to_ptr.vmem [resolvable:$true] %s91_s15  ;;  %s7480_s17 = int_to_ptr.vmem [resolvable:$true] %s112_s17 }
  0x2b   :  { %s7105_s21 = scalar_lea.hbm %s9887_s5, 448 }
  0x2c   :  { %p7106_p2 = scmp.ne.s32.totalorder %s9887_s5, %s7105_s21  ;;  %p7109_p3 = scmp.lt.u32.totalorder %s7105_s21, %s9887_s5 }
  0x2e   :  { %p7111_p4 = pnand %p7109_p3, %p7106_p2 }
  0x30   :  { %7114 = shalt.err (!%p7111_p4)
}
  0x31   :  { %s7115_s3 = scalar_lea.vmem %s92_s15, 448  ;;  %p7120_p6 = scmp.lt.s32.totalorder %s92_s15, %s92_s15 }
  0x32   :  { %p7116_p5 = scmp.ne.s32.totalorder %s92_s15, %s7115_s3  ;;  %p7121_p7 = scmp.lt.s32.totalorder %s7115_s3, %s7115_s3 }
  0x34   :  { %p7122_p8 = por %p7121_p7, %p7120_p6 }
  0x36   :  { %p7123_p9 = pnand %p7122_p8, %p7116_p5 }
  0x38   :  { %7126 = shalt.err (!%p7123_p9)
}
  0x39   :  { %94 = dma.hbm_to_vmem [thread:$0]  %s9887_s5, 448, %s92_s15, [#allocation12]  }
  0x3a   :  { %s7127_s30 = scalar_lea.hbm %s9889_s7, 1024 }
  0x3b   :  { %p7128_p10 = scmp.ne.s32.totalorder %s9889_s7, %s7127_s30  ;;  %p7131_p11 = scmp.lt.u32.totalorder %s7127_s30, %s9889_s7 }
  0x3d   :  { %p7133_p12 = pnand %p7131_p11, %p7128_p10 }
  0x3f   :  { %7136 = shalt.err (!%p7133_p12)
}
  0x40   :  { %s7137_s23 = scalar_lea.vmem %s7480_s17, 1024  ;;  %p7142_p0 = scmp.lt.s32.totalorder %s7480_s17, %s7480_s17 }
  0x41   :  { %p7138_p13 = scmp.ne.s32.totalorder %s7480_s17, %s7137_s23  ;;  %p7143_p1 = scmp.lt.s32.totalorder %s7137_s23, %s7137_s23 }
  0x43   :  { %p7144_p2 = por %p7143_p1, %p7142_p0 }
  0x45   :  { %p7145_p3 = pnand %p7144_p2, %p7138_p13 }
  0x47   :  { %7148 = shalt.err (!%p7145_p3)
}
  0x48   :  { %118 = dma.hbm_to_vmem [thread:$0]  %s9889_s7, 1024, %s7480_s17, [#allocation15], %s7367_s1, %s7367_s1, %s7368_s22  }
  0x49   :  { %s7371_s24 = smov [#allocation17]   ;;  %s7372_s26 = smov [#allocation2]  }
  0x4a   :  { %s134_s25 = sshll.u32 %s7371_s24, 4  ;;  %s30_s3 = sshll.u32 %s7372_s26, 4  ;;  %s135_s25 = int_to_ptr.vmem [resolvable:$true] %s134_s25  ;;  %s7514_s3 = int_to_ptr.vmem [resolvable:$true] %s30_s3 }
  0x4b   :  { %s7149_s28 = scalar_lea.hbm %s9891_s9, 1024 }
  0x4c   :  { %p7150_p4 = scmp.ne.s32.totalorder %s9891_s9, %s7149_s28  ;;  %p7153_p5 = scmp.lt.u32.totalorder %s7149_s28, %s9891_s9 }
  0x4e   :  { %p7155_p6 = pnand %p7153_p5, %p7150_p4 }
  0x50   :  { %7158 = shalt.err (!%p7155_p6)
}
  0x51   :  { %s7159_s7 = scalar_lea.vmem %s135_s25, 1024  ;;  %p7164_p8 = scmp.lt.s32.totalorder %s135_s25, %s135_s25 }
  0x52   :  { %p7160_p7 = scmp.ne.s32.totalorder %s135_s25, %s7159_s7  ;;  %p7165_p9 = scmp.lt.s32.totalorder %s7159_s7, %s7159_s7 }
  0x54   :  { %p7166_p10 = por %p7165_p9, %p7164_p8 }
  0x56   :  { %p7167_p11 = pnand %p7166_p10, %p7160_p7 }
  0x58   :  { %7170 = shalt.err (!%p7167_p11)
}
  0x59   :  { %140 = dma.hbm_to_vmem [thread:$0]  %s9891_s9, 1024, %s135_s25, [#allocation18], %s7367_s1, %s7367_s1, %s7368_s22  }
  0x5a   :  { %s7171_s5 = scalar_lea.hbm %s9882_s0, 25600 }
  0x5b   :  { %p7172_p12 = scmp.ne.s32.totalorder %s9882_s0, %s7171_s5  ;;  %p7175_p13 = scmp.lt.u32.totalorder %s7171_s5, %s9882_s0 }
  0x5d   :  { %p7177_p0 = pnand %p7175_p13, %p7172_p12 }
  0x5f   :  { %7180 = shalt.err (!%p7177_p0)
}
  0x60   :  { %s7181_s27 = scalar_lea.vmem %s7514_s3, 25600  ;;  %p7186_p2 = scmp.lt.s32.totalorder %s7514_s3, %s7514_s3 }
  0x61   :  { %p7182_p1 = scmp.ne.s32.totalorder %s7514_s3, %s7181_s27  ;;  %p7187_p3 = scmp.lt.s32.totalorder %s7181_s27, %s7181_s27 }
  0x63   :  { %p7188_p4 = por %p7187_p3, %p7186_p2 }
  0x65   :  { %p7189_p5 = pnand %p7188_p4, %p7182_p1 }
  0x67   :  { %7192 = shalt.err (!%p7189_p5)
}
  0x68   :  { %s7373_s9 = smov 256   ;;  %s7374_s25 = smov 16  }
  0x69   :  { %36 = dma.hbm_to_vmem [thread:$0]  %s9882_s0, 25600, %s7514_s3, [#allocation3], %s7373_s9, %s7373_s9, %s7374_s25  }
  0x6a   :  { %s7375_s30 = smov [#allocation7]   ;;  %s7376_s19 = smov [#allocation10]  }
  0x6b   :  { %s54_s16 = sshll.u32 %s7375_s30, 4  ;;  %s78_s7 = sshll.u32 %s7376_s19, 4  ;;  %s55_s16 = int_to_ptr.vmem [resolvable:$true] %s54_s16  ;;  %s7548_s7 = int_to_ptr.vmem [resolvable:$true] %s78_s7 }
  0x6c   :  { %s7193_s21 = scalar_lea.hbm %s9884_s2, 2560 }
  0x6d   :  { %p7194_p6 = scmp.ne.s32.totalorder %s9884_s2, %s7193_s21  ;;  %p7197_p7 = scmp.lt.u32.totalorder %s7193_s21, %s9884_s2 }
  0x6f   :  { %p7199_p8 = pnand %p7197_p7, %p7194_p6 }
  0x71   :  { %7202 = shalt.err (!%p7199_p8)
}
  0x72   :  { %s7203_s0 = scalar_lea.vmem %s55_s16, 2560  ;;  %p7208_p10 = scmp.lt.s32.totalorder %s55_s16, %s55_s16 }
  0x73   :  { %p7204_p9 = scmp.ne.s32.totalorder %s55_s16, %s7203_s0  ;;  %p7209_p11 = scmp.lt.s32.totalorder %s7203_s0, %s7203_s0 }
  0x75   :  { %p7210_p12 = por %p7209_p11, %p7208_p10 }
  0x77   :  { %p7211_p13 = pnand %p7210_p12, %p7204_p9 }
  0x79   :  { %7214 = shalt.err (!%p7211_p13)
}
  0x7a   :  { %60 = dma.hbm_to_vmem [thread:$0]  %s9884_s2, 2560, %s55_s16, [#allocation6], %s7364_s13, %s7364_s13, %s7365_s14  }
  0x7b   :  { %s7215_s9 = scalar_lea.hbm %s9886_s4, 2048 }
  0x7c   :  { %p7216_p0 = scmp.ne.s32.totalorder %s9886_s4, %s7215_s9  ;;  %p7219_p1 = scmp.lt.u32.totalorder %s7215_s9, %s9886_s4 }
  0x7e   :  { %p7221_p2 = pnand %p7219_p1, %p7216_p0 }
  0x80   :  { %7224 = shalt.err (!%p7221_p2)
}
  0x81   :  { %s7225_s19 = scalar_lea.vmem %s7548_s7, 2048  ;;  %p7230_p4 = scmp.lt.s32.totalorder %s7548_s7, %s7548_s7 }
  0x82   :  { %p7226_p3 = scmp.ne.s32.totalorder %s7548_s7, %s7225_s19  ;;  %p7231_p5 = scmp.lt.s32.totalorder %s7225_s19, %s7225_s19 }
  0x84   :  { %p7232_p6 = por %p7231_p5, %p7230_p4 }
  0x86   :  { %p7233_p7 = pnand %p7232_p6, %p7226_p3 }
  0x88   :  { %7236 = shalt.err (!%p7233_p7)
}
  0x89   :  { %84 = dma.hbm_to_vmem [thread:$0]  %s9886_s4, 2048, %s7548_s7, [#allocation9], %s7364_s13, %s7364_s13, %s7365_s14  }
  0x8a   :  { %s7377_s17 = smov [#allocation13]   ;;  %s7378_s21 = smov [#allocation16]  }
  0x8b   :  { %s100_s20 = sshll.u32 %s7377_s17, 4  ;;  %s125_s23 = sshll.u32 %s7378_s21, 4  ;;  %s101_s20 = int_to_ptr.vmem [resolvable:$true] %s100_s20  ;;  %s126_s23 = int_to_ptr.vmem [resolvable:$true] %s125_s23 }
  0x8c   :  { %s7237_s24 = scalar_lea.hbm %s9888_s6, 1024 }
  0x8d   :  { %p7238_p8 = scmp.ne.s32.totalorder %s9888_s6, %s7237_s24  ;;  %p7241_p9 = scmp.lt.u32.totalorder %s7237_s24, %s9888_s6 }
  0x8f   :  { %p7243_p10 = pnand %p7241_p9, %p7238_p8 }
  0x91   :  { %7246 = shalt.err (!%p7243_p10)
}
  0x92   :  { %s7247_s4 = scalar_lea.vmem %s101_s20, 1024  ;;  %p7252_p12 = scmp.lt.s32.totalorder %s101_s20, %s101_s20 }
  0x93   :  { %p7248_p11 = scmp.ne.s32.totalorder %s101_s20, %s7247_s4  ;;  %p7253_p13 = scmp.lt.s32.totalorder %s7247_s4, %s7247_s4 }
  0x95   :  { %p7254_p0 = por %p7253_p13, %p7252_p12 }
  0x97   :  { %p7255_p1 = pnand %p7254_p0, %p7248_p11 }
  0x99   :  { %7258 = shalt.err (!%p7255_p1)
}
  0x9a   :  { %106 = dma.hbm_to_vmem [thread:$0]  %s9888_s6, 1024, %s101_s20, [#allocation12], %s7367_s1, %s7367_s1, %s7368_s22  }
  0x9b   :  { %s7259_s9 = scalar_lea.hbm %s9890_s8, 16 }
  0x9c   :  { %p7260_p2 = scmp.ne.s32.totalorder %s9890_s8, %s7259_s9  ;;  %p7263_p3 = scmp.lt.u32.totalorder %s7259_s9, %s9890_s8 }
  0x9e   :  { %p7265_p4 = pnand %p7263_p3, %p7260_p2 }
  0xa0   :  { %7268 = shalt.err (!%p7265_p4)
}
  0xa1   :  { %s7269_s19 = scalar_lea.vmem %s126_s23, 16  ;;  %s7273_s2 = scalar_lea.vmem %s126_s23, 32 }
  0xa2   :  { %p7270_p5 = scmp.ne.s32.totalorder %s126_s23, %s7269_s19  ;;  %p7274_p6 = scmp.lt.s32.totalorder %s126_s23, %s126_s23 }
  0xa3   :  { %p7275_p7 = scmp.lt.s32.totalorder %s7273_s2, %s7269_s19 }
  0xa5   :  { %p7276_p8 = por %p7275_p7, %p7274_p6 }
  0xa7   :  { %p7277_p9 = pnand %p7276_p8, %p7270_p5 }
  0xa9   :  { %7280 = shalt.err (!%p7277_p9)
}
  0xaa   :  { %128 = dma.hbm_to_vmem [thread:$0]  %s9890_s8, 16, %s126_s23, [#allocation15]  }
  0xab   :  { %s7379_s17 = smov [#allocation19]   ;;  %s7380_s21 = smov [#allocation20]  }
  0xac   :  { %s147_s20 = sshll.u32 %s7379_s17, 4  ;;  %s156_s5 = sshll.u32 %s7380_s21, 4  ;;  %s148_s20 = int_to_ptr.vmem [resolvable:$true] %s147_s20  ;;  %s7612_s5 = int_to_ptr.vmem [resolvable:$true] %s156_s5 }
  0xad   :  { %s7281_s0 = scalar_lea.hbm %s9892_s10, 16 }
  0xae   :  { %p7282_p10 = scmp.ne.s32.totalorder %s9892_s10, %s7281_s0  ;;  %p7285_p11 = scmp.lt.u32.totalorder %s7281_s0, %s9892_s10 }
  0xb0   :  { %p7287_p12 = pnand %p7285_p11, %p7282_p10 }
  0xb2   :  { %7290 = shalt.err (!%p7287_p12)
}
  0xb3   :  { %s7291_s8 = scalar_lea.vmem %s148_s20, 16  ;;  %s7295_s23 = scalar_lea.vmem %s148_s20, 32 }
  0xb4   :  { %p7292_p13 = scmp.ne.s32.totalorder %s148_s20, %s7291_s8  ;;  %p7296_p0 = scmp.lt.s32.totalorder %s148_s20, %s148_s20 }
  0xb5   :  { %p7297_p1 = scmp.lt.s32.totalorder %s7295_s23, %s7291_s8 }
  0xb7   :  { %p7298_p2 = por %p7297_p1, %p7296_p0 }
  0xb9   :  { %p7299_p3 = pnand %p7298_p2, %p7292_p13 }
  0xbb   :  { %7302 = shalt.err (!%p7299_p3)
}
  0xbc   :  { %150 = dma.hbm_to_vmem [thread:$0]  %s9892_s10, 16, %s148_s20, [#allocation18]  }
  0xbd   :  { %s7303_s9 = scalar_lea.hbm %s9893_s11, 1024 }
  0xbe   :  { %p7304_p4 = scmp.ne.s32.totalorder %s9893_s11, %s7303_s9  ;;  %p7307_p5 = scmp.lt.u32.totalorder %s7303_s9, %s9893_s11 }
  0xc0   :  { %p7309_p6 = pnand %p7307_p5, %p7304_p4 }
  0xc2   :  { %7312 = shalt.err (!%p7309_p6)
}
  0xc3   :  { %s7313_s19 = scalar_lea.vmem %s7612_s5, 1024  ;;  %p7318_p8 = scmp.lt.s32.totalorder %s7612_s5, %s7612_s5 }
  0xc4   :  { %p7314_p7 = scmp.ne.s32.totalorder %s7612_s5, %s7313_s19  ;;  %p7319_p9 = scmp.lt.s32.totalorder %s7313_s19, %s7313_s19 }
  0xc6   :  { %p7320_p10 = por %p7319_p9, %p7318_p8 }
  0xc8   :  { %p7321_p11 = pnand %p7320_p10, %p7314_p7 }
  0xca   :  { %7324 = shalt.err (!%p7321_p11)
}
  0xcb   :  { %162 = dma.hbm_to_vmem [thread:$0]  %s9893_s11, 1024, %s7612_s5, [#allocation21], %s7367_s1, %s7367_s1, %s7368_s22  }
  0xcc   :  { %7347 = dma.done.wait [#allocation3], 25600  }
  0xcd   :  { %7348 = vsyncadd [#allocation3], 4294941696 }
  0xce   :  { %7349 = dma.done.wait [#allocation6], 5120  }
  0xcf   :  { %7350 = vsyncadd [#allocation6], 4294962176 }
  0xd0   :  { %7351 = dma.done.wait [#allocation9], 8448  }
  0xd1   :  { %7352 = vsyncadd [#allocation9], 4294958848 }
  0xd2   :  { %7353 = dma.done.wait [#allocation12], 1472  }
  0xd3   :  { %7354 = vsyncadd [#allocation12], 4294965824 }
  0xd4   :  { %7355 = dma.done.wait [#allocation15], 1040  }
  0xd5   :  { %7356 = vsyncadd [#allocation15], 4294966256 }
  0xd6   :  { %7357 = dma.done.wait [#allocation18], 1040  }
  0xd7   :  { %7358 = vsyncadd [#allocation18], 4294966256 }
  0xd8   :  { %7359 = dma.done.wait [#allocation21], 1024  }
  0xd9   :  { %7360 = vsyncadd [#allocation21], 4294966272  ;;  %v6688_v0 = vld [vmem:[#allocation5 + $0x4] ss:$8 sps:$4 sm:$0xff]   ;;  %v6690_v1 = vld [vmem:[#allocation5] ss:$8 sps:$4 sm:$0xff]  }
  0xda   :  { %2077 = vmatprep.subr.bf16.mxu0 %v6688_v0  ;;  %v6691_v2 = vld [vmem:[#allocation5 + $0x14] ss:$8 sps:$4 sm:$0xff]   ;;  %v6693_v3 = vld [vmem:[#allocation5 + $0x10] ss:$8 sps:$4 sm:$0xff]   ;;  %v6694_v4 = vld [vmem:[#allocation5 + $0x24] ss:$8 sps:$4 sm:$0xff]  }
  0xdb   :  { %2078 = vmatpush1.bf16.msra.mxu0 %v6690_v1  ;;  %v6696_v5 = vld [vmem:[#allocation5 + $0x20] ss:$8 sps:$4 sm:$0xff]   ;;  %v6697_v6 = vld [vmem:[#allocation5 + $0x34] ss:$8 sps:$4 sm:$0xff]   ;;  %v6699_v7 = vld [vmem:[#allocation5 + $0x30] ss:$8 sps:$4 sm:$0xff]  }
  0xdc   :  { %2079 = vmatprep.subr.bf16.mxu0 %v6691_v2  ;;  %v6700_v8 = vld [vmem:[#allocation5 + $0x44] ss:$8 sps:$4 sm:$0xff]   ;;  %v7648_v10 = vld [vmem:[#allocation2 + $0x18] sm:$0xff]  ;;  %vm1143_vm0 = vcmask 261120   ;;  %v6702_v12 = vld [vmem:[#allocation5 + $0x40] ss:$8 sps:$4 sm:$0xff]  }
  0xdd   :  { %v7646_v9 = vld [vmem:[#allocation2 + $0x8] sm:$0xff]  ;;  %v6703_v13 = vld [vmem:[#allocation5 + $0x54] ss:$8 sps:$4 sm:$0xff]   ;;  %v6705_v14 = vld [vmem:[#allocation5 + $0x50] ss:$8 sps:$4 sm:$0xff]   ;;  %vm7383_vm2 = vmmov 0  }
  0xde   :  { %9910 = vst [vmem:[#allocation31_spill] sm:$0xff] %v7646_v9  ;;  %v401_v11 = vpack.c.bf16 %v7648_v10, %v7646_v9  ;;  %v6706_v15 = vld [vmem:[#allocation5 + $0x64] ss:$8 sps:$4 sm:$0xff]   ;;  %v6708_v16 = vld [vmem:[#allocation5 + $0x60] ss:$8 sps:$4 sm:$0xff]   ;;  %v7655_v24 = vld [vmem:[#allocation2 + $0x10] sm:$0xff] }
  0xdf   :  { %2080 = vmatpush1.bf16.msra.mxu0 %v6693_v3  ;;  %v6709_v17 = vld [vmem:[#allocation5 + $0x74] ss:$8 sps:$4 sm:$0xff]   ;;  %v6711_v18 = vld [vmem:[#allocation5 + $0x70] ss:$8 sps:$4 sm:$0xff]   ;;  %v6712_v19 = vld [vmem:[#allocation5 + $0x84] ss:$8 sps:$4 sm:$0xff]  }
  0xe0   :  { %2081 = vmatprep.subr.bf16.mxu0 %v6694_v4  ;;  %5770 = vmatprep.mubr.msk.bf16.mxu0 %vm1143_vm0, %v401_v11  ;;  %v6714_v20 = vld [vmem:[#allocation5 + $0x80] ss:$8 sps:$4 sm:$0xff]   ;;  %v6715_v21 = vld [vmem:[#allocation5 + $0x94] ss:$8 sps:$4 sm:$0xff]   ;;  %v6717_v22 = vld [vmem:[#allocation5 + $0x90] ss:$8 sps:$4 sm:$0xff]  }
  0xe1   :  { %v7653_v23 = vld [vmem:[#allocation2] sm:$0xff]  ;;  %v6720_v25 = vld [vmem:[#allocation10 + $0x4] ss:$8 sps:$4 sm:$0xff]   ;;  %v7657_v26 = vld [vmem:[#allocation2 + $0x28] sm:$0xff]  ;;  %s7384_s11 = smov [#allocation22]  }
  0xe2   :  { %9911 = vst [vmem:[#allocation32_spill] sm:$0xff] %v7653_v23  ;;  %v7659_v27 = vld [vmem:[#allocation2 + $0x38] sm:$0xff]  ;;  %v400_v28 = vpack.c.bf16 %v7655_v24, %v7653_v23  ;;  %v6723_v31 = vld [vmem:[#allocation10 + $0x14] ss:$8 sps:$4 sm:$0xff]   ;;  %v7667_v33 = vld [vmem:[#allocation2 + $0x30] sm:$0xff]  ;;  %s5665_s1 = sshll.u32 %s7384_s11, 4  ;;  %s5666_s1 = int_to_ptr.vmem [resolvable:$true] %s5665_s1 }
  0xe3   :  { %2082 = vmatpush1.bf16.msra.mxu0 %v6696_v5  ;;  %v6718_v29 = vld [vmem:[#allocation10] ss:$8 sps:$4 sm:$0xff]   ;;  %v403_v30 = vpack.c.bf16 %v7659_v27, %v7657_v26  ;;  %v7665_v32 = vld [vmem:[#allocation2 + $0x20] sm:$0xff]  ;;  %v7669_v34 = vld [vmem:[#allocation2 + $0x48] sm:$0xff]  ;;  %s7325_s22 = scalar_lea.vmem %s5666_s1, 128  ;;  %p7330_p13 = scmp.lt.s32.totalorder %s5666_s1, %s5666_s1 }
  0xe4   :  { %2083 = vmatprep.subr.bf16.mxu0 %v6697_v6  ;;  %v7671_v35 = vld [vmem:[#allocation2 + $0x58] sm:$0xff]  ;;  %v6721_v36 = vld [vmem:[#allocation10 + $0x10] ss:$8 sps:$4 sm:$0xff]   ;;  %v402_v39 = vpack.c.bf16 %v7667_v33, %v7665_v32  ;;  %v7680_v42 = vld [vmem:[#allocation2 + $0x50] sm:$0xff]  ;;  %p7326_p12 = scmp.ne.s32.totalorder %s5666_s1, %s7325_s22  ;;  %p7331_p0 = scmp.lt.s32.totalorder %s7325_s22, %s7325_s22 }
  0xe5   :  { %v6726_v37 = vld [vmem:[#allocation10 + $0x24] ss:$8 sps:$4 sm:$0xff]   ;;  %v6724_v38 = vld [vmem:[#allocation10 + $0x20] ss:$8 sps:$4 sm:$0xff]   ;;  %v405_v40 = vpack.c.bf16 %v7671_v35, %v7669_v34  ;;  %v7678_v41 = vld [vmem:[#allocation2 + $0x40] sm:$0xff] }
  0xe6   :  { %v7683_v43 = vld [vmem:[#allocation2 + $0x68] sm:$0xff]  ;;  %v7685_v44 = vld [vmem:[#allocation2 + $0x78] sm:$0xff]  ;;  %v404_v45 = vpack.c.bf16 %v7680_v42, %v7678_v41  ;;  %v7692_v49 = vld [vmem:[#allocation2 + $0x60] sm:$0xff]  ;;  %p7332_p1 = por %p7331_p0, %p7330_p13 }
  0xe7   :  { %2084 = vmatpush1.bf16.msra.mxu0 %v6699_v7  ;;  %v407_v46 = vpack.c.bf16 %v7685_v44, %v7683_v43  ;;  %v6727_v47 = vld [vmem:[#allocation10 + $0x30] ss:$8 sps:$4 sm:$0xff]   ;;  %v6729_v48 = vld [vmem:[#allocation10 + $0x34] ss:$8 sps:$4 sm:$0xff]   ;;  %v7694_v50 = vld [vmem:[#allocation2 + $0x70] sm:$0xff] }
  0xe8   :  { %2085 = vmatprep.subr.bf16.mxu0 %v6700_v8  ;;  %v7696_v51 = vld [vmem:[#allocation2 + $0x88] sm:$0xff]  ;;  %v7698_v52 = vld [vmem:[#allocation2 + $0x98] sm:$0xff]  ;;  %v406_v53 = vpack.c.bf16 %v7694_v50, %v7692_v49  ;;  %v7704_v55 = vld [vmem:[#allocation2 + $0x80] sm:$0xff]  ;;  %p7333_p2 = pnand %p7332_p1, %p7326_p12 }
  0xe9   :  { %v409_v54 = vpack.c.bf16 %v7698_v52, %v7696_v51  ;;  %v7707_v56 = vld [vmem:[#allocation2 + $0x90] sm:$0xff]  ;;  %v7709_v57 = vld [vmem:[#allocation2 + $0xa8] sm:$0xff]  ;;  %v7711_v58 = vld [vmem:[#allocation2 + $0xb8] sm:$0xff] }
  0xea   :  { %v408_v59 = vpack.c.bf16 %v7707_v56, %v7704_v55  ;;  %v411_v60 = vpack.c.bf16 %v7711_v58, %v7709_v57  ;;  %v7717_v61 = vld [vmem:[#allocation2 + $0xa0] sm:$0xff]  ;;  %v7720_v62 = vld [vmem:[#allocation2 + $0xb0] sm:$0xff]  ;;  %v7722_v63 = vld [vmem:[#allocation2 + $0xc8] sm:$0xff] }
  0xeb   :  { %2086 = vmatpush1.bf16.msra.mxu0 %v6702_v12  ;;  %v7724_v0 = vld [vmem:[#allocation2 + $0xd8] sm:$0xff]  ;;  %v410_v1 = vpack.c.bf16 %v7720_v62, %v7717_v61  ;;  %v7730_v3 = vld [vmem:[#allocation2 + $0xc0] sm:$0xff]  ;;  %v7733_v4 = vld [vmem:[#allocation2 + $0xd0] sm:$0xff] }
  0xec   :  { %2087 = vmatprep.subr.bf16.mxu0 %v6703_v13  ;;  %v413_v2 = vpack.c.bf16 %v7724_v0, %v7722_v63  ;;  %v7735_v5 = vld [vmem:[#allocation2 + $0xe8] sm:$0xff]  ;;  %v7737_v6 = vld [vmem:[#allocation2 + $0xf8] sm:$0xff]  ;;  %v412_v7 = vpack.c.bf16 %v7733_v4, %v7730_v3  ;;  %v7743_v11 = vld [vmem:[#allocation2 + $0xe0] sm:$0xff] }
  0xed   :  { %v415_v8 = vpack.c.bf16 %v7737_v6, %v7735_v5  ;;  %v7746_v12 = vld [vmem:[#allocation2 + $0xf0] sm:$0xff]  ;;  %v7748_v13 = vld [vmem:[#allocation2 + $0x108] sm:$0xff] }
  0xef   :  { %2088 = vmatpush1.bf16.msra.mxu0 %v6705_v14  ;;  %v7750_v14 = vld [vmem:[#allocation2 + $0x118] sm:$0xff] }
  0xf0   :  { %2089 = vmatprep.subr.bf16.mxu0 %v6706_v15  ;;  %v414_v15 = vpack.c.bf16 %v7746_v12, %v7743_v11 }
  0xf3   :  { %2090 = vmatpush1.bf16.msra.mxu0 %v6708_v16  ;;  %v417_v16 = vpack.c.bf16 %v7750_v14, %v7748_v13 }
  0xf4   :  { %2091 = vmatprep.subr.bf16.mxu0 %v6709_v17  ;;  %v6730_v17 = vld [vmem:[#allocation7 + $0x4] ss:$8 sps:$4 sm:$0xff]  }
  0xf5   :  { %1294 = vmatprep.subr.bf16.mxu1 %v6730_v17  ;;  %v6748_v17 = vld [vmem:[#allocation7 + $0x54] ss:$8 sps:$4 sm:$0xff]  }
  0xf7   :  { %2092 = vmatpush1.bf16.msra.mxu0 %v6711_v18  ;;  %v6732_v18 = vld [vmem:[#allocation7] ss:$8 sps:$4 sm:$0xff]  }
  0xf8   :  { %2093 = vmatprep.subr.bf16.mxu0 %v6712_v19  ;;  %v7757_v19 = vld [vmem:[#allocation2 + $0x100] sm:$0xff]  ;;  %1295 = vmatpush1.bf16.msra.mxu1 %v6732_v18  ;;  %v6750_v18 = vld [vmem:[#allocation7 + $0x50] ss:$8 sps:$4 sm:$0xff]  }
  0xfb   :  { %2094 = vmatpush1.bf16.msra.mxu0 %v6714_v20  ;;  %v7759_v20 = vld [vmem:[#allocation2 + $0x110] sm:$0xff] }
  0xfc   :  { %2095 = vmatprep.subr.bf16.mxu0 %v6715_v21  ;;  %v7761_v21 = vld [vmem:[#allocation2 + $0x128] sm:$0xff] }
  0xff   :  { %2096 = vmatpush1.bf16.msra.mxu0 %v6717_v22  ;;  %v7763_v22 = vld [vmem:[#allocation2 + $0x138] sm:$0xff] }
 0x100   :  { %3106 = vmatprep.subr.bf16.mxu0 %v6720_v25  ;;  %v416_v25 = vpack.c.bf16 %v7759_v20, %v7757_v19 }
 0x102   :  { %2110 = vmatmul.mubr.bf16.vlgmr.msra.gmra.mrb[0].mxu0 %v400_v28  ;;  %v419_v28 = vpack.c.bf16 %v7763_v22, %v7761_v21 }
 0x103   :  { %3107 = vmatpush1.bf16.msra.mxu0 %v6718_v29  ;;  %5771 = vmatprep.mubr.msk.bf16.mxu0 %vm1143_vm0, %v403_v30  ;;  %v6733_v29 = vld [vmem:[#allocation7 + $0x14] ss:$8 sps:$4 sm:$0xff]   ;;  %v6735_v30 = vld [vmem:[#allocation7 + $0x10] ss:$8 sps:$4 sm:$0xff]  }
 0x104   :  { %3108 = vmatprep.subr.bf16.mxu0 %v6723_v31  ;;  %v6736_v31 = vld [vmem:[#allocation7 + $0x24] ss:$8 sps:$4 sm:$0xff]   ;;  %1296 = vmatprep.subr.bf16.mxu1 %v6733_v29  ;;  %v7798_v29 = vld [vmem:[#allocation2 + $0x170] sm:$0xff] }
 0x105   :  { %1297 = vmatpush1.bf16.msra.mxu1 %v6735_v30  ;;  %v7800_v30 = vld [vmem:[#allocation2 + $0x188] sm:$0xff] }
 0x106   :  { %1298 = vmatprep.subr.bf16.mxu1 %v6736_v31  ;;  %v7802_v31 = vld [vmem:[#allocation2 + $0x198] sm:$0xff] }
 0x107   :  { %3109 = vmatpush1.bf16.msra.mxu0 %v6721_v36  ;;  %v7770_v36 = vld [vmem:[#allocation2 + $0x120] sm:$0xff]  ;;  %9912 = vst [vmem:[#allocation33_spill] sm:$0xff] %v7802_v31 }
 0x108   :  { %3110 = vmatprep.subr.bf16.mxu0 %v6726_v37  ;;  %v7772_v37 = vld [vmem:[#allocation2 + $0x130] sm:$0xff] }
 0x10a   :  { %2120 = vmatmul.mubr.bf16.gmra.mrb[4].mxu0 %v402_v39  ;;  %v7776_v39 = vld [vmem:[#allocation2 + $0x158] sm:$0xff] }
 0x10b   :  { %5772 = vmatprep.mubr.msk.bf16.mxu0 %vm1143_vm0, %v405_v40  ;;  %3111 = vmatpush1.bf16.msra.mxu0 %v6724_v38  ;;  %v7774_v38 = vld [vmem:[#allocation2 + $0x148] sm:$0xff] }
 0x10c   :  { %3112 = vmatprep.subr.bf16.mxu0 %v6729_v48  ;;  %v6738_v40 = vld [vmem:[#allocation7 + $0x20] ss:$8 sps:$4 sm:$0xff]   ;;  %v6739_v48 = vld [vmem:[#allocation10 + $0x40] ss:$8 sps:$4 sm:$0xff]  }
 0x10d   :  { %1299 = vmatpush1.bf16.msra.mxu1 %v6738_v40  ;;  %v6753_v40 = vld [vmem:[#allocation7 + $0x60] ss:$8 sps:$4 sm:$0xff]  }
 0x10f   :  { %3113 = vmatpush1.bf16.msra.mxu0 %v6727_v47  ;;  %v7782_v47 = vld [vmem:[#allocation2 + $0x140] sm:$0xff] }
 0x112   :  { %2130 = vmatmul.mubr.bf16.gmra.mrb[8].mxu0 %v404_v45  ;;  %v418_v45 = vpack.c.bf16 %v7772_v37, %v7770_v36 }
 0x113   :  { %5773 = vmatprep.mubr.msk.bf16.mxu0 %vm1143_vm0, %v407_v46  ;;  %v421_v46 = vpack.c.bf16 %v7776_v39, %v7774_v38 }
 0x11a   :  { %2140 = vmatmul.mubr.bf16.gmra.mrb[12].mxu0 %v406_v53  ;;  %v6741_v53 = vld [vmem:[#allocation10 + $0x44] ss:$8 sps:$4 sm:$0xff]  }
 0x11b   :  { %5774 = vmatprep.mubr.msk.bf16.mxu0 %vm1143_vm0, %v409_v54  ;;  %v6742_v54 = vld [vmem:[#allocation7 + $0x34] ss:$8 sps:$4 sm:$0xff]   ;;  %3114 = vmatprep.subr.bf16.mxu0 %v6741_v53 }
 0x11c   :  { %1300 = vmatprep.subr.bf16.mxu1 %v6742_v54  ;;  %3115 = vmatpush1.bf16.msra.mxu0 %v6739_v48  ;;  %v425_v48 = vpack.c.bf16 %v7802_v31, %v7800_v30  ;;  %v6754_v53 = vld [vmem:[#allocation7 + $0x74] ss:$8 sps:$4 sm:$0xff]   ;;  %v6756_v54 = vld [vmem:[#allocation7 + $0x70] ss:$8 sps:$4 sm:$0xff]  }
 0x122   :  { %2150 = vmatmul.mubr.bf16.gmra.mrb[16].mxu0 %v408_v59  ;;  %v7785_v59 = vld [vmem:[#allocation2 + $0x150] sm:$0xff] }
 0x123   :  { %5775 = vmatprep.mubr.msk.bf16.mxu0 %vm1143_vm0, %v411_v60  ;;  %v6744_v60 = vld [vmem:[#allocation7 + $0x30] ss:$8 sps:$4 sm:$0xff]  }
 0x124   :  { %1301 = vmatpush1.bf16.msra.mxu1 %v6744_v60  ;;  %v6757_v60 = vld [vmem:[#allocation7 + $0x84] ss:$8 sps:$4 sm:$0xff]  }
 0x12a   :  { %2160 = vmatmul.mubr.bf16.gmra.mrb[20].mxu0 %v410_v1  ;;  %v6745_v1 = vld [vmem:[#allocation7 + $0x44] ss:$8 sps:$4 sm:$0xff]  }
 0x12b   :  { %5776 = vmatprep.mubr.msk.bf16.mxu0 %vm1143_vm0, %v413_v2  ;;  %v7787_v2 = vld [vmem:[#allocation2 + $0x168] sm:$0xff]  ;;  %1302 = vmatprep.subr.bf16.mxu1 %v6745_v1 }
 0x132   :  { %2170 = vmatmul.mubr.bf16.gmra.mrb[24].mxu0 %v412_v7  ;;  %v7789_v7 = vld [vmem:[#allocation2 + $0x178] sm:$0xff] }
 0x133   :  { %5777 = vmatprep.mubr.msk.bf16.mxu0 %vm1143_vm0, %v415_v8  ;;  %v6747_v8 = vld [vmem:[#allocation7 + $0x40] ss:$8 sps:$4 sm:$0xff]  }
 0x134   :  { %1303 = vmatpush1.bf16.msra.mxu1 %v6747_v8  ;;  %v7811_v8 = vld [vmem:[#allocation2 + $0x180] sm:$0xff] }
 0x135   :  { %1304 = vmatprep.subr.bf16.mxu1 %v6748_v17  ;;  %v7817_v17 = vld [vmem:[#allocation2 + $0x1b8] sm:$0xff] }
 0x136   :  { %9915 = vst [vmem:[#allocation36_spill] sm:$0xff] %v7817_v17 }
 0x138   :  { %1305 = vmatpush1.bf16.msra.mxu1 %v6750_v18  ;;  %v505_v18 = vrot.slane %v7657_v26, 1 }
 0x13a   :  { %2180 = vmatmul.mubr.bf16.gmra.mrb[28].mxu0 %v414_v15  ;;  %v420_v15 = vpack.c.bf16 %v7785_v59, %v7782_v47 }
 0x13b   :  { %5778 = vmatprep.mubr.msk.bf16.mxu0 %vm1143_vm0, %v417_v16  ;;  %v423_v16 = vpack.c.bf16 %v7789_v7, %v7787_v2 }
 0x142   :  { %2190 = vmatmul.mubr.bf16.gmra.mrb[32].mxu0 %v416_v25  ;;  %v6751_v25 = vld [vmem:[#allocation7 + $0x64] ss:$8 sps:$4 sm:$0xff]  }
 0x143   :  { %5779 = vmatprep.mubr.msk.bf16.mxu0 %vm1143_vm0, %v419_v28  ;;  %v7796_v28 = vld [vmem:[#allocation2 + $0x160] sm:$0xff]  ;;  %1306 = vmatprep.subr.bf16.mxu1 %v6751_v25  ;;  %v503_v25 = vrot.slane %v7648_v10, 1  ;;  %v6760_v10 = vld [vmem:[#allocation7 + $0x94] ss:$8 sps:$4 sm:$0xff]  }
 0x144   :  { %1307 = vmatpush1.bf16.msra.mxu1 %v6753_v40  ;;  %v6759_v40 = vld [vmem:[#allocation7 + $0x80] ss:$8 sps:$4 sm:$0xff]  }
 0x145   :  { %1308 = vmatprep.subr.bf16.mxu1 %v6754_v53 }
 0x148   :  { %1309 = vmatpush1.bf16.msra.mxu1 %v6756_v54  ;;  %v6762_v54 = vld [vmem:[#allocation7 + $0x90] ss:$8 sps:$4 sm:$0xff]  }
 0x149   :  { %1310 = vmatprep.subr.bf16.mxu1 %v6757_v60  ;;  %v9917_v60 = vrot.slane %v7653_v23, 1  ;;  %v507_v23 = vrot.slane %v7659_v27, 1 }
 0x14a   :  { %2200 = vmatmul.mubr.bf16.gmra.mrb[36].mxu0 %v418_v45  ;;  %v422_v45 = vpack.c.bf16 %v7798_v29, %v7796_v28 }
 0x14b   :  { %5780 = vmatprep.mubr.msk.bf16.mxu0 %vm1143_vm0, %v421_v46  ;;  %v700_v46 = vlaneseq }
 0x14c   :  { %1311 = vmatpush1.bf16.msra.mxu1 %v6759_v40  ;;  %v7843_v40 = vld [vmem:[#allocation2 + $0x1b0] sm:$0xff] }
 0x14d   :  { %v7808_v1 = vshrl.u32 %v700_v46, 7  ;;  %v502_v46 = vrot.slane %v7655_v24, 1  ;;  %1312 = vmatprep.subr.bf16.mxu1 %v6760_v10  ;;  %v7871_v10 = vld [vmem:[#allocation2 + $0x1d0] sm:$0xff] }
 0x14f   :  { %vm702_vm1 = vcmp.lt.s32.totalorder %v7808_v1, 7  ;;  %v6808_v1 = vld [vmem:[#allocation13 + $0x38] sm:$0xff]  }
 0x150   :  { %1313 = vmatpush1.bf16.msra.mxu1 %v6762_v54 }
 0x152   :  { %2210 = vmatmul.mubr.bf16.gmra.mrb[40].mxu0 %v420_v15  ;;  %v7813_v15 = vld [vmem:[#allocation2 + $0x190] sm:$0xff] }
 0x153   :  { %5781 = vmatprep.mubr.msk.bf16.mxu0 %vm1143_vm0, %v423_v16  ;;  %9913 = vst [vmem:[#allocation34_spill] sm:$0xff] %v7813_v15  ;;  %v7815_v16 = vld [vmem:[#allocation2 + $0x1a8] sm:$0xff]  ;;  %v424_v31 = vpack.c.bf16 %v7813_v15, %v7811_v8  ;;  %v899_v15 = vsel %vm702_vm1, %v9917_v60, %v502_v46  ;;  %v508_v60 = vrot.slane %v7678_v41, 1 }
 0x154   :  { %9914 = vst [vmem:[#allocation35_spill] sm:$0xff] %v7815_v16  ;;  %v427_v53 = vpack.c.bf16 %v7817_v17, %v7815_v16  ;;  %v7845_v17 = vld [vmem:[#allocation2 + $0x1c8] sm:$0xff] }
 0x15a   :  { %2220 = vmatmul.mubr.bf16.gmra.mrb[44].mxu0 %v422_v45  ;;  %v9916_v45 = vrot.slane %v7646_v9, 1  ;;  %v7847_v9 = vld [vmem:[#allocation2 + $0x1d8] sm:$0xff] }
 0x15b   :  { %5782 = vmatprep.mubr.msk.bf16.mxu0 %vm1143_vm0, %v425_v48  ;;  %v504_v48 = vrot.slane %v7665_v32, 1 }
 0x15c   :  { %v900_v24 = vsel %vm702_vm1, %v9916_v45, %v503_v25  ;;  %v898_v45 = vsel %vm702_vm1, %v503_v25, %v505_v18  ;;  %v7869_v25 = vld [vmem:[#allocation2 + $0x1c0] sm:$0xff] }
 0x15d   :  { %v897_v32 = vsel %vm702_vm1, %v502_v46, %v504_v48  ;;  %v904_v16 = vpack.c.bf16 %v898_v45, %v900_v24  ;;  %v506_v46 = vrot.slane %v7667_v33, 1  ;;  %v896_v33 = vsel %vm702_vm1, %v505_v18, %v507_v23  ;;  %v7873_v24 = vld [vmem:[#allocation2 + $0x1e8] sm:$0xff] }
 0x15e   :  { %v903_v26 = vpack.c.bf16 %v897_v32, %v899_v15  ;;  %v429_v32 = vpack.c.bf16 %v7847_v9, %v7845_v17  ;;  %v510_v18 = vrot.slane %v7680_v42, 1  ;;  %v512_v45 = vrot.slane %v7692_v49, 1  ;;  %v7895_v49 = vld [vmem:[#allocation2 + $0x1e0] sm:$0xff] }
 0x15f   :  { %5700 = vmatprep.mubr.msk.bf16.mxu1 %vm1143_vm0, %v904_v16  ;;  %v895_v41 = vsel %vm702_vm1, %v504_v48, %v506_v46  ;;  %v513_v48 = vrot.slane %v7683_v43, 1 }
 0x160   :  { %1327 = vmatmul.mubr.bf16.vlgmr.msra.gmra.mrb[0].mxu1 %v903_v26  ;;  %v7875_v26 = vld [vmem:[#allocation2 + $0x1f8] sm:$0xff]  ;;  %v889_v42 = vsel %vm702_vm1, %v510_v18, %v512_v45  ;;  %v891_v43 = vsel %vm702_vm1, %v508_v60, %v510_v18 }
 0x162   :  { %2230 = vmatmul.mubr.bf16.gmra.mrb[48].mxu0 %v424_v31  ;;  %v7841_v31 = vld [vmem:[#allocation2 + $0x1a0] sm:$0xff] }
 0x163   :  { %5783 = vmatprep.mubr.msk.bf16.mxu0 %vm1143_vm0, %v427_v53  ;;  %v509_v53 = vrot.slane %v7669_v34, 1  ;;  %v426_v15 = vpack.c.bf16 %v7843_v40, %v7841_v31  ;;  %v893_v34 = vsel %vm702_vm1, %v506_v46, %v508_v60  ;;  %v428_v46 = vpack.c.bf16 %v7871_v10, %v7869_v25 }
 0x164   :  { %v905_v54 = vpack.c.bf16 %v893_v34, %v895_v41  ;;  %v907_v34 = vpack.c.bf16 %v889_v42, %v891_v43  ;;  %v7899_v41 = vld [vmem:[#allocation2 + $0x208] sm:$0xff]  ;;  %v517_v60 = vrot.slane %v7696_v51, 1  ;;  %v7923_v42 = vld [vmem:[#allocation2 + $0x210] sm:$0xff] }
 0x165   :  { %v894_v27 = vsel %vm702_vm1, %v507_v23, %v509_v53  ;;  %v511_v23 = vrot.slane %v7671_v35, 1 }
 0x166   :  { %v906_v16 = vpack.c.bf16 %v894_v27, %v896_v33  ;;  %v7897_v27 = vld [vmem:[#allocation2 + $0x1f0] sm:$0xff] }
 0x167   :  { %v892_v35 = vsel %vm702_vm1, %v509_v53, %v511_v23  ;;  %v515_v53 = vrot.slane %v7685_v44, 1  ;;  %v430_v18 = vpack.c.bf16 %v7897_v27, %v7895_v49 }
 0x168   :  { %5701 = vmatprep.mubr.msk.bf16.mxu1 %vm1143_vm0, %v906_v16  ;;  %v7901_v16 = vld [vmem:[#allocation2 + $0x218] sm:$0xff] }
 0x169   :  { %1337 = vmatmul.mubr.bf16.gmra.mrb[4].mxu1 %v905_v54  ;;  %v514_v54 = vrot.slane %v7694_v50, 1  ;;  %v886_v44 = vsel %vm702_vm1, %v515_v53, %v517_v60  ;;  %v888_v50 = vsel %vm702_vm1, %v513_v48, %v515_v53  ;;  %v521_v53 = vrot.slane %v7709_v57, 1 }
 0x16a   :  { %2240 = vmatmul.mubr.bf16.gmra.mrb[52].mxu0 %v426_v15  ;;  %v431_v15 = vpack.c.bf16 %v7875_v26, %v7873_v24  ;;  %v910_v43 = vpack.c.bf16 %v886_v44, %v888_v50 }
 0x16b   :  { %5784 = vmatprep.mubr.msk.bf16.mxu0 %vm1143_vm0, %v429_v32  ;;  %v890_v32 = vsel %vm702_vm1, %v511_v23, %v513_v48  ;;  %v516_v23 = vrot.slane %v7704_v55, 1  ;;  %v887_v55 = vsel %vm702_vm1, %v512_v45, %v514_v54  ;;  %v519_v48 = vrot.slane %v7698_v52, 1 }
 0x16c   :  { %v908_v33 = vpack.c.bf16 %v890_v32, %v892_v35  ;;  %v6765_v32 = vld [vmem:[#allocation10 + $0x54] ss:$8 sps:$4 sm:$0xff]   ;;  %v518_v45 = vrot.slane %v7707_v56, 1 }
 0x16d   :  { %v885_v51 = vsel %vm702_vm1, %v514_v54, %v516_v23  ;;  %v7921_v35 = vld [vmem:[#allocation2 + $0x200] sm:$0xff]  ;;  %3116 = vmatprep.subr.bf16.mxu0 %v6765_v32  ;;  %v520_v54 = vrot.slane %v7717_v61, 1  ;;  %v882_v52 = vsel %vm702_vm1, %v519_v48, %v521_v53  ;;  %v7949_v32 = vld [vmem:[#allocation2 + $0x230] sm:$0xff] }
 0x16e   :  { %5702 = vmatprep.mubr.msk.bf16.mxu1 %vm1143_vm0, %v908_v33  ;;  %v909_v33 = vpack.c.bf16 %v885_v51, %v887_v55  ;;  %v883_v57 = vsel %vm702_vm1, %v516_v23, %v518_v45  ;;  %v7947_v61 = vld [vmem:[#allocation2 + $0x220] sm:$0xff]  ;;  %v7951_v55 = vld [vmem:[#allocation2 + $0x248] sm:$0xff]  ;;  %v525_v23 = vrot.slane %v7722_v63, 1 }
 0x16f   :  { %v881_v56 = vsel %vm702_vm1, %v518_v45, %v520_v54  ;;  %v434_v45 = vpack.c.bf16 %v7949_v32, %v7947_v61 }
 0x170   :  { %v911_v51 = vpack.c.bf16 %v881_v56, %v883_v57  ;;  %v7977_v57 = vld [vmem:[#allocation2 + $0x268] sm:$0xff] }
 0x171   :  { %1347 = vmatmul.mubr.bf16.gmra.mrb[8].mxu1 %v907_v34  ;;  %v7925_v34 = vld [vmem:[#allocation2 + $0x228] sm:$0xff] }
 0x172   :  { %2250 = vmatmul.mubr.bf16.gmra.mrb[56].mxu0 %v428_v46  ;;  %v433_v46 = vpack.c.bf16 %v7901_v16, %v7899_v41  ;;  %5703 = vmatprep.mubr.msk.bf16.mxu1 %vm1143_vm0, %v910_v43  ;;  %v7953_v43 = vld [vmem:[#allocation2 + $0x258] sm:$0xff] }
 0x173   :  { %5785 = vmatprep.mubr.msk.bf16.mxu0 %vm1143_vm0, %v431_v15  ;;  %v6763_v15 = vld [vmem:[#allocation10 + $0x50] ss:$8 sps:$4 sm:$0xff]  }
 0x174   :  { %3117 = vmatpush1.bf16.msra.mxu0 %v6763_v15  ;;  %v884_v15 = vsel %vm702_vm1, %v517_v60, %v519_v48  ;;  %v523_v60 = vrot.slane %v7711_v58, 1  ;;  %v524_v48 = vrot.slane %v7730_v3, 1  ;;  %v7973_v3 = vld [vmem:[#allocation2 + $0x240] sm:$0xff] }
 0x175   :  { %v912_v50 = vpack.c.bf16 %v882_v52, %v884_v15  ;;  %v7975_v52 = vld [vmem:[#allocation2 + $0x250] sm:$0xff] }
 0x176   :  { %v880_v58 = vsel %vm702_vm1, %v521_v53, %v523_v60  ;;  %v527_v53 = vrot.slane %v7724_v0, 1 }
 0x178   :  { %v876_v0 = vsel %vm702_vm1, %v525_v23, %v527_v53 }
 0x179   :  { %1357 = vmatmul.mubr.bf16.gmra.mrb[12].mxu1 %v909_v33  ;;  %v522_v33 = vrot.slane %v7720_v62, 1 }
 0x17a   :  { %2260 = vmatmul.mubr.bf16.gmra.mrb[60].mxu0 %v430_v18  ;;  %v7927_v18 = vld [vmem:[#allocation2 + $0x238] sm:$0xff]  ;;  %5704 = vmatprep.mubr.msk.bf16.mxu1 %vm1143_vm0, %v912_v50 }
 0x17b   :  { %5786 = vmatprep.mubr.msk.bf16.mxu0 %vm1143_vm0, %v433_v46  ;;  %v432_v46 = vpack.c.bf16 %v7923_v42, %v7921_v35  ;;  %v435_v44 = vpack.c.bf16 %v7927_v18, %v7925_v34  ;;  %v877_v62 = vsel %vm702_vm1, %v522_v33, %v524_v48  ;;  %v879_v63 = vsel %vm702_vm1, %v520_v54, %v522_v33  ;;  %v7979_v50 = vld [vmem:[#allocation2 + $0x278] sm:$0xff] }
 0x17c   :  { %v913_v56 = vpack.c.bf16 %v877_v62, %v879_v63  ;;  %v529_v54 = vrot.slane %v7735_v5, 1  ;;  %v436_v33 = vpack.c.bf16 %v7975_v52, %v7973_v3  ;;  %v8003_v63 = vld [vmem:[#allocation2 + $0x288] sm:$0xff] }
 0x181   :  { %1367 = vmatmul.mubr.bf16.gmra.mrb[16].mxu1 %v911_v51  ;;  %v526_v51 = vrot.slane %v7733_v4, 1 }
 0x182   :  { %2270 = vmatmul.mubr.bf16.gmra.mrb[64].mxu0 %v432_v46  ;;  %v437_v46 = vpack.c.bf16 %v7953_v43, %v7951_v55 }
 0x183   :  { %5787 = vmatprep.mubr.msk.bf16.mxu0 %vm1143_vm0, %v435_v44  ;;  %v878_v44 = vsel %vm702_vm1, %v523_v60, %v525_v23  ;;  %v528_v60 = vrot.slane %v7743_v11, 1  ;;  %v875_v5 = vsel %vm702_vm1, %v524_v48, %v526_v51  ;;  %v7999_v11 = vld [vmem:[#allocation2 + $0x260] sm:$0xff]  ;;  %v531_v23 = vrot.slane %v7737_v6, 1 }
 0x184   :  { %v914_v15 = vpack.c.bf16 %v878_v44, %v880_v58  ;;  %v8001_v44 = vld [vmem:[#allocation2 + $0x270] sm:$0xff]  ;;  %v533_v48 = vrot.slane %v7748_v13, 1 }
 0x185   :  { %v873_v4 = vsel %vm702_vm1, %v526_v51, %v528_v60  ;;  %v438_v51 = vpack.c.bf16 %v8001_v44, %v7999_v11  ;;  %v872_v6 = vsel %vm702_vm1, %v529_v54, %v531_v23 }
 0x186   :  { %5705 = vmatprep.mubr.msk.bf16.mxu1 %vm1143_vm0, %v914_v15  ;;  %v915_v62 = vpack.c.bf16 %v873_v4, %v875_v5  ;;  %v8005_v15 = vld [vmem:[#allocation2 + $0x298] sm:$0xff]  ;;  %v8029_v5 = vld [vmem:[#allocation2 + $0x2a8] sm:$0xff] }
 0x189   :  { %1377 = vmatmul.mubr.bf16.gmra.mrb[20].mxu1 %v913_v56  ;;  %v530_v56 = vrot.slane %v7746_v12, 1 }
 0x18a   :  { %2280 = vmatmul.mubr.bf16.gmra.mrb[68].mxu0 %v434_v45  ;;  %v439_v45 = vpack.c.bf16 %v7979_v50, %v7977_v57 }
 0x18b   :  { %5788 = vmatprep.mubr.msk.bf16.mxu0 %vm1143_vm0, %v437_v46  ;;  %v874_v46 = vsel %vm702_vm1, %v527_v53, %v529_v54  ;;  %v532_v53 = vrot.slane %v7757_v19, 1  ;;  %v871_v13 = vsel %vm702_vm1, %v528_v60, %v530_v56  ;;  %v8025_v19 = vld [vmem:[#allocation2 + $0x280] sm:$0xff]  ;;  %v535_v54 = vrot.slane %v7750_v14, 1 }
 0x18c   :  { %v916_v58 = vpack.c.bf16 %v874_v46, %v876_v0  ;;  %v8027_v46 = vld [vmem:[#allocation2 + $0x290] sm:$0xff]  ;;  %v537_v60 = vrot.slane %v7761_v21, 1 }
 0x18d   :  { %v869_v12 = vsel %vm702_vm1, %v530_v56, %v532_v53  ;;  %v440_v56 = vpack.c.bf16 %v8027_v46, %v8025_v19  ;;  %v868_v14 = vsel %vm702_vm1, %v533_v48, %v535_v54 }
 0x18e   :  { %5706 = vmatprep.mubr.msk.bf16.mxu1 %vm1143_vm0, %v916_v58  ;;  %v917_v4 = vpack.c.bf16 %v869_v12, %v871_v13  ;;  %v8031_v58 = vld [vmem:[#allocation2 + $0x2b8] sm:$0xff]  ;;  %v8055_v13 = vld [vmem:[#allocation2 + $0x2c8] sm:$0xff] }
 0x191   :  { %1387 = vmatmul.mubr.bf16.gmra.mrb[24].mxu1 %v915_v62  ;;  %v534_v62 = vrot.slane %v7759_v20, 1 }
 0x192   :  { %2290 = vmatmul.mubr.bf16.gmra.mrb[72].mxu0 %v436_v33  ;;  %v441_v33 = vpack.c.bf16 %v8005_v15, %v8003_v63 }
 0x193   :  { %5789 = vmatprep.mubr.msk.bf16.mxu0 %vm1143_vm0, %v439_v45  ;;  %v870_v45 = vsel %vm702_vm1, %v531_v23, %v533_v48  ;;  %v536_v23 = vrot.slane %v7770_v36, 1  ;;  %v867_v21 = vsel %vm702_vm1, %v532_v53, %v534_v62  ;;  %v8051_v36 = vld [vmem:[#allocation2 + $0x2a0] sm:$0xff]  ;;  %v539_v48 = vrot.slane %v7763_v22, 1 }
 0x194   :  { %v918_v0 = vpack.c.bf16 %v870_v45, %v872_v6  ;;  %v8053_v45 = vld [vmem:[#allocation2 + $0x2b0] sm:$0xff]  ;;  %v541_v53 = vrot.slane %v7774_v38, 1 }
 0x195   :  { %v865_v20 = vsel %vm702_vm1, %v534_v62, %v536_v23  ;;  %v442_v62 = vpack.c.bf16 %v8053_v45, %v8051_v36 }
 0x196   :  { %5707 = vmatprep.mubr.msk.bf16.mxu1 %vm1143_vm0, %v918_v0  ;;  %v919_v12 = vpack.c.bf16 %v865_v20, %v867_v21  ;;  %v8057_v0 = vld [vmem:[#allocation2 + $0x2d8] sm:$0xff]  ;;  %v862_v22 = vsel %vm702_vm1, %v539_v48, %v541_v53  ;;  %v8079_v20 = vld [vmem:[#allocation2 + $0x2d0] sm:$0xff] }
 0x199   :  { %1397 = vmatmul.mubr.bf16.gmra.mrb[28].mxu1 %v917_v4  ;;  %v538_v4 = vrot.slane %v7772_v37, 1  ;;  %v864_v37 = vsel %vm702_vm1, %v537_v60, %v539_v48  ;;  %v545_v48 = vrot.slane %v7787_v2, 1 }
 0x19a   :  { %2300 = vmatmul.mubr.bf16.gmra.mrb[76].mxu0 %v438_v51  ;;  %v443_v51 = vpack.c.bf16 %v8031_v58, %v8029_v5  ;;  %v922_v21 = vpack.c.bf16 %v862_v22, %v864_v37 }
 0x19b   :  { %5790 = vmatprep.mubr.msk.bf16.mxu0 %vm1143_vm0, %v441_v33  ;;  %v866_v33 = vsel %vm702_vm1, %v535_v54, %v537_v60  ;;  %v540_v54 = vrot.slane %v7782_v47, 1  ;;  %v863_v47 = vsel %vm702_vm1, %v536_v23, %v538_v4  ;;  %v543_v60 = vrot.slane %v7776_v39, 1 }
 0x19c   :  { %v920_v6 = vpack.c.bf16 %v866_v33, %v868_v14  ;;  %v6768_v33 = vld [vmem:[#allocation10 + $0x64] ss:$8 sps:$4 sm:$0xff]   ;;  %v8077_v14 = vld [vmem:[#allocation2 + $0x2c0] sm:$0xff]  ;;  %v542_v23 = vrot.slane %v7785_v59, 1 }
 0x19d   :  { %v861_v38 = vsel %vm702_vm1, %v538_v4, %v540_v54  ;;  %3118 = vmatprep.subr.bf16.mxu0 %v6768_v33  ;;  %v544_v4 = vrot.slane %v7796_v28, 1  ;;  %v858_v39 = vsel %vm702_vm1, %v543_v60, %v545_v48  ;;  %v8103_v28 = vld [vmem:[#allocation2 + $0x2e0] sm:$0xff]  ;;  %v8105_v33 = vld [vmem:[#allocation2 + $0x2f0] sm:$0xff] }
 0x19e   :  { %5708 = vmatprep.mubr.msk.bf16.mxu1 %vm1143_vm0, %v920_v6  ;;  %v921_v6 = vpack.c.bf16 %v861_v38, %v863_v47  ;;  %v859_v2 = vsel %vm702_vm1, %v540_v54, %v542_v23  ;;  %v8107_v47 = vld [vmem:[#allocation2 + $0x308] sm:$0xff]  ;;  %v549_v54 = vrot.slane %v7800_v30, 1 }
 0x19f   :  { %v857_v59 = vsel %vm702_vm1, %v542_v23, %v544_v4  ;;  %v446_v23 = vpack.c.bf16 %v8105_v33, %v8103_v28 }
 0x1a0   :  { %v923_v38 = vpack.c.bf16 %v857_v59, %v859_v2  ;;  %v8133_v2 = vld [vmem:[#allocation2 + $0x328] sm:$0xff] }
 0x1a1   :  { %1407 = vmatmul.mubr.bf16.gmra.mrb[32].mxu1 %v919_v12  ;;  %v8081_v12 = vld [vmem:[#allocation2 + $0x2e8] sm:$0xff] }
 0x1a2   :  { %2310 = vmatmul.mubr.bf16.gmra.mrb[80].mxu0 %v440_v56  ;;  %v445_v56 = vpack.c.bf16 %v8057_v0, %v8055_v13  ;;  %5709 = vmatprep.mubr.msk.bf16.mxu1 %vm1143_vm0, %v922_v21  ;;  %v8109_v21 = vld [vmem:[#allocation2 + $0x318] sm:$0xff] }
 0x1a3   :  { %5791 = vmatprep.mubr.msk.bf16.mxu0 %vm1143_vm0, %v443_v51  ;;  %v6766_v51 = vld [vmem:[#allocation10 + $0x60] ss:$8 sps:$4 sm:$0xff]   ;;  %9918 = vst [vmem:[#allocation37_spill] sm:$0xff] %v8109_v21 }
 0x1a4   :  { %3119 = vmatpush1.bf16.msra.mxu0 %v6766_v51  ;;  %v860_v51 = vsel %vm702_vm1, %v541_v53, %v543_v60  ;;  %v547_v53 = vrot.slane %v7789_v7, 1  ;;  %v548_v60 = vrot.slane %v7811_v8, 1  ;;  %v8129_v8 = vld [vmem:[#allocation2 + $0x300] sm:$0xff] }
 0x1a5   :  { %v924_v37 = vpack.c.bf16 %v858_v39, %v860_v51  ;;  %v8131_v39 = vld [vmem:[#allocation2 + $0x310] sm:$0xff] }
 0x1a6   :  { %v856_v7 = vsel %vm702_vm1, %v545_v48, %v547_v53 }
 0x1a9   :  { %1417 = vmatmul.mubr.bf16.gmra.mrb[36].mxu1 %v921_v6  ;;  %v546_v6 = vrot.slane %v7798_v29, 1 }
 0x1aa   :  { %2320 = vmatmul.mubr.bf16.gmra.mrb[84].mxu0 %v442_v62  ;;  %v8083_v62 = vld [vmem:[#allocation2 + $0x2f8] sm:$0xff]  ;;  %5710 = vmatprep.mubr.msk.bf16.mxu1 %vm1143_vm0, %v924_v37 }
 0x1ab   :  { %5792 = vmatprep.mubr.msk.bf16.mxu0 %vm1143_vm0, %v445_v56  ;;  %v444_v56 = vpack.c.bf16 %v8079_v20, %v8077_v14  ;;  %v447_v22 = vpack.c.bf16 %v8083_v62, %v8081_v12  ;;  %v853_v29 = vsel %vm702_vm1, %v546_v6, %v548_v60  ;;  %v855_v30 = vsel %vm702_vm1, %v544_v4, %v546_v6  ;;  %v8135_v37 = vld [vmem:[#allocation2 + $0x338] sm:$0xff] }
 0x1ac   :  { %v925_v59 = vpack.c.bf16 %v853_v29, %v855_v30  ;;  %9919 = vst [vmem:[#allocation38_spill] sm:$0xff] %v8135_v37  ;;  %v552_v6 = vrot.slane %v7841_v31, 1 }
 0x1b1   :  { %1427 = vmatmul.mubr.bf16.gmra.mrb[40].mxu1 %v923_v38  ;;  %v9920_v38 = vld [vmem:[#allocation33_spill] sm:$0xff] }
 0x1b2   :  { %2330 = vmatmul.mubr.bf16.gmra.mrb[88].mxu0 %v444_v56  ;;  %v449_v56 = vpack.c.bf16 %v8109_v21, %v8107_v47  ;;  %v551_v48 = vrot.slane %v9920_v38, 1  ;;  %v9922_v21 = vld [vmem:[#allocation35_spill] sm:$0xff] }
 0x1b3   :  { %5793 = vmatprep.mubr.msk.bf16.mxu0 %vm1143_vm0, %v447_v22  ;;  %v854_v22 = vsel %vm702_vm1, %v547_v53, %v549_v54  ;;  %v9921_v53 = vld [vmem:[#allocation34_spill] sm:$0xff]  ;;  %v553_v4 = vrot.slane %v9922_v21, 1  ;;  %v8155_v21 = vld [vmem:[#allocation2 + $0x320] sm:$0xff] }
 0x1b4   :  { %v926_v51 = vpack.c.bf16 %v854_v22, %v856_v7  ;;  %v451_v22 = vpack.c.bf16 %v8135_v37, %v8133_v2  ;;  %v852_v29 = vsel %vm702_vm1, %v549_v54, %v551_v48  ;;  %v9923_v37 = vld [vmem:[#allocation36_spill] sm:$0xff] }
 0x1b5   :  { %v850_v7 = vsel %vm702_vm1, %v551_v48, %v553_v4  ;;  %v555_v54 = vrot.slane %v9923_v37, 1  ;;  %v554_v48 = vrot.slane %v7843_v40, 1 }
 0x1b6   :  { %5711 = vmatprep.mubr.msk.bf16.mxu1 %vm1143_vm0, %v926_v51  ;;  %v8157_v51 = vld [vmem:[#allocation2 + $0x330] sm:$0xff] }
 0x1b7   :  { %v848_v37 = vsel %vm702_vm1, %v553_v4, %v555_v54  ;;  %v559_v4 = vrot.slane %v7847_v9, 1 }
 0x1b9   :  { %1437 = vmatmul.mubr.bf16.gmra.mrb[44].mxu1 %v925_v59  ;;  %v928_v59 = vpack.c.bf16 %v850_v7, %v852_v29 }
 0x1ba   :  { %2340 = vmatmul.mubr.bf16.gmra.mrb[92].mxu0 %v446_v23  ;;  %v550_v23 = vrot.slane %v9921_v53, 1  ;;  %v8159_v53 = vld [vmem:[#allocation2 + $0x348] sm:$0xff] }
 0x1bb   :  { %5794 = vmatprep.mubr.msk.bf16.mxu0 %vm1143_vm0, %v449_v56  ;;  %v448_v56 = vpack.c.bf16 %v8131_v39, %v8129_v8  ;;  %5712 = vmatprep.mubr.msk.bf16.mxu1 %vm1143_vm0, %v928_v59 }
 0x1bc   :  { %v849_v30 = vsel %vm702_vm1, %v550_v23, %v552_v6  ;;  %v851_v31 = vsel %vm702_vm1, %v548_v60, %v550_v23  ;;  %v557_v60 = vrot.slane %v7845_v17, 1  ;;  %v556_v23 = vrot.slane %v7869_v25, 1  ;;  %v8181_v25 = vld [vmem:[#allocation2 + $0x340] sm:$0xff] }
 0x1bd   :  { %v927_v38 = vpack.c.bf16 %v849_v30, %v851_v31  ;;  %v847_v17 = vsel %vm702_vm1, %v552_v6, %v554_v48  ;;  %v8183_v30 = vld [vmem:[#allocation2 + $0x350] sm:$0xff]  ;;  %v561_v6 = vrot.slane %v7873_v24, 1 }
 0x1be   :  { %v846_v29 = vsel %vm702_vm1, %v555_v54, %v557_v60  ;;  %v845_v40 = vsel %vm702_vm1, %v554_v48, %v556_v23  ;;  %v558_v54 = vrot.slane %v7871_v10, 1  ;;  %v560_v48 = vrot.slane %v7895_v49, 1  ;;  %v8207_v49 = vld [vmem:[#allocation2 + $0x360] sm:$0xff] }
 0x1bf   :  { %v930_v31 = vpack.c.bf16 %v846_v29, %v848_v37  ;;  %v929_v59 = vpack.c.bf16 %v845_v40, %v847_v17  ;;  %v842_v37 = vsel %vm702_vm1, %v559_v4, %v561_v6  ;;  %v844_v9 = vsel %vm702_vm1, %v557_v60, %v559_v4  ;;  %v8209_v40 = vld [vmem:[#allocation2 + $0x370] sm:$0xff] }
 0x1c0   :  { %v841_v10 = vsel %vm702_vm1, %v558_v54, %v560_v48  ;;  %v843_v24 = vsel %vm702_vm1, %v556_v23, %v558_v54  ;;  %v932_v17 = vpack.c.bf16 %v842_v37, %v844_v9  ;;  %v563_v60 = vrot.slane %v7875_v26, 1 }
 0x1c1   :  { %1447 = vmatmul.mubr.bf16.gmra.mrb[48].mxu1 %v927_v38  ;;  %v8185_v38 = vld [vmem:[#allocation2 + $0x368] sm:$0xff]  ;;  %v562_v4 = vrot.slane %v7897_v27, 1  ;;  %v565_v23 = vrot.slane %v7899_v41, 1  ;;  %v564_v54 = vrot.slane %v7921_v35, 1 }
 0x1c2   :  { %2350 = vmatmul.mubr.bf16.gmra.mrb[96].mxu0 %v448_v56  ;;  %v8161_v56 = vld [vmem:[#allocation2 + $0x358] sm:$0xff]  ;;  %5713 = vmatprep.mubr.msk.bf16.mxu1 %vm1143_vm0, %v930_v31  ;;  %v931_v31 = vpack.c.bf16 %v841_v10, %v843_v24  ;;  %v840_v26 = vsel %vm702_vm1, %v561_v6, %v563_v60  ;;  %v6769_v35 = vld [vmem:[#allocation10 + $0x70] ss:$8 sps:$4 sm:$0xff]   ;;  %v6771_v10 = vld [vmem:[#allocation10 + $0x74] ss:$8 sps:$4 sm:$0xff]   ;;  %v567_v6 = vrot.slane %v7901_v16, 1 }
 0x1c3   :  { %5795 = vmatprep.mubr.msk.bf16.mxu0 %vm1143_vm0, %v451_v22  ;;  %v450_v22 = vpack.c.bf16 %v8157_v51, %v8155_v21  ;;  %v453_v7 = vpack.c.bf16 %v8161_v56, %v8159_v53  ;;  %v838_v9 = vsel %vm702_vm1, %v563_v60, %v565_v23  ;;  %v837_v27 = vsel %vm702_vm1, %v562_v4, %v564_v54  ;;  %v8233_v24 = vld [vmem:[#allocation2 + $0x380] sm:$0xff] }
 0x1c4   :  { %v839_v41 = vsel %vm702_vm1, %v560_v48, %v562_v4  ;;  %3120 = vmatprep.subr.bf16.mxu0 %v6771_v10  ;;  %v566_v48 = vrot.slane %v7923_v42, 1  ;;  %v569_v60 = vrot.slane %v7925_v34, 1  ;;  %v568_v4 = vrot.slane %v7947_v61, 1  ;;  %v8259_v61 = vld [vmem:[#allocation2 + $0x3a0] sm:$0xff]  ;;  %v8263_v10 = vld [vmem:[#allocation2 + $0x3c8] sm:$0xff] }
 0x1c5   :  { %3121 = vmatpush1.bf16.msra.mxu0 %v6769_v35 }
 0x1c6   :  { %v834_v16 = vsel %vm702_vm1, %v567_v6, %v569_v60  ;;  %v833_v42 = vsel %vm702_vm1, %v566_v48, %v568_v4  ;;  %v835_v34 = vsel %vm702_vm1, %v564_v54, %v566_v48  ;;  %v573_v54 = vrot.slane %v7951_v55, 1 }
 0x1c7   :  { %v935_v35 = vpack.c.bf16 %v833_v42, %v835_v34  ;;  %v8289_v34 = vld [vmem:[#allocation2 + $0x3e8] sm:$0xff] }
 0x1c9   :  { %1457 = vmatmul.mubr.bf16.gmra.mrb[52].mxu1 %v929_v59  ;;  %v8211_v59 = vld [vmem:[#allocation2 + $0x388] sm:$0xff] }
 0x1ca   :  { %2360 = vmatmul.mubr.bf16.gmra.mrb[100].mxu0 %v450_v22  ;;  %v8187_v22 = vld [vmem:[#allocation2 + $0x378] sm:$0xff]  ;;  %9924 = vst [vmem:[#allocation33_spill] sm:$0xff] %v8211_v59  ;;  %5714 = vmatprep.mubr.msk.bf16.mxu1 %vm1143_vm0, %v932_v17  ;;  %v8235_v17 = vld [vmem:[#allocation2 + $0x390] sm:$0xff] }
 0x1cb   :  { %5796 = vmatprep.mubr.msk.bf16.mxu0 %vm1143_vm0, %v453_v7  ;;  %v452_v7 = vpack.c.bf16 %v8183_v30, %v8181_v25  ;;  %v455_v29 = vpack.c.bf16 %v8187_v22, %v8185_v38 }
 0x1d1   :  { %1467 = vmatmul.mubr.bf16.gmra.mrb[56].mxu1 %v931_v31  ;;  %v934_v31 = vpack.c.bf16 %v838_v9, %v840_v26  ;;  %v836_v26 = vsel %vm702_vm1, %v565_v23, %v567_v6  ;;  %v571_v23 = vrot.slane %v7927_v18, 1  ;;  %v572_v6 = vrot.slane %v7973_v3, 1  ;;  %v8285_v3 = vld [vmem:[#allocation2 + $0x3c0] sm:$0xff] }
 0x1d2   :  { %2370 = vmatmul.mubr.bf16.gmra.mrb[104].mxu0 %v452_v7  ;;  %v8213_v7 = vld [vmem:[#allocation2 + $0x398] sm:$0xff] }
 0x1d3   :  { %5797 = vmatprep.mubr.msk.bf16.mxu0 %vm1143_vm0, %v455_v29  ;;  %9925 = vst [vmem:[#allocation34_spill] sm:$0xff] %v8213_v7  ;;  %v454_v29 = vpack.c.bf16 %v8209_v40, %v8207_v49  ;;  %v457_v37 = vpack.c.bf16 %v8213_v7, %v8211_v59  ;;  %v8237_v7 = vld [vmem:[#allocation2 + $0x3a8] sm:$0xff]  ;;  %v8239_v59 = vld [vmem:[#allocation2 + $0x3b8] sm:$0xff]  ;;  %5715 = vmatprep.mubr.msk.bf16.mxu1 %vm1143_vm0, %v934_v31 }
 0x1d4   :  { %v459_v9 = vpack.c.bf16 %v8239_v59, %v8237_v7  ;;  %v8265_v31 = vld [vmem:[#allocation2 + $0x3d8] sm:$0xff]  ;;  %v832_v18 = vsel %vm702_vm1, %v569_v60, %v571_v23  ;;  %v575_v60 = vrot.slane %v7953_v43, 1 }
 0x1d6   :  { %v828_v43 = vsel %vm702_vm1, %v573_v54, %v575_v60 }
 0x1da   :  { %2380 = vmatmul.mubr.bf16.gmra.mrb[108].mxu0 %v454_v29  ;;  %v933_v29 = vpack.c.bf16 %v837_v27, %v839_v41  ;;  %v8261_v27 = vld [vmem:[#allocation2 + $0x3b0] sm:$0xff]  ;;  %v936_v41 = vpack.c.bf16 %v834_v16, %v836_v26 }
 0x1db   :  { %5798 = vmatprep.mubr.msk.bf16.mxu0 %vm1143_vm0, %v457_v37  ;;  %v456_v37 = vpack.c.bf16 %v8235_v17, %v8233_v24  ;;  %v458_v48 = vpack.c.bf16 %v8261_v27, %v8259_v61  ;;  %v8287_v16 = vld [vmem:[#allocation2 + $0x3d0] sm:$0xff] }
 0x1dc   :  { %1477 = vmatmul.mubr.bf16.gmra.mrb[60].mxu1 %v933_v29  ;;  %v570_v29 = vrot.slane %v7949_v32, 1 }
 0x1dd   :  { %5716 = vmatprep.mubr.msk.bf16.mxu1 %vm1143_vm0, %v936_v41  ;;  %v8291_v41 = vld [vmem:[#allocation2 + $0x3f8] sm:$0xff] }
 0x1de   :  { %v829_v32 = vsel %vm702_vm1, %v570_v29, %v572_v6  ;;  %v831_v55 = vsel %vm702_vm1, %v568_v4, %v570_v29  ;;  %v577_v4 = vrot.slane %v7977_v57, 1  ;;  %v460_v29 = vpack.c.bf16 %v8287_v16, %v8285_v3 }
 0x1df   :  { %v937_v42 = vpack.c.bf16 %v829_v32, %v831_v55  ;;  %v8315_v55 = vld [vmem:[#allocation2 + $0x408] sm:$0xff] }
 0x1e2   :  { %2390 = vmatmul.mubr.bf16.gmra.mrb[112].mxu0 %v456_v37  ;;  %v461_v37 = vpack.c.bf16 %v8265_v31, %v8263_v10 }
 0x1e3   :  { %5799 = vmatprep.mubr.msk.bf16.mxu0 %vm1143_vm0, %v459_v9  ;;  %v830_v9 = vsel %vm702_vm1, %v571_v23, %v573_v54  ;;  %v576_v23 = vrot.slane %v7999_v11, 1  ;;  %v8311_v11 = vld [vmem:[#allocation2 + $0x3e0] sm:$0xff]  ;;  %v579_v54 = vrot.slane %v7979_v50, 1 }
 0x1e4   :  { %1487 = vmatmul.mubr.bf16.gmra.mrb[64].mxu1 %v935_v35  ;;  %v938_v26 = vpack.c.bf16 %v830_v9, %v832_v18  ;;  %v574_v35 = vrot.slane %v7975_v52, 1  ;;  %v8313_v9 = vld [vmem:[#allocation2 + $0x3f0] sm:$0xff] }
 0x1e5   :  { %v824_v50 = vsel %vm702_vm1, %v577_v4, %v579_v54 }
 0x1e6   :  { %5717 = vmatprep.mubr.msk.bf16.mxu1 %vm1143_vm0, %v938_v26  ;;  %v825_v52 = vsel %vm702_vm1, %v574_v35, %v576_v23  ;;  %v827_v57 = vsel %vm702_vm1, %v572_v6, %v574_v35  ;;  %v8317_v26 = vld [vmem:[#allocation2 + $0x418] sm:$0xff]  ;;  %v581_v6 = vrot.slane %v8003_v63, 1  ;;  %v462_v35 = vpack.c.bf16 %v8313_v9, %v8311_v11 }
 0x1e7   :  { %v939_v32 = vpack.c.bf16 %v825_v52, %v827_v57  ;;  %v8341_v57 = vld [vmem:[#allocation2 + $0x428] sm:$0xff] }
 0x1ea   :  { %2400 = vmatmul.mubr.bf16.gmra.mrb[116].mxu0 %v458_v48  ;;  %v463_v48 = vpack.c.bf16 %v8291_v41, %v8289_v34 }
 0x1eb   :  { %5800 = vmatprep.mubr.msk.bf16.mxu0 %vm1143_vm0, %v461_v37  ;;  %v826_v37 = vsel %vm702_vm1, %v575_v60, %v577_v4  ;;  %v580_v60 = vrot.slane %v8025_v19, 1  ;;  %v8337_v19 = vld [vmem:[#allocation2 + $0x400] sm:$0xff]  ;;  %v583_v4 = vrot.slane %v8005_v15, 1 }
 0x1ec   :  { %1497 = vmatmul.mubr.bf16.gmra.mrb[68].mxu1 %v937_v42  ;;  %v940_v18 = vpack.c.bf16 %v826_v37, %v828_v43  ;;  %v578_v42 = vrot.slane %v8001_v44, 1  ;;  %v8339_v37 = vld [vmem:[#allocation2 + $0x410] sm:$0xff] }
 0x1ed   :  { %v820_v15 = vsel %vm702_vm1, %v581_v6, %v583_v4 }
 0x1ee   :  { %5718 = vmatprep.mubr.msk.bf16.mxu1 %vm1143_vm0, %v940_v18  ;;  %v821_v44 = vsel %vm702_vm1, %v578_v42, %v580_v60  ;;  %v823_v63 = vsel %vm702_vm1, %v576_v23, %v578_v42  ;;  %v8343_v18 = vld [vmem:[#allocation2 + $0x438] sm:$0xff]  ;;  %v585_v23 = vrot.slane %v8029_v5, 1  ;;  %v464_v42 = vpack.c.bf16 %v8339_v37, %v8337_v19 }
 0x1ef   :  { %v941_v52 = vpack.c.bf16 %v821_v44, %v823_v63  ;;  %v8367_v63 = vld [vmem:[#allocation2 + $0x448] sm:$0xff] }
 0x1f2   :  { %2410 = vmatmul.mubr.bf16.gmra.mrb[120].mxu0 %v460_v29  ;;  %v465_v29 = vpack.c.bf16 %v8317_v26, %v8315_v55 }
 0x1f3   :  { %5801 = vmatprep.mubr.msk.bf16.mxu0 %vm1143_vm0, %v463_v48  ;;  %v822_v48 = vsel %vm702_vm1, %v579_v54, %v581_v6  ;;  %v584_v54 = vrot.slane %v8051_v36, 1  ;;  %v8363_v36 = vld [vmem:[#allocation2 + $0x420] sm:$0xff]  ;;  %v587_v6 = vrot.slane %v8031_v58, 1 }
 0x1f4   :  { %1507 = vmatmul.mubr.bf16.gmra.mrb[72].mxu1 %v939_v32  ;;  %v942_v43 = vpack.c.bf16 %v822_v48, %v824_v50  ;;  %v582_v32 = vrot.slane %v8027_v46, 1  ;;  %v8365_v48 = vld [vmem:[#allocation2 + $0x430] sm:$0xff] }
 0x1f5   :  { %v816_v58 = vsel %vm702_vm1, %v585_v23, %v587_v6 }
 0x1f6   :  { %5719 = vmatprep.mubr.msk.bf16.mxu1 %vm1143_vm0, %v942_v43  ;;  %v817_v46 = vsel %vm702_vm1, %v582_v32, %v584_v54  ;;  %v819_v5 = vsel %vm702_vm1, %v580_v60, %v582_v32  ;;  %v8369_v43 = vld [vmem:[#allocation2 + $0x458] sm:$0xff]  ;;  %v589_v60 = vrot.slane %v8055_v13, 1  ;;  %v466_v32 = vpack.c.bf16 %v8365_v48, %v8363_v36 }
 0x1f7   :  { %v943_v44 = vpack.c.bf16 %v817_v46, %v819_v5  ;;  %v8393_v5 = vld [vmem:[#allocation2 + $0x468] sm:$0xff] }
 0x1fa   :  { %2420 = vmatmul.mubr.bf16.gmra.mrb[124].mxu0 %v462_v35  ;;  %v467_v35 = vpack.c.bf16 %v8343_v18, %v8341_v57 }
 0x1fb   :  { %5802 = vmatprep.mubr.msk.bf16.mxu0 %vm1143_vm0, %v465_v29  ;;  %v818_v29 = vsel %vm702_vm1, %v583_v4, %v585_v23  ;;  %v588_v4 = vrot.slane %v8077_v14, 1  ;;  %v8389_v14 = vld [vmem:[#allocation2 + $0x440] sm:$0xff]  ;;  %v591_v23 = vrot.slane %v8057_v0, 1 }
 0x1fc   :  { %1517 = vmatmul.mubr.bf16.gmra.mrb[76].mxu1 %v941_v52  ;;  %v944_v50 = vpack.c.bf16 %v818_v29, %v820_v15  ;;  %v586_v52 = vrot.slane %v8053_v45, 1  ;;  %v8391_v29 = vld [vmem:[#allocation2 + $0x450] sm:$0xff] }
 0x1fd   :  { %v812_v0 = vsel %vm702_vm1, %v589_v60, %v591_v23 }
 0x1fe   :  { %5720 = vmatprep.mubr.msk.bf16.mxu1 %vm1143_vm0, %v944_v50  ;;  %v813_v45 = vsel %vm702_vm1, %v586_v52, %v588_v4  ;;  %v815_v13 = vsel %vm702_vm1, %v584_v54, %v586_v52  ;;  %v8395_v50 = vld [vmem:[#allocation2 + $0x478] sm:$0xff]  ;;  %v593_v54 = vrot.slane %v8081_v12, 1  ;;  %v468_v52 = vpack.c.bf16 %v8391_v29, %v8389_v14 }
 0x1ff   :  { %v945_v46 = vpack.c.bf16 %v813_v45, %v815_v13  ;;  %v8419_v13 = vld [vmem:[#allocation2 + $0x488] sm:$0xff] }
 0x202   :  { %2430 = vmatmul.mubr.bf16.gmra.mrb[128].mxu0 %v464_v42  ;;  %v469_v42 = vpack.c.bf16 %v8369_v43, %v8367_v63 }
 0x203   :  { %5803 = vmatprep.mubr.msk.bf16.mxu0 %vm1143_vm0, %v467_v35  ;;  %v814_v35 = vsel %vm702_vm1, %v587_v6, %v589_v60  ;;  %v592_v6 = vrot.slane %v8103_v28, 1  ;;  %v8415_v28 = vld [vmem:[#allocation2 + $0x460] sm:$0xff]  ;;  %v595_v60 = vrot.slane %v8083_v62, 1 }
 0x204   :  { %1527 = vmatmul.mubr.bf16.gmra.mrb[80].mxu1 %v943_v44  ;;  %v946_v15 = vpack.c.bf16 %v814_v35, %v816_v58  ;;  %v590_v44 = vrot.slane %v8079_v20, 1  ;;  %v8417_v35 = vld [vmem:[#allocation2 + $0x470] sm:$0xff] }
 0x205   :  { %v808_v62 = vsel %vm702_vm1, %v593_v54, %v595_v60 }
 0x206   :  { %5721 = vmatprep.mubr.msk.bf16.mxu1 %vm1143_vm0, %v946_v15  ;;  %v809_v20 = vsel %vm702_vm1, %v590_v44, %v592_v6  ;;  %v811_v12 = vsel %vm702_vm1, %v588_v4, %v590_v44  ;;  %v8421_v15 = vld [vmem:[#allocation2 + $0x498] sm:$0xff]  ;;  %v597_v4 = vrot.slane %v8107_v47, 1  ;;  %v470_v44 = vpack.c.bf16 %v8417_v35, %v8415_v28 }
 0x207   :  { %v947_v45 = vpack.c.bf16 %v809_v20, %v811_v12  ;;  %v8445_v12 = vld [vmem:[#allocation2 + $0x4a8] sm:$0xff] }
 0x20a   :  { %2440 = vmatmul.mubr.bf16.gmra.mrb[132].mxu0 %v466_v32  ;;  %v471_v32 = vpack.c.bf16 %v8395_v50, %v8393_v5 }
 0x20b   :  { %5804 = vmatprep.mubr.msk.bf16.mxu0 %vm1143_vm0, %v469_v42  ;;  %v810_v42 = vsel %vm702_vm1, %v591_v23, %v593_v54  ;;  %v596_v23 = vrot.slane %v8129_v8, 1  ;;  %v8441_v8 = vld [vmem:[#allocation2 + $0x480] sm:$0xff] }
 0x20c   :  { %1537 = vmatmul.mubr.bf16.gmra.mrb[84].mxu1 %v945_v46  ;;  %v948_v58 = vpack.c.bf16 %v810_v42, %v812_v0  ;;  %v594_v46 = vrot.slane %v8105_v33, 1  ;;  %v8443_v42 = vld [vmem:[#allocation2 + $0x490] sm:$0xff] }
 0x20e   :  { %5722 = vmatprep.mubr.msk.bf16.mxu1 %vm1143_vm0, %v948_v58  ;;  %v805_v33 = vsel %vm702_vm1, %v594_v46, %v596_v23  ;;  %v807_v47 = vsel %vm702_vm1, %v592_v6, %v594_v46  ;;  %v8447_v58 = vld [vmem:[#allocation2 + $0x4b8] sm:$0xff]  ;;  %v601_v6 = vrot.slane %v8133_v2, 1  ;;  %v600_v46 = vrot.slane %v8155_v21, 1  ;;  %v6775_v21 = vld [vmem:[#allocation13] sm:$0xff]  }
 0x20f   :  { %v949_v20 = vpack.c.bf16 %v805_v33, %v807_v47  ;;  %v8467_v33 = vld [vmem:[#allocation2 + $0x4a0] sm:$0xff]  ;;  %v8469_v47 = vld [vmem:[#allocation2 + $0x4b0] sm:$0xff]  ;;  %6082 = vmatprep.subr.bf16.mxu1 %v6775_v21 }
 0x210   :  { %6083 = vmatpush3.bf16.msra.mxu1 %v6775_v21  ;;  %v8495_v21 = vld [vmem:[#allocation2 + $0x4d0] sm:$0xff] }
 0x212   :  { %2450 = vmatmul.mubr.bf16.gmra.mrb[136].mxu0 %v468_v52  ;;  %v473_v52 = vpack.c.bf16 %v8421_v15, %v8419_v13 }
 0x213   :  { %5805 = vmatprep.mubr.msk.bf16.mxu0 %vm1143_vm0, %v471_v32  ;;  %v806_v32 = vsel %vm702_vm1, %v595_v60, %v597_v4  ;;  %v598_v60 = vrot.slane %v8131_v39, 1 }
 0x214   :  { %1547 = vmatmul.mubr.bf16.gmra.mrb[88].mxu1 %v947_v45  ;;  %v950_v0 = vpack.c.bf16 %v806_v32, %v808_v62  ;;  %v9926_v45 = vld [vmem:[#allocation37_spill] sm:$0xff] }
 0x215   :  { %v599_v54 = vrot.slane %v9926_v45, 1  ;;  %v801_v39 = vsel %vm702_vm1, %v598_v60, %v600_v46  ;;  %v803_v2 = vsel %vm702_vm1, %v596_v23, %v598_v60  ;;  %v8471_v45 = vld [vmem:[#allocation2 + $0x4c8] sm:$0xff]  ;;  %v602_v23 = vrot.slane %v8157_v51, 1 }
 0x216   :  { %5723 = vmatprep.mubr.msk.bf16.mxu1 %vm1143_vm0, %v950_v0  ;;  %v605_v60 = vrot.slane %v8159_v53, 1 }
 0x217   :  { %v802_v32 = vsel %vm702_vm1, %v599_v54, %v601_v6  ;;  %v804_v62 = vsel %vm702_vm1, %v597_v4, %v599_v54  ;;  %v9927_v4 = vld [vmem:[#allocation38_spill] sm:$0xff]  ;;  %v799_v53 = vsel %vm702_vm1, %v600_v46, %v602_v23  ;;  %v609_v46 = vrot.slane %v8185_v38, 1 }
 0x218   :  { %v952_v0 = vpack.c.bf16 %v802_v32, %v804_v62  ;;  %v603_v54 = vrot.slane %v9927_v4, 1  ;;  %v474_v32 = vpack.c.bf16 %v8469_v47, %v8467_v33  ;;  %v8497_v4 = vld [vmem:[#allocation2 + $0x4e8] sm:$0xff] }
 0x21a   :  { %2460 = vmatmul.mubr.bf16.gmra.mrb[140].mxu0 %v470_v44  ;;  %v472_v44 = vpack.c.bf16 %v8443_v42, %v8441_v8 }
 0x21b   :  { %5806 = vmatprep.mubr.msk.bf16.mxu0 %vm1143_vm0, %v473_v52  ;;  %v475_v52 = vpack.c.bf16 %v8447_v58, %v8445_v12 }
 0x21c   :  { %1557 = vmatmul.mubr.bf16.gmra.mrb[92].mxu1 %v949_v20  ;;  %v951_v20 = vpack.c.bf16 %v801_v39, %v803_v2  ;;  %v798_v39 = vsel %vm702_vm1, %v603_v54, %v605_v60  ;;  %v800_v2 = vsel %vm702_vm1, %v601_v6, %v603_v54  ;;  %v607_v6 = vrot.slane %v8161_v56, 1 }
 0x21d   :  { %5724 = vmatprep.mubr.msk.bf16.mxu1 %vm1143_vm0, %v952_v0  ;;  %v954_v0 = vpack.c.bf16 %v798_v39, %v800_v2  ;;  %v606_v54 = vrot.slane %v8183_v30, 1 }
 0x21e   :  { %v794_v2 = vsel %vm702_vm1, %v607_v6, %v609_v46  ;;  %v796_v56 = vsel %vm702_vm1, %v605_v60, %v607_v6  ;;  %v611_v60 = vrot.slane %v8187_v22, 1  ;;  %v610_v6 = vrot.slane %v8209_v40, 1 }
 0x220   :  { %v792_v22 = vsel %vm702_vm1, %v609_v46, %v611_v60 }
 0x222   :  { %2470 = vmatmul.mubr.bf16.gmra.mrb[144].mxu0 %v472_v44  ;;  %v8473_v44 = vld [vmem:[#allocation2 + $0x4d8] sm:$0xff] }
 0x223   :  { %5807 = vmatprep.mubr.msk.bf16.mxu0 %vm1143_vm0, %v475_v52  ;;  %v604_v52 = vrot.slane %v8181_v25, 1  ;;  %v477_v62 = vpack.c.bf16 %v8473_v44, %v8471_v45  ;;  %v8493_v25 = vld [vmem:[#allocation2 + $0x4c0] sm:$0xff] }
 0x224   :  { %1567 = vmatmul.mubr.bf16.gmra.mrb[96].mxu1 %v951_v20 }
 0x225   :  { %v797_v51 = vsel %vm702_vm1, %v602_v23, %v604_v52  ;;  %5725 = vmatprep.mubr.msk.bf16.mxu1 %vm1143_vm0, %v954_v0  ;;  %v608_v23 = vrot.slane %v8207_v49, 1  ;;  %v795_v38 = vsel %vm702_vm1, %v604_v52, %v606_v54  ;;  %v8519_v49 = vld [vmem:[#allocation2 + $0x4e0] sm:$0xff] }
 0x226   :  { %v953_v20 = vpack.c.bf16 %v797_v51, %v799_v53  ;;  %v8521_v51 = vld [vmem:[#allocation2 + $0x4f0] sm:$0xff]  ;;  %v956_v53 = vpack.c.bf16 %v794_v2, %v796_v56 }
 0x227   :  { %v793_v30 = vsel %vm702_vm1, %v606_v54, %v608_v23  ;;  %v612_v54 = vrot.slane %v8233_v24, 1  ;;  %v791_v24 = vsel %vm702_vm1, %v608_v23, %v610_v6  ;;  %v617_v23 = vrot.slane %v8237_v7, 1 }
 0x228   :  { %v955_v0 = vpack.c.bf16 %v793_v30, %v795_v38  ;;  %v8547_v30 = vld [vmem:[#allocation2 + $0x510] sm:$0xff] }
 0x229   :  { %v789_v40 = vsel %vm702_vm1, %v610_v6, %v612_v54  ;;  %v616_v6 = vrot.slane %v8259_v61, 1  ;;  %v8571_v61 = vld [vmem:[#allocation2 + $0x520] sm:$0xff] }
 0x22a   :  { %2480 = vmatmul.mubr.bf16.gmra.mrb[148].mxu0 %v474_v32  ;;  %v8499_v32 = vld [vmem:[#allocation2 + $0x4f8] sm:$0xff] }
 0x22b   :  { %5808 = vmatprep.mubr.msk.bf16.mxu0 %vm1143_vm0, %v477_v62  ;;  %9928 = vst [vmem:[#allocation35_spill] sm:$0xff] %v8499_v32  ;;  %v476_v62 = vpack.c.bf16 %v8495_v21, %v8493_v25  ;;  %v479_v39 = vpack.c.bf16 %v8499_v32, %v8497_v4  ;;  %v9930_v32 = vld [vmem:[#allocation33_spill] sm:$0xff] }
 0x22c   :  { %1577 = vmatmul.mubr.bf16.gmra.mrb[100].mxu1 %v953_v20  ;;  %v8523_v20 = vld [vmem:[#allocation2 + $0x508] sm:$0xff]  ;;  %v613_v52 = vrot.slane %v9930_v32, 1  ;;  %v8545_v32 = vld [vmem:[#allocation2 + $0x500] sm:$0xff] }
 0x22d   :  { %5726 = vmatprep.mubr.msk.bf16.mxu1 %vm1143_vm0, %v956_v53  ;;  %v957_v53 = vpack.c.bf16 %v789_v40, %v791_v24  ;;  %v8573_v40 = vld [vmem:[#allocation2 + $0x530] sm:$0xff] }
 0x22e   :  { %v790_v56 = vsel %vm702_vm1, %v611_v60, %v613_v52  ;;  %v614_v60 = vrot.slane %v8235_v17, 1 }
 0x22f   :  { %v958_v38 = vpack.c.bf16 %v790_v56, %v792_v22 }
 0x230   :  { %v785_v17 = vsel %vm702_vm1, %v614_v60, %v616_v6  ;;  %v787_v7 = vsel %vm702_vm1, %v612_v54, %v614_v60  ;;  %v621_v54 = vrot.slane %v8263_v10, 1  ;;  %v620_v60 = vrot.slane %v8285_v3, 1  ;;  %v8597_v3 = vld [vmem:[#allocation2 + $0x540] sm:$0xff] }
 0x232   :  { %2490 = vmatmul.mubr.bf16.gmra.mrb[152].mxu0 %v476_v62  ;;  %v8525_v62 = vld [vmem:[#allocation2 + $0x518] sm:$0xff] }
 0x233   :  { %5809 = vmatprep.mubr.msk.bf16.mxu0 %vm1143_vm0, %v479_v39  ;;  %9929 = vst [vmem:[#allocation36_spill] sm:$0xff] %v8525_v62  ;;  %v478_v39 = vpack.c.bf16 %v8521_v51, %v8519_v49  ;;  %v481_v2 = vpack.c.bf16 %v8525_v62, %v8523_v20  ;;  %v9931_v62 = vld [vmem:[#allocation34_spill] sm:$0xff] }
 0x234   :  { %1587 = vmatmul.mubr.bf16.gmra.mrb[104].mxu1 %v955_v0  ;;  %v8549_v0 = vld [vmem:[#allocation2 + $0x528] sm:$0xff]  ;;  %v615_v46 = vrot.slane %v9931_v62, 1 }
 0x235   :  { %5727 = vmatprep.mubr.msk.bf16.mxu1 %vm1143_vm0, %v958_v38  ;;  %v959_v38 = vpack.c.bf16 %v785_v17, %v787_v7  ;;  %v8599_v17 = vld [vmem:[#allocation2 + $0x550] sm:$0xff] }
 0x236   :  { %v786_v22 = vsel %vm702_vm1, %v615_v46, %v617_v23  ;;  %v788_v62 = vsel %vm702_vm1, %v613_v52, %v615_v46  ;;  %v619_v52 = vrot.slane %v8239_v59, 1  ;;  %v618_v46 = vrot.slane %v8261_v27, 1 }
 0x237   :  { %v960_v24 = vpack.c.bf16 %v786_v22, %v788_v62 }
 0x238   :  { %v782_v62 = vsel %vm702_vm1, %v619_v52, %v621_v54  ;;  %v784_v59 = vsel %vm702_vm1, %v617_v23, %v619_v52  ;;  %v781_v27 = vsel %vm702_vm1, %v618_v46, %v620_v60  ;;  %v783_v10 = vsel %vm702_vm1, %v616_v6, %v618_v46 }
 0x239   :  { %v962_v7 = vpack.c.bf16 %v782_v62, %v784_v59  ;;  %v623_v23 = vrot.slane %v8265_v31, 1  ;;  %v622_v52 = vrot.slane %v8287_v16, 1  ;;  %v625_v6 = vrot.slane %v8289_v34, 1 }
 0x23a   :  { %2500 = vmatmul.mubr.bf16.gmra.mrb[156].mxu0 %v478_v39  ;;  %v8551_v39 = vld [vmem:[#allocation2 + $0x538] sm:$0xff]  ;;  %v624_v46 = vrot.slane %v8311_v11, 1  ;;  %v8623_v11 = vld [vmem:[#allocation2 + $0x560] sm:$0xff] }
 0x23b   :  { %5810 = vmatprep.mubr.msk.bf16.mxu0 %vm1143_vm0, %v481_v2  ;;  %v480_v2 = vpack.c.bf16 %v8547_v30, %v8545_v32  ;;  %v483_v56 = vpack.c.bf16 %v8551_v39, %v8549_v0  ;;  %v778_v59 = vsel %vm702_vm1, %v623_v23, %v625_v6  ;;  %v780_v31 = vsel %vm702_vm1, %v621_v54, %v623_v23 }
 0x23c   :  { %1597 = vmatmul.mubr.bf16.gmra.mrb[108].mxu1 %v957_v53  ;;  %v8575_v53 = vld [vmem:[#allocation2 + $0x548] sm:$0xff]  ;;  %v777_v16 = vsel %vm702_vm1, %v622_v52, %v624_v46  ;;  %v779_v34 = vsel %vm702_vm1, %v620_v60, %v622_v52  ;;  %v627_v54 = vrot.slane %v8291_v41, 1  ;;  %v626_v23 = vrot.slane %v8313_v9, 1 }
 0x23d   :  { %5728 = vmatprep.mubr.msk.bf16.mxu1 %vm1143_vm0, %v960_v24  ;;  %v961_v24 = vpack.c.bf16 %v781_v27, %v783_v10  ;;  %v8625_v27 = vld [vmem:[#allocation2 + $0x570] sm:$0xff]  ;;  %v964_v10 = vpack.c.bf16 %v778_v59, %v780_v31  ;;  %v629_v60 = vrot.slane %v8315_v55, 1  ;;  %v628_v52 = vrot.slane %v8337_v19, 1  ;;  %v8649_v19 = vld [vmem:[#allocation2 + $0x580] sm:$0xff] }
 0x23e   :  { %v6783_v31 = vld [vmem:[#allocation13 + $0x8] sm:$0xff]   ;;  %v775_v55 = vsel %vm702_vm1, %v624_v46, %v626_v23  ;;  %v630_v46 = vrot.slane %v8339_v37, 1 }
 0x23f   :  { %v774_v41 = vsel %vm702_vm1, %v627_v54, %v629_v60  ;;  %v773_v9 = vsel %vm702_vm1, %v626_v23, %v628_v52  ;;  %6084 = vmatprep.subr.bf16.mxu1 %v6783_v31  ;;  %v632_v23 = vrot.slane %v8363_v36, 1  ;;  %v8675_v36 = vld [vmem:[#allocation2 + $0x5a0] sm:$0xff] }
 0x240   :  { %6085 = vmatpush3.bf16.msra.mxu1 %v6783_v31 }
 0x241   :  { %v769_v37 = vsel %vm702_vm1, %v630_v46, %v632_v23 }
 0x242   :  { %2510 = vmatmul.mubr.bf16.gmra.mrb[160].mxu0 %v480_v2  ;;  %v8577_v2 = vld [vmem:[#allocation2 + $0x558] sm:$0xff] }
 0x243   :  { %5811 = vmatprep.mubr.msk.bf16.mxu0 %vm1143_vm0, %v483_v56  ;;  %v482_v56 = vpack.c.bf16 %v8573_v40, %v8571_v61  ;;  %v485_v22 = vpack.c.bf16 %v8577_v2, %v8575_v53 }
 0x244   :  { %1607 = vmatmul.mubr.bf16.gmra.mrb[112].mxu1 %v959_v38  ;;  %v8601_v38 = vld [vmem:[#allocation2 + $0x568] sm:$0xff] }
 0x245   :  { %5729 = vmatprep.mubr.msk.bf16.mxu1 %vm1143_vm0, %v962_v7  ;;  %v963_v7 = vpack.c.bf16 %v777_v16, %v779_v34  ;;  %v776_v16 = vsel %vm702_vm1, %v625_v6, %v627_v54  ;;  %v8651_v34 = vld [vmem:[#allocation2 + $0x590] sm:$0xff]  ;;  %v631_v6 = vrot.slane %v8317_v26, 1  ;;  %v633_v54 = vrot.slane %v8341_v57, 1 }
 0x246   :  { %v771_v57 = vsel %vm702_vm1, %v628_v52, %v630_v46  ;;  %v637_v52 = vrot.slane %v8367_v63, 1  ;;  %v636_v46 = vrot.slane %v8389_v14, 1  ;;  %v8701_v14 = vld [vmem:[#allocation2 + $0x5c0] sm:$0xff] }
 0x247   :  { %v770_v26 = vsel %vm702_vm1, %v631_v6, %v633_v54  ;;  %v772_v31 = vsel %vm702_vm1, %v629_v60, %v631_v6  ;;  %v635_v60 = vrot.slane %v8343_v18, 1  ;;  %v634_v6 = vrot.slane %v8365_v48, 1 }
 0x249   :  { %v768_v18 = vsel %vm702_vm1, %v633_v54, %v635_v60  ;;  %v765_v48 = vsel %vm702_vm1, %v634_v6, %v636_v46  ;;  %v767_v63 = vsel %vm702_vm1, %v632_v23, %v634_v6  ;;  %v639_v54 = vrot.slane %v8369_v43, 1 }
 0x24a   :  { %2520 = vmatmul.mubr.bf16.gmra.mrb[164].mxu0 %v482_v56  ;;  %v8603_v56 = vld [vmem:[#allocation2 + $0x578] sm:$0xff]  ;;  %v641_v23 = vrot.slane %v8393_v5, 1  ;;  %v640_v6 = vrot.slane %v8415_v28, 1  ;;  %v8727_v28 = vld [vmem:[#allocation2 + $0x5e0] sm:$0xff] }
 0x24b   :  { %5812 = vmatprep.mubr.msk.bf16.mxu0 %vm1143_vm0, %v485_v22  ;;  %v484_v22 = vpack.c.bf16 %v8599_v17, %v8597_v3  ;;  %v487_v62 = vpack.c.bf16 %v8603_v56, %v8601_v38  ;;  %v764_v43 = vsel %vm702_vm1, %v637_v52, %v639_v54 }
 0x24c   :  { %1617 = vmatmul.mubr.bf16.gmra.mrb[116].mxu1 %v961_v24  ;;  %v8627_v24 = vld [vmem:[#allocation2 + $0x588] sm:$0xff] }
 0x24d   :  { %5730 = vmatprep.mubr.msk.bf16.mxu1 %vm1143_vm0, %v964_v10  ;;  %v966_v10 = vpack.c.bf16 %v774_v41, %v776_v16  ;;  %v8677_v16 = vld [vmem:[#allocation2 + $0x5b0] sm:$0xff] }
 0x252   :  { %2530 = vmatmul.mubr.bf16.gmra.mrb[168].mxu0 %v484_v22  ;;  %v8629_v22 = vld [vmem:[#allocation2 + $0x598] sm:$0xff] }
 0x253   :  { %5813 = vmatprep.mubr.msk.bf16.mxu0 %vm1143_vm0, %v487_v62  ;;  %9932 = vst [vmem:[#allocation37_spill] sm:$0xff] %v8629_v22  ;;  %v486_v62 = vpack.c.bf16 %v8625_v27, %v8623_v11  ;;  %v489_v59 = vpack.c.bf16 %v8629_v22, %v8627_v24  ;;  %v8655_v22 = vld [vmem:[#allocation2 + $0x5b8] sm:$0xff] }
 0x254   :  { %1627 = vmatmul.mubr.bf16.gmra.mrb[120].mxu1 %v963_v7  ;;  %v965_v7 = vpack.c.bf16 %v773_v9, %v775_v55  ;;  %v968_v9 = vpack.c.bf16 %v770_v26, %v772_v31  ;;  %v967_v55 = vpack.c.bf16 %v769_v37, %v771_v57  ;;  %v766_v26 = vsel %vm702_vm1, %v635_v60, %v637_v52  ;;  %v8703_v31 = vld [vmem:[#allocation2 + $0x5d0] sm:$0xff] }
 0x255   :  { %5731 = vmatprep.mubr.msk.bf16.mxu1 %vm1143_vm0, %v966_v10  ;;  %v8679_v10 = vld [vmem:[#allocation2 + $0x5c8] sm:$0xff]  ;;  %v970_v37 = vpack.c.bf16 %v766_v26, %v768_v18  ;;  %v969_v57 = vpack.c.bf16 %v765_v48, %v767_v63  ;;  %v638_v60 = vrot.slane %v8391_v29, 1  ;;  %v762_v26 = vsel %vm702_vm1, %v639_v54, %v641_v23  ;;  %v8729_v18 = vld [vmem:[#allocation2 + $0x5f0] sm:$0xff] }
 0x256   :  { %v972_v48 = vpack.c.bf16 %v762_v26, %v764_v43  ;;  %v643_v52 = vrot.slane %v8395_v50, 1  ;;  %v642_v54 = vrot.slane %v8417_v35, 1  ;;  %v8755_v43 = vld [vmem:[#allocation2 + $0x610] sm:$0xff] }
 0x257   :  { %v761_v29 = vsel %vm702_vm1, %v638_v60, %v640_v6  ;;  %v763_v5 = vsel %vm702_vm1, %v636_v46, %v638_v60  ;;  %v645_v46 = vrot.slane %v8419_v13, 1  ;;  %v644_v60 = vrot.slane %v8441_v8, 1  ;;  %v8753_v8 = vld [vmem:[#allocation2 + $0x600] sm:$0xff] }
 0x258   :  { %v971_v63 = vpack.c.bf16 %v761_v29, %v763_v5  ;;  %v760_v50 = vsel %vm702_vm1, %v641_v23, %v643_v52  ;;  %v759_v13 = vsel %vm702_vm1, %v640_v6, %v642_v54  ;;  %v647_v23 = vrot.slane %v8421_v15, 1 }
 0x259   :  { %v758_v26 = vsel %vm702_vm1, %v643_v52, %v645_v46  ;;  %v757_v35 = vsel %vm702_vm1, %v642_v54, %v644_v60  ;;  %v646_v52 = vrot.slane %v8443_v42, 1  ;;  %v649_v6 = vrot.slane %v8445_v12, 1 }
 0x25a   :  { %2540 = vmatmul.mubr.bf16.gmra.mrb[172].mxu0 %v486_v62  ;;  %v8653_v62 = vld [vmem:[#allocation2 + $0x5a8] sm:$0xff]  ;;  %v974_v29 = vpack.c.bf16 %v758_v26, %v760_v50  ;;  %v973_v5 = vpack.c.bf16 %v757_v35, %v759_v13  ;;  %v648_v54 = vrot.slane %v8467_v33, 1  ;;  %v756_v15 = vsel %vm702_vm1, %v645_v46, %v647_v23  ;;  %v8779_v33 = vld [vmem:[#allocation2 + $0x620] sm:$0xff]  ;;  %v8781_v50 = vld [vmem:[#allocation2 + $0x630] sm:$0xff] }
 0x25b   :  { %5814 = vmatprep.mubr.msk.bf16.mxu0 %vm1143_vm0, %v489_v59  ;;  %v488_v59 = vpack.c.bf16 %v8651_v34, %v8649_v19  ;;  %v491_v41 = vpack.c.bf16 %v8655_v22, %v8653_v62  ;;  %v754_v26 = vsel %vm702_vm1, %v647_v23, %v649_v6  ;;  %v755_v12 = vsel %vm702_vm1, %v644_v60, %v646_v52 }
 0x25c   :  { %1637 = vmatmul.mubr.bf16.gmra.mrb[124].mxu1 %v965_v7  ;;  %v8681_v7 = vld [vmem:[#allocation2 + $0x5d8] sm:$0xff]  ;;  %v753_v42 = vsel %vm702_vm1, %v646_v52, %v648_v54  ;;  %v976_v35 = vpack.c.bf16 %v754_v26, %v756_v15  ;;  %v650_v46 = vrot.slane %v8469_v47, 1  ;;  %v652_v23 = vrot.slane %v8493_v25, 1 }
 0x25d   :  { %5732 = vmatprep.mubr.msk.bf16.mxu1 %vm1143_vm0, %v968_v9  ;;  %v8705_v9 = vld [vmem:[#allocation2 + $0x5e8] sm:$0xff]  ;;  %v975_v13 = vpack.c.bf16 %v753_v42, %v755_v12  ;;  %v498_v60 = vpack.c.bf16 %v8781_v50, %v8779_v33  ;;  %v6790_v52 = vld [vmem:[#allocation13 + $0x10] sm:$0xff]   ;;  %v9908_v25 = vmov 0   ;;  %v654_v12 = vrot.slane %v8495_v21, 1 }
 0x25e   :  { %v751_v47 = vsel %vm702_vm1, %v648_v54, %v650_v46  ;;  %6086 = vmatprep.subr.bf16.mxu1 %v6790_v52  ;;  %v656_v54 = vrot.slane %v8519_v49, 1 }
 0x25f   :  { %6087 = vmatpush3.bf16.msra.mxu1 %v6790_v52  ;;  %v747_v21 = vsel %vm702_vm1, %v652_v23, %v654_v12 }
 0x262   :  { %2550 = vmatmul.mubr.bf16.gmra.mrb[176].mxu0 %v488_v59  ;;  %v490_v59 = vpack.c.bf16 %v8677_v16, %v8675_v36 }
 0x263   :  { %5815 = vmatprep.mubr.msk.bf16.mxu0 %vm1143_vm0, %v491_v41  ;;  %v493_v41 = vpack.c.bf16 %v8681_v7, %v8679_v10 }
 0x264   :  { %1647 = vmatmul.mubr.bf16.gmra.mrb[128].mxu1 %v967_v55  ;;  %v8707_v55 = vld [vmem:[#allocation2 + $0x5f8] sm:$0xff] }
 0x265   :  { %5733 = vmatprep.mubr.msk.bf16.mxu1 %vm1143_vm0, %v970_v37  ;;  %v8731_v37 = vld [vmem:[#allocation2 + $0x608] sm:$0xff] }
 0x26a   :  { %2560 = vmatmul.mubr.bf16.gmra.mrb[180].mxu0 %v490_v59  ;;  %v492_v59 = vpack.c.bf16 %v8703_v31, %v8701_v14 }
 0x26b   :  { %5816 = vmatprep.mubr.msk.bf16.mxu0 %vm1143_vm0, %v493_v41  ;;  %v495_v41 = vpack.c.bf16 %v8707_v55, %v8705_v9 }
 0x26c   :  { %1657 = vmatmul.mubr.bf16.gmra.mrb[132].mxu1 %v969_v57  ;;  %v8733_v57 = vld [vmem:[#allocation2 + $0x618] sm:$0xff] }
 0x26d   :  { %5734 = vmatprep.mubr.msk.bf16.mxu1 %vm1143_vm0, %v972_v48  ;;  %v8757_v48 = vld [vmem:[#allocation2 + $0x638] sm:$0xff] }
 0x272   :  { %2570 = vmatmul.mubr.bf16.gmra.mrb[184].mxu0 %v492_v59  ;;  %v494_v59 = vpack.c.bf16 %v8729_v18, %v8727_v28 }
 0x273   :  { %5817 = vmatprep.mubr.msk.bf16.mxu0 %vm1143_vm0, %v495_v41  ;;  %v497_v41 = vpack.c.bf16 %v8733_v57, %v8731_v37 }
 0x274   :  { %1667 = vmatmul.mubr.bf16.gmra.mrb[136].mxu1 %v971_v63  ;;  %v8759_v63 = vld [vmem:[#allocation2 + $0x628] sm:$0xff] }
 0x275   :  { %5735 = vmatprep.mubr.msk.bf16.mxu1 %vm1143_vm0, %v974_v29  ;;  %v651_v29 = vrot.slane %v8447_v58, 1 }
 0x277   :  { %v752_v58 = vsel %vm702_vm1, %v649_v6, %v651_v29  ;;  %v655_v6 = vrot.slane %v8473_v44, 1  ;;  %v745_v44 = vsel %vm702_vm1, %v654_v12, %v656_v54 }
 0x278   :  { %v979_v52 = vpack.c.bf16 %v745_v44, %v747_v21 }
 0x27a   :  { %2580 = vmatmul.mubr.bf16.gmra.mrb[188].mxu0 %v494_v59  ;;  %v496_v59 = vpack.c.bf16 %v8755_v43, %v8753_v8 }
 0x27b   :  { %5818 = vmatprep.mubr.msk.bf16.mxu0 %vm1143_vm0, %v497_v41  ;;  %v499_v41 = vpack.c.bf16 %v8757_v48, %v8759_v63 }
 0x27c   :  { %1677 = vmatmul.mubr.bf16.gmra.mrb[140].mxu1 %v973_v5  ;;  %v653_v5 = vrot.slane %v8471_v45, 1  ;;  %v8798_v45 = vpop.f32.mrb[0].mxu1 }
 0x27d   :  { %5736 = vmatprep.mubr.msk.bf16.mxu1 %vm1143_vm0, %v976_v35  ;;  %v8801_v42 = vpop.f32.mrb[1].mxu1  ;;  %v657_v35 = vrot.slane %v8497_v4, 1 }
 0x282   :  { %2590 = vmatmul.mubr.bf16.gmra.mrb[192].mxu0 %v496_v59  ;;  %v750_v59 = vsel %vm702_vm1, %v651_v29, %v653_v5  ;;  %v8808_v29 = vpop.f32.mrb[2].mxu1 }
 0x283   :  { %5819 = vmatprep.mubr.msk.bf16.mxu0 %vm1143_vm0, %v499_v41  ;;  %v749_v41 = vsel %vm702_vm1, %v650_v46, %v652_v23  ;;  %v978_v26 = vpack.c.bf16 %v750_v59, %v752_v58  ;;  %v746_v46 = vsel %vm702_vm1, %v655_v6, %v657_v35  ;;  %v8819_v4 = vpop.f32.mrb[3].mxu1  ;;  %v660_v23 = vrot.slane %v8545_v32, 1 }
 0x284   :  { %1687 = vmatmul.mubr.bf16.gmra.mrb[144].mxu1 %v975_v13  ;;  %v977_v15 = vpack.c.bf16 %v749_v41, %v751_v47  ;;  %v6772_v13 = vld [vmem:[#allocation8] sm:$0xff]   ;;  %v8821_v59 = vpop.f32.mrb[4].mxu1  ;;  %v9933_v41 = vld [vmem:[#allocation35_spill] sm:$0xff]  ;;  %v658_v47 = vrot.slane %v8521_v51, 1 }
 0x285   :  { %5737 = vmatprep.mubr.msk.bf16.mxu1 %vm1143_vm0, %v978_v26  ;;  %v8824_v58 = vpop.f32.mrb[5].mxu1  ;;  %v661_v26 = vrot.slane %v8523_v20, 1 }
 0x286   :  { %v743_v51 = vsel %vm702_vm1, %v656_v54, %v658_v47  ;;  %v664_v54 = vrot.slane %v8571_v61, 1 }
 0x28a   :  { %2600 = vmatmul.mubr.bf16.gmra.mrb[196].mxu0 %v498_v60  ;;  %v748_v60 = vsel %vm702_vm1, %v653_v5, %v655_v6  ;;  %v659_v5 = vrot.slane %v9933_v41, 1  ;;  %v8830_v6 = vpop.f32.mrb[6].mxu1  ;;  %v665_v41 = vrot.slane %v8549_v0, 1 }
 0x28b   :  { %3138 = vmatprep.mubr.bf16.mxu0 %v9908_v25  ;;  %v980_v49 = vpack.c.bf16 %v746_v46, %v748_v60  ;;  %v741_v46 = vsel %vm702_vm1, %v658_v47, %v660_v23  ;;  %v8841_v20 = vpop.f32.mrb[7].mxu1 }
 0x28c   :  { %1697 = vmatmul.mubr.bf16.gmra.mrb[148].mxu1 %v977_v15  ;;  %v6773_v15 = vld [vmem:[#allocation8 + $0x8] sm:$0xff]   ;;  %v742_v12 = vsel %vm702_vm1, %v659_v5, %v661_v26  ;;  %v981_v60 = vpack.c.bf16 %v741_v46, %v743_v51  ;;  %v8843_v44 = vpop.f32.mrb[8].mxu1 }
 0x28d   :  { %5738 = vmatprep.mubr.msk.bf16.mxu1 %vm1143_vm0, %v980_v49  ;;  %v8846_v21 = vpop.f32.mrb[9].mxu1  ;;  %v9934_v49 = vld [vmem:[#allocation36_spill] sm:$0xff] }
 0x28e   :  { %v8852_v47 = vpop.f32.mrb[10].mxu1 }
 0x28f   :  { %v8863_v0 = vpop.f32.mrb[11].mxu1 }
 0x290   :  { %v8865_v51 = vpop.f32.mrb[12].mxu1 }
 0x292   :  { %3139 = vmatmul.mubr.bf16.vlgmr.msra.gmra.mrb[0].mxu0 %v6772_v13  ;;  %v744_v13 = vsel %vm702_vm1, %v657_v35, %v659_v5  ;;  %v663_v35 = vrot.slane %v9934_v49, 1  ;;  %v6774_v5 = vld [vmem:[#allocation8 + $0x10] sm:$0xff]   ;;  %v669_v49 = vrot.slane %v8575_v53, 1 }
 0x293   :  { %3148 = vmatprep.mubr.bf16.mxu0 %v9908_v25  ;;  %v982_v32 = vpack.c.bf16 %v742_v12, %v744_v13 }
 0x294   :  { %1707 = vmatmul.mubr.bf16.gmra.mrb[152].mxu1 %v979_v52  ;;  %v662_v52 = vrot.slane %v8547_v30, 1  ;;  %v740_v12 = vsel %vm702_vm1, %v661_v26, %v663_v35  ;;  %v667_v26 = vrot.slane %v8551_v39, 1 }
 0x295   :  { %5739 = vmatprep.mubr.msk.bf16.mxu1 %vm1143_vm0, %v982_v32  ;;  %v8868_v32 = vpop.f32.mrb[13].mxu1 }
 0x296   :  { %v737_v13 = vsel %vm702_vm1, %v662_v52, %v664_v54  ;;  %v739_v30 = vsel %vm702_vm1, %v660_v23, %v662_v52  ;;  %v668_v23 = vrot.slane %v8597_v3, 1  ;;  %v8874_v52 = vpop.f32.mrb[14].mxu1 }
 0x297   :  { %v983_v46 = vpack.c.bf16 %v737_v13, %v739_v30  ;;  %v8885_v53 = vpop.f32.mrb[15].mxu1 }
 0x298   :  { %v8887_v13 = vpop.f32.mrb[16].mxu1 }
 0x299   :  { %v8890_v30 = vpop.f32.mrb[17].mxu1 }
 0x29a   :  { %3149 = vmatmul.mubr.bf16.gmra.mrb[4].mxu0 %v6773_v15  ;;  %v738_v15 = vsel %vm702_vm1, %v663_v35, %v665_v41  ;;  %v6776_v35 = vld [vmem:[#allocation8 + $0x18] sm:$0xff]  }
 0x29b   :  { %3158 = vmatprep.mubr.bf16.mxu0 %v9908_v25  ;;  %v984_v61 = vpack.c.bf16 %v738_v15, %v740_v12  ;;  %v736_v15 = vsel %vm702_vm1, %v665_v41, %v667_v26  ;;  %v671_v41 = vrot.slane %v8577_v2, 1 }
 0x29c   :  { %1717 = vmatmul.mubr.bf16.gmra.mrb[156].mxu1 %v981_v60  ;;  %v666_v60 = vrot.slane %v8573_v40, 1 }
 0x29d   :  { %5740 = vmatprep.mubr.msk.bf16.mxu1 %vm1143_vm0, %v984_v61  ;;  %v670_v61 = vrot.slane %v8599_v17, 1 }
 0x29e   :  { %v733_v39 = vsel %vm702_vm1, %v666_v60, %v668_v23  ;;  %v735_v40 = vsel %vm702_vm1, %v664_v54, %v666_v60  ;;  %v672_v54 = vrot.slane %v8623_v11, 1  ;;  %v8896_v60 = vpop.f32.mrb[18].mxu1 }
 0x29f   :  { %v985_v12 = vpack.c.bf16 %v733_v39, %v735_v40  ;;  %v731_v17 = vsel %vm702_vm1, %v668_v23, %v670_v61  ;;  %v676_v23 = vrot.slane %v8649_v19, 1 }
 0x2a0   :  { %v729_v2 = vsel %vm702_vm1, %v670_v61, %v672_v54 }
 0x2a2   :  { %3159 = vmatmul.mubr.bf16.gmra.mrb[8].mxu0 %v6774_v5  ;;  %v734_v5 = vsel %vm702_vm1, %v667_v26, %v669_v49  ;;  %v6777_v26 = vld [vmem:[#allocation8 + $0x20] sm:$0xff]  }
 0x2a3   :  { %3168 = vmatprep.mubr.bf16.mxu0 %v9908_v25  ;;  %v986_v3 = vpack.c.bf16 %v734_v5, %v736_v15  ;;  %v732_v5 = vsel %vm702_vm1, %v669_v49, %v671_v41  ;;  %v987_v15 = vpack.c.bf16 %v729_v2, %v731_v17  ;;  %v675_v49 = vrot.slane %v8603_v56, 1 }
 0x2a4   :  { %1727 = vmatmul.mubr.bf16.gmra.mrb[160].mxu1 %v983_v46  ;;  %v673_v46 = vrot.slane %v8601_v38, 1  ;;  %v8907_v38 = vpop.f32.mrb[19].mxu1 }
 0x2a5   :  { %5741 = vmatprep.mubr.msk.bf16.mxu1 %vm1143_vm0, %v986_v3  ;;  %v8909_v39 = vpop.f32.mrb[20].mxu1  ;;  %v674_v3 = vrot.slane %v8625_v27, 1 }
 0x2a6   :  { %v8912_v40 = vpop.f32.mrb[21].mxu1 }
 0x2a7   :  { %v8918_v61 = vpop.f32.mrb[22].mxu1  ;;  %v725_v56 = vsel %vm702_vm1, %v674_v3, %v676_v23  ;;  %v727_v27 = vsel %vm702_vm1, %v672_v54, %v674_v3  ;;  %v681_v54 = vrot.slane %v8653_v62, 1  ;;  %v680_v3 = vrot.slane %v8675_v36, 1 }
 0x2a8   :  { %v989_v2 = vpack.c.bf16 %v725_v56, %v727_v27 }
 0x2aa   :  { %3169 = vmatmul.mubr.bf16.gmra.mrb[12].mxu0 %v6776_v35  ;;  %v730_v35 = vsel %vm702_vm1, %v671_v41, %v673_v46  ;;  %v6778_v41 = vld [vmem:[#allocation8 + $0x28] sm:$0xff]  }
 0x2ab   :  { %3178 = vmatprep.mubr.bf16.mxu0 %v9908_v25  ;;  %v988_v11 = vpack.c.bf16 %v730_v35, %v732_v5  ;;  %v728_v5 = vsel %vm702_vm1, %v673_v46, %v675_v49  ;;  %v9935_v46 = vld [vmem:[#allocation37_spill] sm:$0xff] }
 0x2ac   :  { %1737 = vmatmul.mubr.bf16.gmra.mrb[164].mxu1 %v985_v12  ;;  %v677_v12 = vrot.slane %v8627_v24, 1  ;;  %v8929_v24 = vpop.f32.mrb[23].mxu1 }
 0x2ad   :  { %5742 = vmatprep.mubr.msk.bf16.mxu1 %vm1143_vm0, %v988_v11  ;;  %v8931_v17 = vpop.f32.mrb[24].mxu1 }
 0x2ae   :  { %v726_v35 = vsel %vm702_vm1, %v675_v49, %v677_v12  ;;  %v8934_v11 = vpop.f32.mrb[25].mxu1  ;;  %v678_v49 = vrot.slane %v8651_v34, 1 }
 0x2af   :  { %v990_v19 = vpack.c.bf16 %v726_v35, %v728_v5  ;;  %v8940_v35 = vpop.f32.mrb[26].mxu1 }
 0x2b0   :  { %v721_v56 = vsel %vm702_vm1, %v678_v49, %v680_v3  ;;  %v723_v34 = vsel %vm702_vm1, %v676_v23, %v678_v49  ;;  %v8951_v62 = vpop.f32.mrb[27].mxu1  ;;  %v684_v23 = vrot.slane %v8701_v14, 1  ;;  %v6780_v49 = vld [vmem:[#allocation8 + $0x38] sm:$0xff]  }
 0x2b1   :  { %v991_v27 = vpack.c.bf16 %v721_v56, %v723_v34 }
 0x2b2   :  { %3179 = vmatmul.mubr.bf16.gmra.mrb[16].mxu0 %v6777_v26  ;;  %v6797_v26 = vld [vmem:[#allocation13 + $0x18] sm:$0xff]  }
 0x2b3   :  { %3188 = vmatprep.mubr.bf16.mxu0 %v9908_v25  ;;  %6088 = vmatprep.subr.bf16.mxu1 %v6797_v26 }
 0x2b4   :  { %1747 = vmatmul.mubr.bf16.gmra.mrb[168].mxu1 %v987_v15  ;;  %v679_v15 = vrot.slane %v9935_v46, 1  ;;  %v682_v46 = vrot.slane %v8677_v16, 1 }
 0x2b5   :  { %5743 = vmatprep.mubr.msk.bf16.mxu1 %vm1143_vm0, %v990_v19  ;;  %6089 = vmatpush3.bf16.msra.mxu1 %v6797_v26  ;;  %v8953_v19 = vpop.f32.mrb[28].mxu1 }
 0x2b6   :  { %v722_v5 = vsel %vm702_vm1, %v679_v15, %v681_v54  ;;  %v724_v26 = vsel %vm702_vm1, %v677_v12, %v679_v15  ;;  %v683_v12 = vrot.slane %v8655_v22, 1  ;;  %v685_v15 = vrot.slane %v8679_v10, 1 }
 0x2b7   :  { %v992_v36 = vpack.c.bf16 %v722_v5, %v724_v26  ;;  %v717_v22 = vsel %vm702_vm1, %v682_v46, %v684_v23  ;;  %v719_v16 = vsel %vm702_vm1, %v680_v3, %v682_v46  ;;  %v688_v3 = vrot.slane %v8727_v28, 1  ;;  %v6781_v46 = vld [vmem:[#allocation8 + $0x40] sm:$0xff]  }
 0x2b8   :  { %v718_v5 = vsel %vm702_vm1, %v683_v12, %v685_v15  ;;  %v720_v26 = vsel %vm702_vm1, %v681_v54, %v683_v12  ;;  %v993_v56 = vpack.c.bf16 %v717_v22, %v719_v16  ;;  %v687_v54 = vrot.slane %v8681_v7, 1 }
 0x2b9   :  { %v994_v14 = vpack.c.bf16 %v718_v5, %v720_v26  ;;  %v689_v12 = vrot.slane %v8705_v9, 1 }
 0x2ba   :  { %3189 = vmatmul.mubr.bf16.gmra.mrb[20].mxu0 %v6778_v41  ;;  %v6779_v41 = vld [vmem:[#allocation8 + $0x30] sm:$0xff]   ;;  %v716_v26 = vsel %vm702_vm1, %v685_v15, %v687_v54  ;;  %v691_v15 = vrot.slane %v8707_v55, 1 }
 0x2bb   :  { %3198 = vmatprep.mubr.bf16.mxu0 %v9908_v25  ;;  %v714_v5 = vsel %vm702_vm1, %v687_v54, %v689_v12  ;;  %v693_v54 = vrot.slane %v8731_v37, 1 }
 0x2bc   :  { %1757 = vmatmul.mubr.bf16.gmra.mrb[172].mxu1 %v989_v2  ;;  %v8956_v2 = vpop.f32.mrb[29].mxu1  ;;  %v996_v28 = vpack.c.bf16 %v714_v5, %v716_v26  ;;  %v712_v26 = vsel %vm702_vm1, %v689_v12, %v691_v15  ;;  %v695_v12 = vrot.slane %v8733_v57, 1 }
 0x2bd   :  { %5744 = vmatprep.mubr.msk.bf16.mxu1 %vm1143_vm0, %v992_v36  ;;  %v710_v5 = vsel %vm702_vm1, %v691_v15, %v693_v54  ;;  %v697_v15 = vrot.slane %v8759_v63, 1 }
 0x2be   :  { %v708_v57 = vsel %vm702_vm1, %v693_v54, %v695_v12 }
 0x2c2   :  { %3199 = vmatmul.mubr.bf16.gmra.mrb[24].mxu0 %v6779_v41  ;;  %v8962_v41 = vpop.f32.mrb[30].mxu1 }
 0x2c3   :  { %3208 = vmatprep.mubr.bf16.mxu0 %v9908_v25  ;;  %v8973_v10 = vpop.f32.mrb[31].mxu1 }
 0x2c4   :  { %1767 = vmatmul.mubr.bf16.gmra.mrb[176].mxu1 %v991_v27  ;;  %v8975_v34 = vpop.f32.mrb[32].mxu1  ;;  %v686_v27 = vrot.slane %v8703_v31, 1 }
 0x2c5   :  { %5745 = vmatprep.mubr.msk.bf16.mxu1 %vm1143_vm0, %v994_v14  ;;  %v8978_v36 = vpop.f32.mrb[33].mxu1 }
 0x2c6   :  { %v713_v7 = vsel %vm702_vm1, %v686_v27, %v688_v3  ;;  %v715_v31 = vsel %vm702_vm1, %v684_v23, %v686_v27  ;;  %v692_v23 = vrot.slane %v8753_v8, 1  ;;  %v6782_v27 = vld [vmem:[#allocation8 + $0x48] sm:$0xff]   ;;  %v998_v8 = vpack.c.bf16 %v710_v5, %v712_v26 }
 0x2c7   :  { %v995_v22 = vpack.c.bf16 %v713_v7, %v715_v31  ;;  %v706_v26 = vsel %vm702_vm1, %v695_v12, %v697_v15 }
 0x2ca   :  { %3209 = vmatmul.mubr.bf16.gmra.mrb[28].mxu0 %v6780_v49  ;;  %v8984_v49 = vpop.f32.mrb[34].mxu1 }
 0x2cb   :  { %3218 = vmatprep.mubr.bf16.mxu0 %v9908_v25  ;;  %v8995_v9 = vpop.f32.mrb[35].mxu1 }
 0x2cc   :  { %1777 = vmatmul.mubr.bf16.gmra.mrb[180].mxu1 %v993_v56  ;;  %v8997_v16 = vpop.f32.mrb[36].mxu1  ;;  %v690_v56 = vrot.slane %v8729_v18, 1 }
 0x2cd   :  { %5746 = vmatprep.mubr.msk.bf16.mxu1 %vm1143_vm0, %v996_v28  ;;  %v9000_v14 = vpop.f32.mrb[37].mxu1 }
 0x2ce   :  { %v709_v55 = vsel %vm702_vm1, %v690_v56, %v692_v23  ;;  %v711_v18 = vsel %vm702_vm1, %v688_v3, %v690_v56  ;;  %v694_v3 = vrot.slane %v8755_v43, 1  ;;  %v696_v56 = vrot.slane %v8779_v33, 1 }
 0x2cf   :  { %v997_v7 = vpack.c.bf16 %v709_v55, %v711_v18  ;;  %v1000_v55 = vpack.c.bf16 %v706_v26, %v708_v57  ;;  %v699_v33 = vrot.slane %v8757_v48, 1  ;;  %v6785_v18 = vld [vmem:[#allocation8 + $0x58] sm:$0xff]   ;;  %v9938_v26 = vmov 0  }
 0x2d0   :  { %v705_v63 = vsel %vm702_vm1, %v694_v3, %v696_v56  ;;  %v707_v43 = vsel %vm702_vm1, %v692_v23, %v694_v3  ;;  %v6805_v23 = vld [vmem:[#allocation13 + $0x28] sm:$0xff]  }
 0x2d1   :  { %v704_v48 = vsel %vm702_vm1, %v697_v15, %v699_v33  ;;  %v6806_v15 = vld [vmem:[#allocation13 + $0x30] sm:$0xff]  }
 0x2d2   :  { %3219 = vmatmul.mubr.bf16.gmra.mrb[32].mxu0 %v6781_v46  ;;  %v9006_v46 = vpop.f32.mrb[38].mxu1 }
 0x2d3   :  { %3228 = vmatprep.mubr.bf16.mxu0 %v9908_v25  ;;  %v9017_v37 = vpop.f32.mrb[39].mxu1 }
 0x2d4   :  { %1787 = vmatmul.mubr.bf16.gmra.mrb[184].mxu1 %v995_v22  ;;  %v9019_v31 = vpop.f32.mrb[40].mxu1  ;;  %v6784_v22 = vld [vmem:[#allocation8 + $0x50] sm:$0xff]  }
 0x2d5   :  { %5747 = vmatprep.mubr.msk.bf16.mxu1 %vm1143_vm0, %v998_v8  ;;  %v9022_v28 = vpop.f32.mrb[41].mxu1  ;;  %v999_v8 = vpack.c.bf16 %v705_v63, %v707_v43  ;;  %v6786_v43 = vld [vmem:[#allocation8 + $0x60] sm:$0xff]  }
 0x2da   :  { %3229 = vmatmul.mubr.bf16.gmra.mrb[36].mxu0 %v6782_v27  ;;  %v9028_v27 = vpop.f32.mrb[42].mxu1 }
 0x2db   :  { %3238 = vmatprep.mubr.bf16.mxu0 %v9908_v25  ;;  %v9031_v5 = vpop.f32.mrb[43].mxu1 }
 0x2dc   :  { %1797 = vmatmul.mubr.bf16.gmra.mrb[188].mxu1 %v997_v7  ;;  %v6803_v7 = vld [vmem:[#allocation13 + $0x20] sm:$0xff]   ;;  %v9051_v3 = vpop.f32.mrb[44].mxu1 }
 0x2dd   :  { %5748 = vmatprep.mubr.msk.bf16.mxu1 %vm1143_vm0, %v1000_v55  ;;  %6090 = vmatprep.subr.bf16.mxu1 %v6803_v7  ;;  %v9939_v55 = vld [vmem:[#allocation32_spill] sm:$0xff] }
 0x2de   :  { %6091 = vmatpush3.bf16.msra.mxu1 %v6803_v7 }
 0x2df   :  { %6092 = vmatprep.subr.bf16.mxu1 %v6805_v23 }
 0x2e2   :  { %3239 = vmatmul.mubr.bf16.gmra.mrb[40].mxu0 %v6784_v22  ;;  %v698_v22 = vrot.slane %v8781_v50, 1  ;;  %6093 = vmatpush3.bf16.msra.mxu1 %v6805_v23 }
 0x2e3   :  { %3248 = vmatprep.mubr.bf16.mxu0 %v9908_v25  ;;  %v9936_v25 = vld [vmem:[#allocation31_spill] sm:$0xff]  ;;  %6094 = vmatprep.subr.bf16.mxu1 %v6806_v15 }
 0x2e4   :  { %1807 = vmatmul.mubr.bf16.gmra.mrb[192].mxu1 %v999_v8  ;;  %v9937_v54 = vrot.slane %v9936_v25, 1  ;;  %v703_v50 = vsel %vm702_vm1, %v696_v56, %v698_v22  ;;  %v9940_v25 = vrot.slane %v9939_v55, 1  ;;  %v6787_v56 = vld [vmem:[#allocation8 + $0x68] sm:$0xff]  }
 0x2e6   :  { %v902_v12 = vsel %vm702_vm1, %v699_v33, %v9937_v54  ;;  %v901_v63 = vsel %vm702_vm1, %v698_v22, %v9940_v25  ;;  %6095 = vmatpush3.bf16.msra.mxu1 %v6806_v15 }
 0x2e7   :  { %v1002_v57 = vpack.c.bf16 %v902_v12, %v704_v48  ;;  %v1001_v8 = vpack.c.bf16 %v901_v63, %v703_v50  ;;  %6096 = vmatprep.subr.bf16.mxu1 %v6808_v1 }
 0x2e9   :  { %5749 = vmatprep.mubr.msk.bf16.mxu1 %vm1143_vm0, %v1002_v57  ;;  %v6788_v57 = vld [vmem:[#allocation8 + $0x70] sm:$0xff]  }
 0x2ea   :  { %3249 = vmatmul.mubr.bf16.gmra.mrb[44].mxu0 %v6785_v18  ;;  %v9059_v18 = vpop.f32.mrb[45].mxu1  ;;  %6097 = vmatpush3.bf16.msra.mxu1 %v6808_v1 }
 0x2eb   :  { %3258 = vmatprep.mubr.bf16.mxu0 %v9938_v26  ;;  %v9061_v7 = vpop.f32.mrb[46].mxu1 }
 0x2ec   :  { %v9064_v33 = vpop.f32.mrb[47].mxu1  ;;  %1817 = vmatmul.mubr.bf16.gmra.mrb[196].mxu1 %v1001_v8 }
 0x2ed   :  { %v9067_v22 = vpop.f32.mrb[48].mxu1 }
 0x2ee   :  { %9941 = vst [vmem:[#allocation38_spill] sm:$0xff] %v9067_v22  ;;  %v9069_v54 = vpop.f32.mrb[49].mxu1 }
 0x2ef   :  { %9942 = vst [vmem:[#allocation33_spill] sm:$0xff] %v9069_v54  ;;  %v9071_v12 = vpop.f32.mrb[50].mxu1 }
 0x2f0   :  { %9943 = vst [vmem:[#allocation34_spill] sm:$0xff] %v9071_v12  ;;  %v9073_v23 = vpop.f32.mrb[51].mxu1 }
 0x2f1   :  { %9944 = vst [vmem:[#allocation35_spill] sm:$0xff] %v9073_v23  ;;  %v9076_v48 = vpop.f32.mrb[52].mxu1 }
 0x2f2   :  { %3259 = vmatmul.mubr.bf16.gmra.mrb[48].mxu0 %v6786_v43  ;;  %9945 = vst [vmem:[#allocation36_spill] sm:$0xff] %v9076_v48  ;;  %v9078_v50 = vpop.f32.mrb[53].mxu1  ;;  %v6789_v43 = vld [vmem:[#allocation8 + $0x78] sm:$0xff]  }
 0x2f3   :  { %3268 = vmatprep.mubr.bf16.mxu0 %v9938_v26  ;;  %9946 = vst [vmem:[#allocation37_spill] sm:$0xff] %v9078_v50  ;;  %v9080_v55 = vpop.f32.mrb[54].mxu1 }
 0x2f4   :  { %9947 = vst [vmem:[#allocation31_spill] sm:$0xff] %v9080_v55  ;;  %v9082_v25 = vpop.f32.mrb[55].mxu1  ;;  %v6791_v55 = vld [vmem:[#allocation8 + $0x80] sm:$0xff]  }
 0x2f5   :  { %9948 = vst [vmem:[#allocation32_spill] sm:$0xff] %v9082_v25  ;;  %v9085_v63 = vpop.f32.mrb[56].mxu1 }
 0x2f6   :  { %9949 = vst [vmem:[#allocation39_spill] sm:$0xff] %v9085_v63  ;;  %v9087_v8 = vpop.f32.mrb[57].mxu1 }
 0x2f7   :  { %9950 = vst [vmem:[#allocation40_spill] sm:$0xff] %v9087_v8  ;;  %v9089_v15 = vpop.f32.mrb[58].mxu1 }
 0x2f8   :  { %9951 = vst [vmem:[#allocation41_spill] sm:$0xff] %v9089_v15  ;;  %v9091_v1 = vpop.f32.mrb[59].mxu1  ;;  %v6792_v15 = vld [vmem:[#allocation8 + $0x88] sm:$0xff]  }
 0x2f9   :  { %9952 = vst [vmem:[#allocation42_spill] sm:$0xff] %v9091_v1 }
 0x2fa   :  { %3269 = vmatmul.mubr.bf16.gmra.mrb[52].mxu0 %v6787_v56  ;;  %v9094_v56 = vpop.f32.mrb[60].mxu1 }
 0x2fb   :  { %3278 = vmatprep.mubr.bf16.mxu0 %v9938_v26  ;;  %9953 = vst [vmem:[#allocation43_spill] sm:$0xff] %v9094_v56  ;;  %v9096_v50 = vpop.f32.mrb[61].mxu1 }
 0x2fc   :  { %9954 = vst [vmem:[#allocation44_spill] sm:$0xff] %v9096_v50 }
 0x302   :  { %3279 = vmatmul.mubr.bf16.gmra.mrb[56].mxu0 %v6788_v57  ;;  %v9098_v57 = vpop.f32.mrb[62].mxu1 }
 0x303   :  { %3288 = vmatprep.mubr.bf16.mxu0 %v9938_v26  ;;  %9955 = vst [vmem:[#allocation45_spill] sm:$0xff] %v9098_v57  ;;  %v9100_v25 = vpop.f32.mrb[63].mxu1  ;;  %v6793_v57 = vld [vmem:[#allocation8 + $0x90] sm:$0xff]  }
 0x304   :  { %9956 = vst [vmem:[#allocation46_spill] sm:$0xff] %v9100_v25  ;;  %v9103_v8 = vpop.f32.mrb[64].mxu1 }
 0x305   :  { %9957 = vst [vmem:[#allocation47_spill] sm:$0xff] %v9103_v8  ;;  %v9105_v63 = vpop.f32.mrb[65].mxu1 }
 0x306   :  { %9958 = vst [vmem:[#allocation48_spill] sm:$0xff] %v9105_v63 }
 0x30a   :  { %3289 = vmatmul.mubr.bf16.gmra.mrb[60].mxu0 %v6789_v43  ;;  %v9107_v43 = vpop.f32.mrb[66].mxu1 }
 0x30b   :  { %3298 = vmatprep.mubr.bf16.mxu0 %v9938_v26  ;;  %9959 = vst [vmem:[#allocation49_spill] sm:$0xff] %v9107_v43  ;;  %v9109_v1 = vpop.f32.mrb[67].mxu1  ;;  %v6794_v43 = vld [vmem:[#allocation8 + $0x98] sm:$0xff]  }
 0x30c   :  { %9960 = vst [vmem:[#allocation50_spill] sm:$0xff] %v9109_v1  ;;  %v9112_v50 = vpop.f32.mrb[68].mxu1 }
 0x30d   :  { %9961 = vst [vmem:[#allocation51_spill] sm:$0xff] %v9112_v50  ;;  %v9114_v56 = vpop.f32.mrb[69].mxu1 }
 0x30e   :  { %9962 = vst [vmem:[#allocation52_spill] sm:$0xff] %v9114_v56 }
 0x312   :  { %3299 = vmatmul.mubr.bf16.gmra.mrb[64].mxu0 %v6791_v55  ;;  %v9116_v55 = vpop.f32.mrb[70].mxu1 }
 0x313   :  { %3308 = vmatprep.mubr.bf16.mxu0 %v9938_v26  ;;  %9963 = vst [vmem:[#allocation53_spill] sm:$0xff] %v9116_v55  ;;  %v9118_v25 = vpop.f32.mrb[71].mxu1  ;;  %v6795_v55 = vld [vmem:[#allocation8 + $0xa0] sm:$0xff]  }
 0x314   :  { %9964 = vst [vmem:[#allocation54_spill] sm:$0xff] %v9118_v25  ;;  %v9121_v63 = vpop.f32.mrb[72].mxu1 }
 0x315   :  { %9965 = vst [vmem:[#allocation55_spill] sm:$0xff] %v9121_v63  ;;  %v9123_v8 = vpop.f32.mrb[73].mxu1 }
 0x316   :  { %9966 = vst [vmem:[#allocation56_spill] sm:$0xff] %v9123_v8 }
 0x31a   :  { %3309 = vmatmul.mubr.bf16.gmra.mrb[68].mxu0 %v6792_v15  ;;  %v9125_v15 = vpop.f32.mrb[74].mxu1 }
 0x31b   :  { %3318 = vmatprep.mubr.bf16.mxu0 %v9938_v26  ;;  %9967 = vst [vmem:[#allocation57_spill] sm:$0xff] %v9125_v15  ;;  %v9127_v1 = vpop.f32.mrb[75].mxu1  ;;  %v6796_v15 = vld [vmem:[#allocation8 + $0xa8] sm:$0xff]  }
 0x31c   :  { %9968 = vst [vmem:[#allocation58_spill] sm:$0xff] %v9127_v1  ;;  %v9130_v56 = vpop.f32.mrb[76].mxu1 }
 0x31d   :  { %9969 = vst [vmem:[#allocation59_spill] sm:$0xff] %v9130_v56  ;;  %v9132_v50 = vpop.f32.mrb[77].mxu1 }
 0x31e   :  { %9970 = vst [vmem:[#allocation60_spill] sm:$0xff] %v9132_v50 }
 0x322   :  { %3319 = vmatmul.mubr.bf16.gmra.mrb[72].mxu0 %v6793_v57  ;;  %v9134_v57 = vpop.f32.mrb[78].mxu1 }
 0x323   :  { %3328 = vmatprep.mubr.bf16.mxu0 %v9938_v26  ;;  %9971 = vst [vmem:[#allocation61_spill] sm:$0xff] %v9134_v57  ;;  %v9136_v25 = vpop.f32.mrb[79].mxu1  ;;  %v6798_v57 = vld [vmem:[#allocation8 + $0xb0] sm:$0xff]  }
 0x324   :  { %9972 = vst [vmem:[#allocation62_spill] sm:$0xff] %v9136_v25  ;;  %v9139_v8 = vpop.f32.mrb[80].mxu1 }
 0x325   :  { %9973 = vst [vmem:[#allocation63_spill] sm:$0xff] %v9139_v8  ;;  %v9141_v63 = vpop.f32.mrb[81].mxu1 }
 0x326   :  { %9974 = vst [vmem:[#allocation64_spill] sm:$0xff] %v9141_v63 }
 0x32a   :  { %3329 = vmatmul.mubr.bf16.gmra.mrb[76].mxu0 %v6794_v43  ;;  %v9143_v43 = vpop.f32.mrb[82].mxu1 }
 0x32b   :  { %3338 = vmatprep.mubr.bf16.mxu0 %v9938_v26  ;;  %9975 = vst [vmem:[#allocation65_spill] sm:$0xff] %v9143_v43  ;;  %v9145_v1 = vpop.f32.mrb[83].mxu1  ;;  %v6799_v43 = vld [vmem:[#allocation8 + $0xb8] sm:$0xff]  }
 0x32c   :  { %9976 = vst [vmem:[#allocation66_spill] sm:$0xff] %v9145_v1  ;;  %v9148_v50 = vpop.f32.mrb[84].mxu1 }
 0x32d   :  { %9977 = vst [vmem:[#allocation67_spill] sm:$0xff] %v9148_v50  ;;  %v9150_v56 = vpop.f32.mrb[85].mxu1 }
 0x32e   :  { %9978 = vst [vmem:[#allocation68_spill] sm:$0xff] %v9150_v56 }
 0x332   :  { %3339 = vmatmul.mubr.bf16.gmra.mrb[80].mxu0 %v6795_v55  ;;  %v9152_v55 = vpop.f32.mrb[86].mxu1 }
 0x333   :  { %3348 = vmatprep.mubr.bf16.mxu0 %v9938_v26  ;;  %9979 = vst [vmem:[#allocation69_spill] sm:$0xff] %v9152_v55  ;;  %v9154_v25 = vpop.f32.mrb[87].mxu1  ;;  %v6800_v55 = vld [vmem:[#allocation8 + $0xc0] sm:$0xff]  }
 0x334   :  { %9980 = vst [vmem:[#allocation70_spill] sm:$0xff] %v9154_v25  ;;  %v9157_v63 = vpop.f32.mrb[88].mxu1 }
 0x335   :  { %9981 = vst [vmem:[#allocation71_spill] sm:$0xff] %v9157_v63  ;;  %v9159_v8 = vpop.f32.mrb[89].mxu1 }
 0x336   :  { %9982 = vst [vmem:[#allocation72_spill] sm:$0xff] %v9159_v8 }
 0x33a   :  { %3349 = vmatmul.mubr.bf16.gmra.mrb[84].mxu0 %v6796_v15  ;;  %v9161_v15 = vpop.f32.mrb[90].mxu1 }
 0x33b   :  { %3358 = vmatprep.mubr.bf16.mxu0 %v9938_v26  ;;  %9983 = vst [vmem:[#allocation73_spill] sm:$0xff] %v9161_v15  ;;  %v9163_v1 = vpop.f32.mrb[91].mxu1  ;;  %v6801_v15 = vld [vmem:[#allocation8 + $0xc8] sm:$0xff]  }
 0x33c   :  { %9984 = vst [vmem:[#allocation74_spill] sm:$0xff] %v9163_v1  ;;  %v9166_v56 = vpop.f32.mrb[92].mxu1 }
 0x33d   :  { %9985 = vst [vmem:[#allocation75_spill] sm:$0xff] %v9166_v56  ;;  %v9168_v50 = vpop.f32.mrb[93].mxu1 }
 0x33e   :  { %9986 = vst [vmem:[#allocation76_spill] sm:$0xff] %v9168_v50 }
 0x342   :  { %3359 = vmatmul.mubr.bf16.gmra.mrb[88].mxu0 %v6798_v57  ;;  %v9170_v57 = vpop.f32.mrb[94].mxu1 }
 0x343   :  { %3368 = vmatprep.mubr.bf16.mxu0 %v9938_v26  ;;  %9987 = vst [vmem:[#allocation77_spill] sm:$0xff] %v9170_v57  ;;  %v9172_v25 = vpop.f32.mrb[95].mxu1  ;;  %v6802_v57 = vld [vmem:[#allocation8 + $0xd0] sm:$0xff]  }
 0x344   :  { %9988 = vst [vmem:[#allocation78_spill] sm:$0xff] %v9172_v25  ;;  %v9175_v8 = vpop.f32.mrb[96].mxu1 }
 0x345   :  { %9989 = vst [vmem:[#allocation79_spill] sm:$0xff] %v9175_v8  ;;  %v9177_v63 = vpop.f32.mrb[97].mxu1 }
 0x346   :  { %9990 = vst [vmem:[#allocation80_spill] sm:$0xff] %v9177_v63 }
 0x34a   :  { %3369 = vmatmul.mubr.bf16.gmra.mrb[92].mxu0 %v6799_v43  ;;  %v9179_v43 = vpop.f32.mrb[98].mxu1 }
 0x34b   :  { %3378 = vmatprep.mubr.bf16.mxu0 %v9938_v26  ;;  %9991 = vst [vmem:[#allocation81_spill] sm:$0xff] %v9179_v43  ;;  %v9181_v1 = vpop.f32.mrb[99].mxu1  ;;  %v6804_v43 = vld [vmem:[#allocation8 + $0xd8] sm:$0xff]  }
 0x34c   :  { %9992 = vst [vmem:[#allocation82_spill] sm:$0xff] %v9181_v1  ;;  %v9184_v50 = vpop.f32.mrb[100].mxu1 }
 0x34d   :  { %9993 = vst [vmem:[#allocation83_spill] sm:$0xff] %v9184_v50  ;;  %v9186_v56 = vpop.f32.mrb[101].mxu1 }
 0x34e   :  { %9994 = vst [vmem:[#allocation84_spill] sm:$0xff] %v9186_v56 }
 0x352   :  { %3379 = vmatmul.mubr.bf16.gmra.mrb[96].mxu0 %v6800_v55  ;;  %v9188_v55 = vpop.f32.mrb[102].mxu1 }
 0x353   :  { %3388 = vmatprep.mubr.bf16.mxu0 %v9938_v26  ;;  %9995 = vst [vmem:[#allocation85_spill] sm:$0xff] %v9188_v55  ;;  %v9190_v25 = vpop.f32.mrb[103].mxu1 }
 0x354   :  { %9996 = vst [vmem:[#allocation86_spill] sm:$0xff] %v9190_v25  ;;  %v9193_v8 = vpop.f32.mrb[104].mxu1 }
 0x355   :  { %9997 = vst [vmem:[#allocation87_spill] sm:$0xff] %v9193_v8  ;;  %v9196_v48 = vpop.f32.mrb[105].mxu1 }
 0x356   :  { %9998 = vst [vmem:[#allocation88_spill] sm:$0xff] %v9196_v48  ;;  %v9199_v56 = vpop.f32.mrb[106].mxu1 }
 0x357   :  { %9999 = vst [vmem:[#allocation89_spill] sm:$0xff] %v9199_v56  ;;  %v9202_v12 = vpop.f32.mrb[107].mxu1 }
 0x358   :  { %10000 = vst [vmem:[#allocation90_spill] sm:$0xff] %v9202_v12 }
 0x35a   :  { %3389 = vmatmul.mubr.bf16.gmra.mrb[100].mxu0 %v6801_v15 }
 0x35b   :  { %3398 = vmatprep.mubr.bf16.mxu0 %v9938_v26 }
 0x362   :  { %3399 = vmatmul.mubr.bf16.gmra.mrb[104].mxu0 %v6802_v57 }
 0x363   :  { %3408 = vmatprep.mubr.bf16.mxu0 %v9938_v26 }
 0x365   :  { %v3140_v63 = vpop.f32.mrb[0].mxu0 }
 0x366   :  { %v6266_v1 = vadd.f32 %v3140_v63, %v8798_v45  ;;  %v3142_v15 = vpop.f32.mrb[1].mxu0 }
 0x367   :  { %v6267_v50 = vadd.f32 %v3142_v15, %v8801_v42  ;;  %v3144_v23 = vpop.f32.mrb[2].mxu0  ;;  %v9206_v15 = vpop.f32.mrb[108].mxu1 }
 0x368   :  { %v3839_v55 = vmul.f32 %v6266_v1, %v6266_v1  ;;  %v6268_v25 = vadd.f32 %v3144_v23, %v8808_v29  ;;  %v3146_v57 = vpop.f32.mrb[3].mxu0  ;;  %v6807_v29 = vld [vmem:[#allocation8 + $0xe0] sm:$0xff]   ;;  %v9209_v23 = vpop.f32.mrb[109].mxu1 }
 0x369   :  { %v3939_v54 = vmul.f32 %v6267_v50, %v6267_v50  ;;  %v6269_v8 = vadd.f32 %v3146_v57, %v8819_v4 }
 0x36a   :  { %v3840_v22 = vmul.f32 %v6268_v25, %v6268_v25  ;;  %3409 = vmatmul.mubr.bf16.gmra.mrb[108].mxu0 %v6804_v43  ;;  %v9212_v25 = vpop.f32.mrb[110].mxu1 }
 0x36b   :  { %v4039_v45 = vadd.f32 %v3939_v54, %v3839_v55  ;;  %v3940_v63 = vmul.f32 %v6269_v8, %v6269_v8  ;;  %3418 = vmatprep.mubr.bf16.mxu0 %v9938_v26 }
 0x36d   :  { %v4040_v48 = vadd.f32 %v3940_v63, %v3840_v22  ;;  %v3150_v42 = vpop.f32.mrb[4].mxu0  ;;  %v9215_v22 = vpop.f32.mrb[111].mxu1 }
 0x36e   :  { %v6270_v1 = vadd.f32 %v3150_v42, %v8821_v59  ;;  %v3152_v56 = vpop.f32.mrb[5].mxu0 }
 0x36f   :  { %v6271_v50 = vadd.f32 %v3152_v56, %v8824_v58  ;;  %v3154_v12 = vpop.f32.mrb[6].mxu0  ;;  %v4139_v4 = vpack.c.bf16 %v4040_v48, %v4039_v45  ;;  %v9219_v58 = vpop.f32.mrb[112].mxu1 }
 0x370   :  { %v3841_v54 = vmul.f32 %v6270_v1, %v6270_v1  ;;  %v6272_v8 = vadd.f32 %v3154_v12, %v8830_v6  ;;  %v3156_v43 = vpop.f32.mrb[7].mxu0  ;;  %v9221_v45 = vpop.f32.mrb[113].mxu1  ;;  %v6809_v1 = vld [vmem:[#allocation8 + $0xe8] sm:$0xff]  }
 0x371   :  { %v3941_v55 = vmul.f32 %v6271_v50, %v6271_v50  ;;  %v6273_v57 = vadd.f32 %v3156_v43, %v8841_v20  ;;  %6098 = vmatprep.mubr.bf16.mxu1 %v4139_v4  ;;  %v9224_v50 = vpop.f32.mrb[114].mxu1 }
 0x372   :  { %v3842_v59 = vmul.f32 %v6272_v8, %v6272_v8  ;;  %3419 = vmatmul.mubr.bf16.gmra.mrb[112].mxu0 %v6807_v29 }
 0x373   :  { %v4041_v63 = vadd.f32 %v3941_v55, %v3841_v54  ;;  %v3942_v42 = vmul.f32 %v6273_v57, %v6273_v57  ;;  %3428 = vmatprep.mubr.bf16.mxu0 %v9938_v26  ;;  %v9227_v54 = vpop.f32.mrb[115].mxu1 }
 0x374   :  { %v9230_v57 = vpop.f32.mrb[116].mxu1 }
 0x375   :  { %v4042_v48 = vadd.f32 %v3942_v42, %v3842_v59  ;;  %v3160_v56 = vpop.f32.mrb[8].mxu0 }
 0x376   :  { %v6274_v6 = vadd.f32 %v3160_v56, %v8843_v44  ;;  %v3162_v12 = vpop.f32.mrb[9].mxu0  ;;  %v9233_v44 = vpop.f32.mrb[117].mxu1 }
 0x377   :  { %v4140_v20 = vpack.c.bf16 %v4042_v48, %v4041_v63  ;;  %v6275_v4 = vadd.f32 %v3162_v12, %v8846_v21  ;;  %v3164_v29 = vpop.f32.mrb[10].mxu0  ;;  %v9235_v63 = vpop.f32.mrb[118].mxu1 }
 0x378   :  { %v3843_v8 = vmul.f32 %v6274_v6, %v6274_v6  ;;  %v6276_v43 = vadd.f32 %v3164_v29, %v8852_v47  ;;  %v3166_v55 = vpop.f32.mrb[11].mxu0  ;;  %10001 = vst [vmem:[#allocation91_spill] sm:$0xff] %v9235_v63  ;;  %v9238_v6 = vpop.f32.mrb[119].mxu1 }
 0x379   :  { %v3943_v59 = vmul.f32 %v6275_v4, %v6275_v4  ;;  %v6277_v42 = vadd.f32 %v3166_v55, %v8863_v0  ;;  %6099 = vmatmul.mubr.bf16.vlgmr.msra.gmra.mrb[200].mxu1 %v4140_v20  ;;  %10002 = vst [vmem:[#allocation92_spill] sm:$0xff] %v9238_v6  ;;  %v9240_v47 = vpop.f32.mrb[120].mxu1  ;;  %v6810_v55 = vld [vmem:[#allocation8 + $0xf0] sm:$0xff]  }
 0x37a   :  { %v3844_v56 = vmul.f32 %v6276_v43, %v6276_v43  ;;  %3429 = vmatmul.mubr.bf16.gmra.mrb[116].mxu0 %v6809_v1  ;;  %10003 = vst [vmem:[#allocation93_spill] sm:$0xff] %v9240_v47  ;;  %v9242_v4 = vpop.f32.mrb[121].mxu1 }
 0x37b   :  { %v4043_v21 = vadd.f32 %v3943_v59, %v3843_v8  ;;  %v3944_v48 = vmul.f32 %v6277_v42, %v6277_v42  ;;  %3438 = vmatprep.mubr.bf16.mxu0 %v9938_v26  ;;  %10004 = vst [vmem:[#allocation94_spill] sm:$0xff] %v9242_v4  ;;  %v9245_v43 = vpop.f32.mrb[122].mxu1 }
 0x37c   :  { %10005 = vst [vmem:[#allocation95_spill] sm:$0xff] %v9245_v43  ;;  %v9248_v42 = vpop.f32.mrb[123].mxu1 }
 0x37d   :  { %v4044_v12 = vadd.f32 %v3944_v48, %v3844_v56  ;;  %v3170_v29 = vpop.f32.mrb[12].mxu0  ;;  %v9251_v56 = vpop.f32.mrb[124].mxu1 }
 0x37e   :  { %v6278_v0 = vadd.f32 %v3170_v29, %v8865_v51  ;;  %v3172_v20 = vpop.f32.mrb[13].mxu0  ;;  %v9254_v51 = vpop.f32.mrb[125].mxu1 }
 0x37f   :  { %v6279_v1 = vadd.f32 %v3172_v20, %v8868_v32  ;;  %v3174_v8 = vpop.f32.mrb[14].mxu0  ;;  %v4141_v59 = vpack.c.bf16 %v4044_v12, %v4043_v21  ;;  %v9256_v43 = vpop.f32.mrb[126].mxu1 }
 0x380   :  { %v3845_v63 = vmul.f32 %v6278_v0, %v6278_v0  ;;  %v6280_v6 = vadd.f32 %v3174_v8, %v8874_v52  ;;  %v3176_v47 = vpop.f32.mrb[15].mxu0  ;;  %v9259_v12 = vpop.f32.mrb[127].mxu1  ;;  %v6811_v8 = vld [vmem:[#allocation8 + $0xf8] sm:$0xff]  }
 0x381   :  { %v3945_v48 = vmul.f32 %v6279_v1, %v6279_v1  ;;  %v6281_v4 = vadd.f32 %v3176_v47, %v8885_v53  ;;  %6102 = vmatprep.mubr.bf16.mxu1 %v4141_v59  ;;  %10006 = vst [vmem:[#allocation96_spill] sm:$0xff] %v9259_v12  ;;  %v9261_v52 = vpop.f32.mrb[128].mxu1 }
 0x382   :  { %v3846_v29 = vmul.f32 %v6280_v6, %v6280_v6  ;;  %3439 = vmatmul.mubr.bf16.gmra.mrb[120].mxu0 %v6810_v55  ;;  %10007 = vst [vmem:[#allocation97_spill] sm:$0xff] %v9261_v52  ;;  %v9263_v1 = vpop.f32.mrb[129].mxu1 }
 0x383   :  { %v4045_v32 = vadd.f32 %v3945_v48, %v3845_v63  ;;  %v3946_v21 = vmul.f32 %v6281_v4, %v6281_v4  ;;  %3448 = vmatprep.mubr.bf16.mxu0 %v9938_v26  ;;  %10008 = vst [vmem:[#allocation98_spill] sm:$0xff] %v9263_v1  ;;  %v9266_v6 = vpop.f32.mrb[130].mxu1 }
 0x384   :  { %10009 = vst [vmem:[#allocation99_spill] sm:$0xff] %v9266_v6  ;;  %v9269_v59 = vpop.f32.mrb[131].mxu1 }
 0x385   :  { %v4046_v0 = vadd.f32 %v3946_v21, %v3846_v29  ;;  %v3180_v20 = vpop.f32.mrb[16].mxu0  ;;  %v9272_v29 = vpop.f32.mrb[132].mxu1 }
 0x386   :  { %v6282_v53 = vadd.f32 %v3180_v20, %v8887_v13  ;;  %v3182_v47 = vpop.f32.mrb[17].mxu0  ;;  %v9275_v13 = vpop.f32.mrb[133].mxu1 }
 0x387   :  { %v6283_v55 = vadd.f32 %v3182_v47, %v8890_v30  ;;  %v3184_v63 = vpop.f32.mrb[18].mxu0  ;;  %v4142_v4 = vpack.c.bf16 %v4046_v0, %v4045_v32  ;;  %v9277_v6 = vpop.f32.mrb[134].mxu1 }
 0x388   :  { %v3847_v48 = vmul.f32 %v6282_v53, %v6282_v53  ;;  %v6284_v12 = vadd.f32 %v3184_v63, %v8896_v60  ;;  %v3186_v52 = vpop.f32.mrb[19].mxu0  ;;  %v9280_v0 = vpop.f32.mrb[135].mxu1  ;;  %v6812_v63 = vld [vmem:[#allocation8 + $0x100] sm:$0xff]  }
 0x389   :  { %v3947_v21 = vmul.f32 %v6283_v55, %v6283_v55  ;;  %v6285_v1 = vadd.f32 %v3186_v52, %v8907_v38  ;;  %6103 = vmatmul.mubr.bf16.gmra.mrb[204].mxu1 %v4142_v4  ;;  %10010 = vst [vmem:[#allocation100_spill] sm:$0xff] %v9280_v0  ;;  %v9282_v60 = vpop.f32.mrb[136].mxu1 }
 0x38a   :  { %v3848_v20 = vmul.f32 %v6284_v12, %v6284_v12  ;;  %3449 = vmatmul.mubr.bf16.gmra.mrb[124].mxu0 %v6811_v8  ;;  %10011 = vst [vmem:[#allocation101_spill] sm:$0xff] %v9282_v60  ;;  %v9284_v55 = vpop.f32.mrb[137].mxu1 }
 0x38b   :  { %v4047_v30 = vadd.f32 %v3947_v21, %v3847_v48  ;;  %v3948_v32 = vmul.f32 %v6285_v1, %v6285_v1  ;;  %3458 = vmatprep.mubr.bf16.mxu0 %v9938_v26  ;;  %10012 = vst [vmem:[#allocation102_spill] sm:$0xff] %v9284_v55  ;;  %v9287_v12 = vpop.f32.mrb[138].mxu1 }
 0x38c   :  { %10013 = vst [vmem:[#allocation103_spill] sm:$0xff] %v9287_v12  ;;  %v9290_v48 = vpop.f32.mrb[139].mxu1 }
 0x38d   :  { %v4048_v53 = vadd.f32 %v3948_v32, %v3848_v20  ;;  %v3190_v47 = vpop.f32.mrb[20].mxu0  ;;  %v9293_v20 = vpop.f32.mrb[140].mxu1 }
 0x38e   :  { %v6286_v38 = vadd.f32 %v3190_v47, %v8909_v39  ;;  %v3192_v52 = vpop.f32.mrb[21].mxu0  ;;  %v9296_v39 = vpop.f32.mrb[141].mxu1 }
 0x38f   :  { %v6287_v8 = vadd.f32 %v3192_v52, %v8912_v40  ;;  %v3194_v4 = vpop.f32.mrb[22].mxu0  ;;  %v4143_v1 = vpack.c.bf16 %v4048_v53, %v4047_v30  ;;  %v9298_v12 = vpop.f32.mrb[142].mxu1 }
 0x390   :  { %v3849_v21 = vmul.f32 %v6286_v38, %v6286_v38  ;;  %v6288_v0 = vadd.f32 %v3194_v4, %v8918_v61  ;;  %v3196_v60 = vpop.f32.mrb[23].mxu0  ;;  %v9301_v53 = vpop.f32.mrb[143].mxu1  ;;  %v6813_v4 = vld [vmem:[#allocation8 + $0x108] sm:$0xff]  }
 0x391   :  { %v3949_v32 = vmul.f32 %v6287_v8, %v6287_v8  ;;  %v6289_v55 = vadd.f32 %v3196_v60, %v8929_v24  ;;  %6106 = vmatprep.mubr.bf16.mxu1 %v4143_v1  ;;  %10014 = vst [vmem:[#allocation104_spill] sm:$0xff] %v9301_v53  ;;  %v9303_v61 = vpop.f32.mrb[144].mxu1 }
 0x392   :  { %v3850_v47 = vmul.f32 %v6288_v0, %v6288_v0  ;;  %3459 = vmatmul.mubr.bf16.gmra.mrb[128].mxu0 %v6812_v63  ;;  %10015 = vst [vmem:[#allocation105_spill] sm:$0xff] %v9303_v61  ;;  %v9305_v8 = vpop.f32.mrb[145].mxu1 }
 0x393   :  { %v4049_v40 = vadd.f32 %v3949_v32, %v3849_v21  ;;  %v3950_v30 = vmul.f32 %v6289_v55, %v6289_v55  ;;  %3468 = vmatprep.mubr.bf16.mxu0 %v9938_v26  ;;  %10016 = vst [vmem:[#allocation106_spill] sm:$0xff] %v9305_v8  ;;  %v9308_v0 = vpop.f32.mrb[146].mxu1 }
 0x394   :  { %10017 = vst [vmem:[#allocation107_spill] sm:$0xff] %v9308_v0  ;;  %v9311_v21 = vpop.f32.mrb[147].mxu1 }
 0x395   :  { %v4050_v38 = vadd.f32 %v3950_v30, %v3850_v47  ;;  %v3200_v52 = vpop.f32.mrb[24].mxu0  ;;  %v9314_v47 = vpop.f32.mrb[148].mxu1 }
 0x396   :  { %v6290_v24 = vadd.f32 %v3200_v52, %v8931_v17  ;;  %v3202_v60 = vpop.f32.mrb[25].mxu0  ;;  %v9317_v17 = vpop.f32.mrb[149].mxu1 }
 0x397   :  { %v6291_v63 = vadd.f32 %v3202_v60, %v8934_v11  ;;  %v3204_v1 = vpop.f32.mrb[26].mxu0  ;;  %v4144_v55 = vpack.c.bf16 %v4050_v38, %v4049_v40  ;;  %v9319_v0 = vpop.f32.mrb[150].mxu1 }
 0x398   :  { %v3851_v32 = vmul.f32 %v6290_v24, %v6290_v24  ;;  %v6292_v53 = vadd.f32 %v3204_v1, %v8940_v35  ;;  %v3206_v61 = vpop.f32.mrb[27].mxu0  ;;  %v9322_v38 = vpop.f32.mrb[151].mxu1  ;;  %v6814_v1 = vld [vmem:[#allocation8 + $0x110] sm:$0xff]  }
 0x399   :  { %v3951_v30 = vmul.f32 %v6291_v63, %v6291_v63  ;;  %v6293_v8 = vadd.f32 %v3206_v61, %v8951_v62  ;;  %6107 = vmatmul.mubr.bf16.gmra.mrb[208].mxu1 %v4144_v55  ;;  %10018 = vst [vmem:[#allocation108_spill] sm:$0xff] %v9322_v38  ;;  %v9324_v35 = vpop.f32.mrb[152].mxu1 }
 0x39a   :  { %v3852_v52 = vmul.f32 %v6292_v53, %v6292_v53  ;;  %3469 = vmatmul.mubr.bf16.gmra.mrb[132].mxu0 %v6813_v4  ;;  %10019 = vst [vmem:[#allocation109_spill] sm:$0xff] %v9324_v35  ;;  %v9326_v63 = vpop.f32.mrb[153].mxu1 }
 0x39b   :  { %v4051_v11 = vadd.f32 %v3951_v30, %v3851_v32  ;;  %v3952_v40 = vmul.f32 %v6293_v8, %v6293_v8  ;;  %3478 = vmatprep.mubr.bf16.mxu0 %v9938_v26  ;;  %10020 = vst [vmem:[#allocation110_spill] sm:$0xff] %v9326_v63  ;;  %v9329_v53 = vpop.f32.mrb[154].mxu1 }
 0x39c   :  { %10021 = vst [vmem:[#allocation111_spill] sm:$0xff] %v9329_v53  ;;  %v9332_v32 = vpop.f32.mrb[155].mxu1 }
 0x39d   :  { %v4052_v24 = vadd.f32 %v3952_v40, %v3852_v52  ;;  %v3210_v60 = vpop.f32.mrb[28].mxu0  ;;  %v9335_v52 = vpop.f32.mrb[156].mxu1 }
 0x39e   :  { %v6294_v62 = vadd.f32 %v3210_v60, %v8953_v19  ;;  %v3212_v61 = vpop.f32.mrb[29].mxu0  ;;  %v9338_v19 = vpop.f32.mrb[157].mxu1 }
 0x39f   :  { %v6295_v4 = vadd.f32 %v3212_v61, %v8956_v2  ;;  %v3214_v55 = vpop.f32.mrb[30].mxu0  ;;  %v4145_v8 = vpack.c.bf16 %v4052_v24, %v4051_v11  ;;  %v9340_v53 = vpop.f32.mrb[158].mxu1 }
 0x3a0   :  { %v3853_v30 = vmul.f32 %v6294_v62, %v6294_v62  ;;  %v6296_v38 = vadd.f32 %v3214_v55, %v8962_v41  ;;  %v3216_v35 = vpop.f32.mrb[31].mxu0  ;;  %v9343_v24 = vpop.f32.mrb[159].mxu1  ;;  %v6815_v55 = vld [vmem:[#allocation8 + $0x118] sm:$0xff]  }
 0x3a1   :  { %v3953_v40 = vmul.f32 %v6295_v4, %v6295_v4  ;;  %v6297_v63 = vadd.f32 %v3216_v35, %v8973_v10  ;;  %6110 = vmatprep.mubr.bf16.mxu1 %v4145_v8  ;;  %10022 = vst [vmem:[#allocation112_spill] sm:$0xff] %v9343_v24  ;;  %v9345_v41 = vpop.f32.mrb[160].mxu1 }
 0x3a2   :  { %v3854_v60 = vmul.f32 %v6296_v38, %v6296_v38  ;;  %3479 = vmatmul.mubr.bf16.gmra.mrb[136].mxu0 %v6814_v1  ;;  %10023 = vst [vmem:[#allocation113_spill] sm:$0xff] %v9345_v41  ;;  %v9347_v4 = vpop.f32.mrb[161].mxu1 }
 0x3a3   :  { %v4053_v2 = vadd.f32 %v3953_v40, %v3853_v30  ;;  %v3954_v11 = vmul.f32 %v6297_v63, %v6297_v63  ;;  %3488 = vmatprep.mubr.bf16.mxu0 %v9938_v26  ;;  %10024 = vst [vmem:[#allocation114_spill] sm:$0xff] %v9347_v4  ;;  %v9350_v38 = vpop.f32.mrb[162].mxu1 }
 0x3a4   :  { %10025 = vst [vmem:[#allocation115_spill] sm:$0xff] %v9350_v38  ;;  %v9353_v30 = vpop.f32.mrb[163].mxu1 }
 0x3a5   :  { %v4054_v62 = vadd.f32 %v3954_v11, %v3854_v60  ;;  %v3220_v61 = vpop.f32.mrb[32].mxu0  ;;  %v9356_v60 = vpop.f32.mrb[164].mxu1 }
 0x3a6   :  { %v6298_v10 = vadd.f32 %v3220_v61, %v8975_v34  ;;  %v3222_v35 = vpop.f32.mrb[33].mxu0  ;;  %v9359_v34 = vpop.f32.mrb[165].mxu1 }
 0x3a7   :  { %v6299_v1 = vadd.f32 %v3222_v35, %v8978_v36  ;;  %v3224_v8 = vpop.f32.mrb[34].mxu0  ;;  %v4146_v63 = vpack.c.bf16 %v4054_v62, %v4053_v2  ;;  %v9361_v38 = vpop.f32.mrb[166].mxu1 }
 0x3a8   :  { %v3855_v40 = vmul.f32 %v6298_v10, %v6298_v10  ;;  %v6300_v24 = vadd.f32 %v3224_v8, %v8984_v49  ;;  %v3226_v41 = vpop.f32.mrb[35].mxu0  ;;  %v9364_v62 = vpop.f32.mrb[167].mxu1  ;;  %v6816_v8 = vld [vmem:[#allocation8 + $0x120] sm:$0xff]  }
 0x3a9   :  { %v3955_v11 = vmul.f32 %v6299_v1, %v6299_v1  ;;  %v6301_v4 = vadd.f32 %v3226_v41, %v8995_v9  ;;  %6111 = vmatmul.mubr.bf16.gmra.mrb[212].mxu1 %v4146_v63  ;;  %10026 = vst [vmem:[#allocation116_spill] sm:$0xff] %v9364_v62  ;;  %v9366_v49 = vpop.f32.mrb[168].mxu1 }
 0x3aa   :  { %v3856_v61 = vmul.f32 %v6300_v24, %v6300_v24  ;;  %3489 = vmatmul.mubr.bf16.gmra.mrb[140].mxu0 %v6815_v55  ;;  %10027 = vst [vmem:[#allocation117_spill] sm:$0xff] %v9366_v49  ;;  %v9368_v1 = vpop.f32.mrb[169].mxu1 }
 0x3ab   :  { %v4055_v36 = vadd.f32 %v3955_v11, %v3855_v40  ;;  %v3956_v2 = vmul.f32 %v6301_v4, %v6301_v4  ;;  %3498 = vmatprep.mubr.bf16.mxu0 %v9938_v26  ;;  %10028 = vst [vmem:[#allocation118_spill] sm:$0xff] %v9368_v1  ;;  %v9371_v24 = vpop.f32.mrb[170].mxu1 }
 0x3ac   :  { %10029 = vst [vmem:[#allocation119_spill] sm:$0xff] %v9371_v24  ;;  %v9374_v40 = vpop.f32.mrb[171].mxu1 }
 0x3ad   :  { %v4056_v10 = vadd.f32 %v3956_v2, %v3856_v61  ;;  %v3230_v35 = vpop.f32.mrb[36].mxu0  ;;  %v9377_v61 = vpop.f32.mrb[172].mxu1 }
 0x3ae   :  { %v6302_v9 = vadd.f32 %v3230_v35, %v8997_v16  ;;  %v3232_v41 = vpop.f32.mrb[37].mxu0  ;;  %v9380_v16 = vpop.f32.mrb[173].mxu1 }
 0x3af   :  { %v6303_v55 = vadd.f32 %v3232_v41, %v9000_v14  ;;  %v3234_v63 = vpop.f32.mrb[38].mxu0  ;;  %v4147_v4 = vpack.c.bf16 %v4056_v10, %v4055_v36  ;;  %v9382_v24 = vpop.f32.mrb[174].mxu1 }
 0x3b0   :  { %v3857_v11 = vmul.f32 %v6302_v9, %v6302_v9  ;;  %v6304_v62 = vadd.f32 %v3234_v63, %v9006_v46  ;;  %v3236_v49 = vpop.f32.mrb[39].mxu0  ;;  %v9385_v10 = vpop.f32.mrb[175].mxu1  ;;  %v6817_v63 = vld [vmem:[#allocation8 + $0x128] sm:$0xff]  }
 0x3b1   :  { %v3957_v2 = vmul.f32 %v6303_v55, %v6303_v55  ;;  %v6305_v1 = vadd.f32 %v3236_v49, %v9017_v37  ;;  %6114 = vmatprep.mubr.bf16.mxu1 %v4147_v4  ;;  %10030 = vst [vmem:[#allocation120_spill] sm:$0xff] %v9385_v10  ;;  %v9387_v46 = vpop.f32.mrb[176].mxu1 }
 0x3b2   :  { %v3858_v35 = vmul.f32 %v6304_v62, %v6304_v62  ;;  %3499 = vmatmul.mubr.bf16.gmra.mrb[144].mxu0 %v6816_v8  ;;  %10031 = vst [vmem:[#allocation121_spill] sm:$0xff] %v9387_v46  ;;  %v9389_v55 = vpop.f32.mrb[177].mxu1 }
 0x3b3   :  { %v4057_v14 = vadd.f32 %v3957_v2, %v3857_v11  ;;  %v3958_v36 = vmul.f32 %v6305_v1, %v6305_v1  ;;  %3508 = vmatprep.mubr.bf16.mxu0 %v9938_v26  ;;  %10032 = vst [vmem:[#allocation122_spill] sm:$0xff] %v9389_v55  ;;  %v9392_v62 = vpop.f32.mrb[178].mxu1 }
 0x3b4   :  { %10033 = vst [vmem:[#allocation123_spill] sm:$0xff] %v9392_v62  ;;  %v9395_v11 = vpop.f32.mrb[179].mxu1 }
 0x3b5   :  { %v4058_v9 = vadd.f32 %v3958_v36, %v3858_v35  ;;  %v3240_v41 = vpop.f32.mrb[40].mxu0  ;;  %v9398_v35 = vpop.f32.mrb[180].mxu1 }
 0x3b6   :  { %v6306_v37 = vadd.f32 %v3240_v41, %v9019_v31  ;;  %v3242_v49 = vpop.f32.mrb[41].mxu0  ;;  %10034 = vst [vmem:[#allocation124_spill] sm:$0xff] %v9398_v35  ;;  %v9401_v31 = vpop.f32.mrb[181].mxu1 }
 0x3b7   :  { %v6307_v8 = vadd.f32 %v3242_v49, %v9022_v28  ;;  %v3244_v4 = vpop.f32.mrb[42].mxu0  ;;  %v4148_v1 = vpack.c.bf16 %v4058_v9, %v4057_v14  ;;  %10035 = vst [vmem:[#allocation125_spill] sm:$0xff] %v9401_v31  ;;  %v9403_v62 = vpop.f32.mrb[182].mxu1  ;;  %v10064_v31 = vld [vmem:[#allocation41_spill] sm:$0xff] }
 0x3b8   :  { %v3859_v2 = vmul.f32 %v6306_v37, %v6306_v37  ;;  %v6308_v10 = vadd.f32 %v3244_v4, %v9028_v27  ;;  %v3246_v46 = vpop.f32.mrb[43].mxu0  ;;  %10036 = vst [vmem:[#allocation126_spill] sm:$0xff] %v9403_v62  ;;  %v9406_v9 = vpop.f32.mrb[183].mxu1  ;;  %v6818_v4 = vld [vmem:[#allocation8 + $0x130] sm:$0xff]  }
 0x3b9   :  { %v3959_v36 = vmul.f32 %v6307_v8, %v6307_v8  ;;  %v6309_v55 = vadd.f32 %v3246_v46, %v9031_v5  ;;  %6115 = vmatmul.mubr.bf16.gmra.mrb[216].mxu1 %v4148_v1  ;;  %10037 = vst [vmem:[#allocation127_spill] sm:$0xff] %v9406_v9  ;;  %v9408_v27 = vpop.f32.mrb[184].mxu1 }
 0x3ba   :  { %v3860_v41 = vmul.f32 %v6308_v10, %v6308_v10  ;;  %3509 = vmatmul.mubr.bf16.gmra.mrb[148].mxu0 %v6817_v63  ;;  %10038 = vst [vmem:[#allocation128_spill] sm:$0xff] %v9408_v27  ;;  %v9410_v8 = vpop.f32.mrb[185].mxu1 }
 0x3bb   :  { %v4059_v28 = vadd.f32 %v3959_v36, %v3859_v2  ;;  %v3960_v14 = vmul.f32 %v6309_v55, %v6309_v55  ;;  %3518 = vmatprep.mubr.bf16.mxu0 %v9938_v26  ;;  %10039 = vst [vmem:[#allocation129_spill] sm:$0xff] %v9410_v8  ;;  %v9413_v10 = vpop.f32.mrb[186].mxu1 }
 0x3bc   :  { %10040 = vst [vmem:[#allocation130_spill] sm:$0xff] %v9413_v10  ;;  %v9416_v2 = vpop.f32.mrb[187].mxu1 }
 0x3bd   :  { %v4060_v37 = vadd.f32 %v3960_v14, %v3860_v41  ;;  %v3250_v49 = vpop.f32.mrb[44].mxu0  ;;  %10041 = vst [vmem:[#allocation131_spill] sm:$0xff] %v9416_v2  ;;  %v9419_v41 = vpop.f32.mrb[188].mxu1 }
 0x3be   :  { %v6310_v5 = vadd.f32 %v3250_v49, %v9051_v3  ;;  %v3252_v46 = vpop.f32.mrb[45].mxu0  ;;  %10042 = vst [vmem:[#allocation132_spill] sm:$0xff] %v9419_v41  ;;  %v9422_v3 = vpop.f32.mrb[189].mxu1 }
 0x3bf   :  { %v6311_v63 = vadd.f32 %v3252_v46, %v9059_v18  ;;  %v3254_v1 = vpop.f32.mrb[46].mxu0  ;;  %v4149_v55 = vpack.c.bf16 %v4060_v37, %v4059_v28  ;;  %10043 = vst [vmem:[#allocation133_spill] sm:$0xff] %v9422_v3  ;;  %v9424_v10 = vpop.f32.mrb[190].mxu1 }
 0x3c0   :  { %v3861_v36 = vmul.f32 %v6310_v5, %v6310_v5  ;;  %v6312_v9 = vadd.f32 %v3254_v1, %v9061_v7  ;;  %v3256_v27 = vpop.f32.mrb[47].mxu0  ;;  %10044 = vst [vmem:[#allocation134_spill] sm:$0xff] %v9424_v10  ;;  %v9427_v37 = vpop.f32.mrb[191].mxu1 }
 0x3c1   :  { %v3961_v14 = vmul.f32 %v6311_v63, %v6311_v63  ;;  %v6313_v8 = vadd.f32 %v3256_v27, %v9064_v33  ;;  %6118 = vmatprep.mubr.bf16.mxu1 %v4149_v55  ;;  %10045 = vst [vmem:[#allocation135_spill] sm:$0xff] %v9427_v37  ;;  %v9429_v7 = vpop.f32.mrb[192].mxu1  ;;  %v10048_v33 = vld [vmem:[#allocation38_spill] sm:$0xff]  ;;  %v6819_v55 = vld [vmem:[#allocation8 + $0x138] sm:$0xff]  }
 0x3c2   :  { %v3862_v49 = vmul.f32 %v6312_v9, %v6312_v9  ;;  %3519 = vmatmul.mubr.bf16.gmra.mrb[152].mxu0 %v6818_v4  ;;  %10046 = vst [vmem:[#allocation136_spill] sm:$0xff] %v9429_v7  ;;  %v9431_v63 = vpop.f32.mrb[193].mxu1  ;;  %v10050_v4 = vld [vmem:[#allocation33_spill] sm:$0xff]  ;;  %v10052_v37 = vld [vmem:[#allocation34_spill] sm:$0xff] }
 0x3c3   :  { %v4061_v18 = vadd.f32 %v3961_v14, %v3861_v36  ;;  %v3962_v28 = vmul.f32 %v6313_v8, %v6313_v8  ;;  %3528 = vmatprep.mubr.bf16.mxu0 %v9938_v26  ;;  %10047 = vst [vmem:[#allocation137_spill] sm:$0xff] %v9431_v63  ;;  %v9434_v9 = vpop.f32.mrb[194].mxu1  ;;  %v10054_v63 = vld [vmem:[#allocation35_spill] sm:$0xff] }
 0x3c4   :  { %10049 = vst [vmem:[#allocation38_spill] sm:$0xff] %v9434_v9  ;;  %v9437_v14 = vpop.f32.mrb[195].mxu1 }
 0x3c5   :  { %v4062_v5 = vadd.f32 %v3962_v28, %v3862_v49  ;;  %v3260_v46 = vpop.f32.mrb[48].mxu0  ;;  %10051 = vst [vmem:[#allocation33_spill] sm:$0xff] %v9437_v14  ;;  %v9440_v49 = vpop.f32.mrb[196].mxu1 }
 0x3c6   :  { %v6314_v27 = vadd.f32 %v3260_v46, %v10048_v33  ;;  %v3262_v1 = vpop.f32.mrb[49].mxu0  ;;  %10053 = vst [vmem:[#allocation34_spill] sm:$0xff] %v9440_v49  ;;  %v9443_v46 = vpop.f32.mrb[197].mxu1  ;;  %v6820_v49 = vld [vmem:[#allocation8 + $0x140] sm:$0xff]  }
 0x3c7   :  { %v6315_v10 = vadd.f32 %v3262_v1, %v10050_v4  ;;  %v3264_v36 = vpop.f32.mrb[50].mxu0  ;;  %v4150_v8 = vpack.c.bf16 %v4062_v5, %v4061_v18  ;;  %10055 = vst [vmem:[#allocation35_spill] sm:$0xff] %v9443_v46  ;;  %v9445_v9 = vpop.f32.mrb[198].mxu1  ;;  %v10058_v4 = vld [vmem:[#allocation36_spill] sm:$0xff] }
 0x3c8   :  { %v3863_v3 = vmul.f32 %v6314_v27, %v6314_v27  ;;  %v6316_v41 = vadd.f32 %v3264_v36, %v10052_v37  ;;  %v3266_v7 = vpop.f32.mrb[51].mxu0  ;;  %10056 = vst [vmem:[#allocation138_spill] sm:$0xff] %v9445_v9  ;;  %v9448_v5 = vpop.f32.mrb[199].mxu1 }
 0x3c9   :  { %v3963_v28 = vmul.f32 %v6315_v10, %v6315_v10  ;;  %v6317_v2 = vadd.f32 %v3266_v7, %v10054_v63  ;;  %6119 = vmatmul.mubr.bf16.gmra.mrb[220].mxu1 %v4150_v8  ;;  %10057 = vst [vmem:[#allocation139_spill] sm:$0xff] %v9448_v5  ;;  %v10059_v7 = vld [vmem:[#allocation37_spill] sm:$0xff]  ;;  %v10062_v5 = vld [vmem:[#allocation39_spill] sm:$0xff] }
 0x3ca   :  { %v3864_v33 = vmul.f32 %v6316_v41, %v6316_v41  ;;  %3529 = vmatmul.mubr.bf16.gmra.mrb[156].mxu0 %v6819_v55  ;;  %v10060_v55 = vld [vmem:[#allocation31_spill] sm:$0xff] }
 0x3cb   :  { %v4063_v1 = vadd.f32 %v3963_v28, %v3863_v3  ;;  %v3964_v18 = vmul.f32 %v6317_v2, %v6317_v2  ;;  %3538 = vmatprep.mubr.bf16.mxu0 %v9938_v26  ;;  %v10061_v2 = vld [vmem:[#allocation32_spill] sm:$0xff] }
 0x3cd   :  { %v4064_v37 = vadd.f32 %v3964_v18, %v3864_v33  ;;  %v3270_v27 = vpop.f32.mrb[52].mxu0 }
 0x3ce   :  { %v6318_v36 = vadd.f32 %v3270_v27, %v10058_v4  ;;  %v3272_v10 = vpop.f32.mrb[53].mxu0 }
 0x3cf   :  { %v6319_v63 = vadd.f32 %v3272_v10, %v10059_v7  ;;  %v3274_v8 = vpop.f32.mrb[54].mxu0  ;;  %v4151_v46 = vpack.c.bf16 %v4064_v37, %v4063_v1  ;;  %v6821_v1 = vld [vmem:[#allocation8 + $0x148] sm:$0xff]   ;;  %v10063_v37 = vld [vmem:[#allocation40_spill] sm:$0xff] }
 0x3d0   :  { %v3865_v41 = vmul.f32 %v6318_v36, %v6318_v36  ;;  %v6320_v14 = vadd.f32 %v3274_v8, %v10060_v55  ;;  %v3276_v9 = vpop.f32.mrb[55].mxu0 }
 0x3d1   :  { %v3965_v3 = vmul.f32 %v6319_v63, %v6319_v63  ;;  %v6321_v28 = vadd.f32 %v3276_v9, %v10061_v2  ;;  %6122 = vmatprep.mubr.bf16.mxu1 %v4151_v46 }
 0x3d2   :  { %v3866_v62 = vmul.f32 %v6320_v14, %v6320_v14  ;;  %3539 = vmatmul.mubr.bf16.gmra.mrb[160].mxu0 %v6820_v49  ;;  %v10065_v49 = vld [vmem:[#allocation42_spill] sm:$0xff] }
 0x3d3   :  { %v4065_v33 = vadd.f32 %v3965_v3, %v3865_v41  ;;  %v3966_v18 = vmul.f32 %v6321_v28, %v6321_v28  ;;  %3548 = vmatprep.mubr.bf16.mxu0 %v9938_v26 }
 0x3d5   :  { %v4066_v27 = vadd.f32 %v3966_v18, %v3866_v62  ;;  %v3280_v4 = vpop.f32.mrb[56].mxu0  ;;  %v10066_v18 = vld [vmem:[#allocation43_spill] sm:$0xff] }
 0x3d6   :  { %v6322_v10 = vadd.f32 %v3280_v4, %v10062_v5  ;;  %v3282_v7 = vpop.f32.mrb[57].mxu0 }
 0x3d7   :  { %v6323_v36 = vadd.f32 %v3282_v7, %v10063_v37  ;;  %v3284_v8 = vpop.f32.mrb[58].mxu0  ;;  %v4152_v55 = vpack.c.bf16 %v4066_v27, %v4065_v33  ;;  %v6822_v33 = vld [vmem:[#allocation8 + $0x150] sm:$0xff]   ;;  %v10067_v27 = vld [vmem:[#allocation44_spill] sm:$0xff] }
 0x3d8   :  { %v3867_v63 = vmul.f32 %v6322_v10, %v6322_v10  ;;  %v6324_v9 = vadd.f32 %v3284_v8, %v10064_v31  ;;  %v3286_v46 = vpop.f32.mrb[59].mxu0  ;;  %v10068_v8 = vld [vmem:[#allocation45_spill] sm:$0xff] }
 0x3d9   :  { %v3967_v14 = vmul.f32 %v6323_v36, %v6323_v36  ;;  %v6325_v41 = vadd.f32 %v3286_v46, %v10065_v49  ;;  %6123 = vmatmul.mubr.bf16.gmra.mrb[224].mxu1 %v4152_v55 }
 0x3da   :  { %v3868_v3 = vmul.f32 %v6324_v9, %v6324_v9  ;;  %3549 = vmatmul.mubr.bf16.gmra.mrb[164].mxu0 %v6821_v1  ;;  %v10069_v1 = vld [vmem:[#allocation46_spill] sm:$0xff] }
 0x3db   :  { %v4067_v62 = vadd.f32 %v3967_v14, %v3867_v63  ;;  %v3968_v2 = vmul.f32 %v6325_v41, %v6325_v41  ;;  %3558 = vmatprep.mubr.bf16.mxu0 %v9938_v26 }
 0x3dd   :  { %v4068_v5 = vadd.f32 %v3968_v2, %v3868_v3  ;;  %v3290_v28 = vpop.f32.mrb[60].mxu0 }
 0x3de   :  { %v6326_v4 = vadd.f32 %v3290_v28, %v10066_v18  ;;  %v3292_v7 = vpop.f32.mrb[61].mxu0  ;;  %v10070_v28 = vld [vmem:[#allocation47_spill] sm:$0xff] }
 0x3df   :  { %v6327_v10 = vadd.f32 %v3292_v7, %v10067_v27  ;;  %v3294_v31 = vpop.f32.mrb[62].mxu0  ;;  %v4153_v37 = vpack.c.bf16 %v4068_v5, %v4067_v62  ;;  %v6823_v62 = vld [vmem:[#allocation8 + $0x158] sm:$0xff]   ;;  %v10071_v5 = vld [vmem:[#allocation48_spill] sm:$0xff] }
 0x3e0   :  { %v3869_v36 = vmul.f32 %v6326_v4, %v6326_v4  ;;  %v6328_v46 = vadd.f32 %v3294_v31, %v10068_v8  ;;  %v3296_v55 = vpop.f32.mrb[63].mxu0  ;;  %v10072_v8 = vld [vmem:[#allocation49_spill] sm:$0xff] }
 0x3e1   :  { %v3969_v9 = vmul.f32 %v6327_v10, %v6327_v10  ;;  %v6329_v63 = vadd.f32 %v3296_v55, %v10069_v1  ;;  %6126 = vmatprep.mubr.bf16.mxu1 %v4153_v37 }
 0x3e2   :  { %v3870_v14 = vmul.f32 %v6328_v46, %v6328_v46  ;;  %3559 = vmatmul.mubr.bf16.gmra.mrb[168].mxu0 %v6822_v33  ;;  %v10073_v33 = vld [vmem:[#allocation50_spill] sm:$0xff] }
 0x3e3   :  { %v4069_v49 = vadd.f32 %v3969_v9, %v3869_v36  ;;  %v3970_v41 = vmul.f32 %v6329_v63, %v6329_v63  ;;  %3568 = vmatprep.mubr.bf16.mxu0 %v9938_v26 }
 0x3e5   :  { %v4070_v3 = vadd.f32 %v3970_v41, %v3870_v14  ;;  %v3300_v2 = vpop.f32.mrb[64].mxu0 }
 0x3e6   :  { %v6330_v18 = vadd.f32 %v3300_v2, %v10070_v28  ;;  %v3302_v7 = vpop.f32.mrb[65].mxu0  ;;  %v10074_v2 = vld [vmem:[#allocation51_spill] sm:$0xff] }
 0x3e7   :  { %v6331_v4 = vadd.f32 %v3302_v7, %v10071_v5  ;;  %v3304_v27 = vpop.f32.mrb[66].mxu0  ;;  %v4154_v31 = vpack.c.bf16 %v4070_v3, %v4069_v49  ;;  %v6824_v49 = vld [vmem:[#allocation8 + $0x160] sm:$0xff]  }
 0x3e8   :  { %v3871_v10 = vmul.f32 %v6330_v18, %v6330_v18  ;;  %v6332_v55 = vadd.f32 %v3304_v27, %v10072_v8  ;;  %v3306_v37 = vpop.f32.mrb[67].mxu0  ;;  %v10075_v3 = vld [vmem:[#allocation52_spill] sm:$0xff]  ;;  %v10076_v8 = vld [vmem:[#allocation53_spill] sm:$0xff] }
 0x3e9   :  { %v3971_v46 = vmul.f32 %v6331_v4, %v6331_v4  ;;  %v6333_v36 = vadd.f32 %v3306_v37, %v10073_v33  ;;  %6127 = vmatmul.mubr.bf16.gmra.mrb[228].mxu1 %v4154_v31 }
 0x3ea   :  { %v3872_v9 = vmul.f32 %v6332_v55, %v6332_v55  ;;  %3569 = vmatmul.mubr.bf16.gmra.mrb[172].mxu0 %v6823_v62  ;;  %v10077_v62 = vld [vmem:[#allocation54_spill] sm:$0xff] }
 0x3eb   :  { %v4071_v1 = vadd.f32 %v3971_v46, %v3871_v10  ;;  %v3972_v63 = vmul.f32 %v6333_v36, %v6333_v36  ;;  %3578 = vmatprep.mubr.bf16.mxu0 %v9938_v26 }
 0x3ed   :  { %v4072_v14 = vadd.f32 %v3972_v63, %v3872_v9  ;;  %v3310_v41 = vpop.f32.mrb[68].mxu0 }
 0x3ee   :  { %v6334_v28 = vadd.f32 %v3310_v41, %v10074_v2  ;;  %v3312_v7 = vpop.f32.mrb[69].mxu0  ;;  %v10078_v41 = vld [vmem:[#allocation55_spill] sm:$0xff] }
 0x3ef   :  { %v6335_v18 = vadd.f32 %v3312_v7, %v10075_v3  ;;  %v3314_v5 = vpop.f32.mrb[70].mxu0  ;;  %v4155_v27 = vpack.c.bf16 %v4072_v14, %v4071_v1  ;;  %v6825_v1 = vld [vmem:[#allocation8 + $0x168] sm:$0xff]   ;;  %v10079_v14 = vld [vmem:[#allocation56_spill] sm:$0xff] }
 0x3f0   :  { %v3873_v4 = vmul.f32 %v6334_v28, %v6334_v28  ;;  %v6336_v37 = vadd.f32 %v3314_v5, %v10076_v8  ;;  %v3316_v31 = vpop.f32.mrb[71].mxu0  ;;  %v10080_v8 = vld [vmem:[#allocation57_spill] sm:$0xff] }
 0x3f1   :  { %v3973_v55 = vmul.f32 %v6335_v18, %v6335_v18  ;;  %v6337_v10 = vadd.f32 %v3316_v31, %v10077_v62  ;;  %6130 = vmatprep.mubr.bf16.mxu1 %v4155_v27 }
 0x3f2   :  { %v3874_v46 = vmul.f32 %v6336_v37, %v6336_v37  ;;  %3579 = vmatmul.mubr.bf16.gmra.mrb[176].mxu0 %v6824_v49  ;;  %v10081_v49 = vld [vmem:[#allocation58_spill] sm:$0xff] }
 0x3f3   :  { %v4073_v33 = vadd.f32 %v3973_v55, %v3873_v4  ;;  %v3974_v36 = vmul.f32 %v6337_v10, %v6337_v10  ;;  %3588 = vmatprep.mubr.bf16.mxu0 %v9938_v26 }
 0x3f5   :  { %v4074_v9 = vadd.f32 %v3974_v36, %v3874_v46  ;;  %v3320_v63 = vpop.f32.mrb[72].mxu0 }
 0x3f6   :  { %v6338_v2 = vadd.f32 %v3320_v63, %v10078_v41  ;;  %v3322_v7 = vpop.f32.mrb[73].mxu0  ;;  %v10082_v63 = vld [vmem:[#allocation59_spill] sm:$0xff] }
 0x3f7   :  { %v6339_v28 = vadd.f32 %v3322_v7, %v10079_v14  ;;  %v3324_v3 = vpop.f32.mrb[74].mxu0  ;;  %v4156_v5 = vpack.c.bf16 %v4074_v9, %v4073_v33  ;;  %v6826_v33 = vld [vmem:[#allocation8 + $0x170] sm:$0xff]   ;;  %v10083_v9 = vld [vmem:[#allocation60_spill] sm:$0xff] }
 0x3f8   :  { %v3875_v18 = vmul.f32 %v6338_v2, %v6338_v2  ;;  %v6340_v31 = vadd.f32 %v3324_v3, %v10080_v8  ;;  %v3326_v27 = vpop.f32.mrb[75].mxu0  ;;  %v10084_v8 = vld [vmem:[#allocation61_spill] sm:$0xff] }
 0x3f9   :  { %v3975_v37 = vmul.f32 %v6339_v28, %v6339_v28  ;;  %v6341_v4 = vadd.f32 %v3326_v27, %v10081_v49  ;;  %6131 = vmatmul.mubr.bf16.gmra.mrb[232].mxu1 %v4156_v5 }
 0x3fa   :  { %v3876_v55 = vmul.f32 %v6340_v31, %v6340_v31  ;;  %3589 = vmatmul.mubr.bf16.gmra.mrb[180].mxu0 %v6825_v1  ;;  %v10085_v1 = vld [vmem:[#allocation62_spill] sm:$0xff] }
 0x3fb   :  { %v4075_v62 = vadd.f32 %v3975_v37, %v3875_v18  ;;  %v3976_v10 = vmul.f32 %v6341_v4, %v6341_v4  ;;  %3598 = vmatprep.mubr.bf16.mxu0 %v9938_v26 }
 0x3fd   :  { %v4076_v46 = vadd.f32 %v3976_v10, %v3876_v55  ;;  %v3330_v36 = vpop.f32.mrb[76].mxu0 }
 0x3fe   :  { %v6342_v41 = vadd.f32 %v3330_v36, %v10082_v63  ;;  %v3332_v7 = vpop.f32.mrb[77].mxu0  ;;  %v10086_v36 = vld [vmem:[#allocation63_spill] sm:$0xff] }
 0x3ff   :  { %v6343_v2 = vadd.f32 %v3332_v7, %v10083_v9  ;;  %v3334_v14 = vpop.f32.mrb[78].mxu0  ;;  %v4157_v3 = vpack.c.bf16 %v4076_v46, %v4075_v62  ;;  %v6827_v62 = vld [vmem:[#allocation8 + $0x178] sm:$0xff]   ;;  %v10087_v46 = vld [vmem:[#allocation64_spill] sm:$0xff] }
 0x400   :  { %v3877_v28 = vmul.f32 %v6342_v41, %v6342_v41  ;;  %v6344_v27 = vadd.f32 %v3334_v14, %v10084_v8  ;;  %v3336_v5 = vpop.f32.mrb[79].mxu0  ;;  %v10088_v8 = vld [vmem:[#allocation65_spill] sm:$0xff] }
 0x401   :  { %v3977_v31 = vmul.f32 %v6343_v2, %v6343_v2  ;;  %v6345_v18 = vadd.f32 %v3336_v5, %v10085_v1  ;;  %6134 = vmatprep.mubr.bf16.mxu1 %v4157_v3 }
 0x402   :  { %v3878_v37 = vmul.f32 %v6344_v27, %v6344_v27  ;;  %3599 = vmatmul.mubr.bf16.gmra.mrb[184].mxu0 %v6826_v33  ;;  %v10089_v33 = vld [vmem:[#allocation66_spill] sm:$0xff] }
 0x403   :  { %v4077_v49 = vadd.f32 %v3977_v31, %v3877_v28  ;;  %v3978_v4 = vmul.f32 %v6345_v18, %v6345_v18  ;;  %3608 = vmatprep.mubr.bf16.mxu0 %v9938_v26 }
 0x405   :  { %v4078_v55 = vadd.f32 %v3978_v4, %v3878_v37  ;;  %v3340_v10 = vpop.f32.mrb[80].mxu0 }
 0x406   :  { %v6346_v63 = vadd.f32 %v3340_v10, %v10086_v36  ;;  %v3342_v7 = vpop.f32.mrb[81].mxu0  ;;  %v10090_v10 = vld [vmem:[#allocation67_spill] sm:$0xff] }
 0x407   :  { %v6347_v41 = vadd.f32 %v3342_v7, %v10087_v46  ;;  %v3344_v9 = vpop.f32.mrb[82].mxu0  ;;  %v4158_v14 = vpack.c.bf16 %v4078_v55, %v4077_v49  ;;  %v6828_v49 = vld [vmem:[#allocation8 + $0x180] sm:$0xff]  }
 0x408   :  { %v3879_v2 = vmul.f32 %v6346_v63, %v6346_v63  ;;  %v6348_v5 = vadd.f32 %v3344_v9, %v10088_v8  ;;  %v3346_v3 = vpop.f32.mrb[83].mxu0  ;;  %v10091_v55 = vld [vmem:[#allocation68_spill] sm:$0xff]  ;;  %v10092_v8 = vld [vmem:[#allocation69_spill] sm:$0xff] }
 0x409   :  { %v3979_v27 = vmul.f32 %v6347_v41, %v6347_v41  ;;  %v6349_v28 = vadd.f32 %v3346_v3, %v10089_v33  ;;  %6135 = vmatmul.mubr.bf16.gmra.mrb[236].mxu1 %v4158_v14 }
 0x40a   :  { %v3880_v31 = vmul.f32 %v6348_v5, %v6348_v5  ;;  %3609 = vmatmul.mubr.bf16.gmra.mrb[188].mxu0 %v6827_v62  ;;  %v10093_v62 = vld [vmem:[#allocation70_spill] sm:$0xff] }
 0x40b   :  { %v4079_v1 = vadd.f32 %v3979_v27, %v3879_v2  ;;  %v3980_v18 = vmul.f32 %v6349_v28, %v6349_v28  ;;  %3618 = vmatprep.mubr.bf16.mxu0 %v9938_v26 }
 0x40d   :  { %v4080_v37 = vadd.f32 %v3980_v18, %v3880_v31  ;;  %v3350_v4 = vpop.f32.mrb[84].mxu0 }
 0x40e   :  { %v6350_v36 = vadd.f32 %v3350_v4, %v10090_v10  ;;  %v3352_v7 = vpop.f32.mrb[85].mxu0  ;;  %v10094_v4 = vld [vmem:[#allocation71_spill] sm:$0xff] }
 0x40f   :  { %v6351_v63 = vadd.f32 %v3352_v7, %v10091_v55  ;;  %v3354_v46 = vpop.f32.mrb[86].mxu0  ;;  %v4159_v9 = vpack.c.bf16 %v4080_v37, %v4079_v1  ;;  %v6829_v1 = vld [vmem:[#allocation8 + $0x188] sm:$0xff]   ;;  %v10095_v37 = vld [vmem:[#allocation72_spill] sm:$0xff] }
 0x410   :  { %v3881_v41 = vmul.f32 %v6350_v36, %v6350_v36  ;;  %v6352_v3 = vadd.f32 %v3354_v46, %v10092_v8  ;;  %v3356_v14 = vpop.f32.mrb[87].mxu0  ;;  %v10096_v8 = vld [vmem:[#allocation73_spill] sm:$0xff] }
 0x411   :  { %v3981_v5 = vmul.f32 %v6351_v63, %v6351_v63  ;;  %v6353_v2 = vadd.f32 %v3356_v14, %v10093_v62  ;;  %6138 = vmatprep.mubr.bf16.mxu1 %v4159_v9 }
 0x412   :  { %v3882_v27 = vmul.f32 %v6352_v3, %v6352_v3  ;;  %3619 = vmatmul.mubr.bf16.gmra.mrb[192].mxu0 %v6828_v49  ;;  %v10097_v49 = vld [vmem:[#allocation74_spill] sm:$0xff] }
 0x413   :  { %v4081_v33 = vadd.f32 %v3981_v5, %v3881_v41  ;;  %v3982_v28 = vmul.f32 %v6353_v2, %v6353_v2  ;;  %3628 = vmatprep.mubr.bf16.mxu0 %v9938_v26 }
 0x415   :  { %v4082_v31 = vadd.f32 %v3982_v28, %v3882_v27  ;;  %v3360_v18 = vpop.f32.mrb[88].mxu0  ;;  %v10098_v28 = vld [vmem:[#allocation75_spill] sm:$0xff] }
 0x416   :  { %v6354_v10 = vadd.f32 %v3360_v18, %v10094_v4  ;;  %v3362_v7 = vpop.f32.mrb[89].mxu0 }
 0x417   :  { %v6355_v36 = vadd.f32 %v3362_v7, %v10095_v37  ;;  %v3364_v55 = vpop.f32.mrb[90].mxu0  ;;  %v4160_v46 = vpack.c.bf16 %v4082_v31, %v4081_v33  ;;  %v10099_v7 = vld [vmem:[#allocation76_spill] sm:$0xff] }
 0x418   :  { %v3883_v63 = vmul.f32 %v6354_v10, %v6354_v10  ;;  %v6356_v14 = vadd.f32 %v3364_v55, %v10096_v8  ;;  %v3366_v9 = vpop.f32.mrb[91].mxu0  ;;  %v10100_v55 = vld [vmem:[#allocation77_spill] sm:$0xff] }
 0x419   :  { %v3983_v3 = vmul.f32 %v6355_v36, %v6355_v36  ;;  %v6357_v41 = vadd.f32 %v3366_v9, %v10097_v49  ;;  %6139 = vmatmul.mubr.bf16.gmra.mrb[240].mxu1 %v4160_v46  ;;  %v10101_v9 = vld [vmem:[#allocation78_spill] sm:$0xff] }
 0x41a   :  { %v3884_v5 = vmul.f32 %v6356_v14, %v6356_v14  ;;  %3629 = vmatmul.mubr.bf16.gmra.mrb[196].mxu0 %v6829_v1 }
 0x41b   :  { %v4083_v26 = vadd.f32 %v3983_v3, %v3883_v63  ;;  %v3984_v62 = vmul.f32 %v6357_v41, %v6357_v41  ;;  %v10102_v41 = vld [vmem:[#allocation79_spill] sm:$0xff] }
 0x41d   :  { %v4084_v2 = vadd.f32 %v3984_v62, %v3884_v5  ;;  %v3370_v27 = vpop.f32.mrb[92].mxu0 }
 0x41e   :  { %v6358_v18 = vadd.f32 %v3370_v27, %v10098_v28  ;;  %v3372_v4 = vpop.f32.mrb[93].mxu0  ;;  %v10103_v27 = vld [vmem:[#allocation80_spill] sm:$0xff] }
 0x41f   :  { %v6359_v37 = vadd.f32 %v3372_v4, %v10099_v7  ;;  %v3374_v33 = vpop.f32.mrb[94].mxu0  ;;  %v4161_v31 = vpack.c.bf16 %v4084_v2, %v4083_v26 }
 0x420   :  { %v3885_v10 = vmul.f32 %v6358_v18, %v6358_v18  ;;  %v6360_v8 = vadd.f32 %v3374_v33, %v10100_v55  ;;  %v3376_v36 = vpop.f32.mrb[95].mxu0  ;;  %v10104_v18 = vld [vmem:[#allocation81_spill] sm:$0xff]  ;;  %v10105_v55 = vld [vmem:[#allocation82_spill] sm:$0xff] }
 0x421   :  { %v3985_v35 = vmul.f32 %v6359_v37, %v6359_v37  ;;  %v6361_v46 = vadd.f32 %v3376_v36, %v10101_v9  ;;  %6142 = vmatprep.mubr.bf16.mxu1 %v4161_v31 }
 0x422   :  { %v3886_v1 = vmul.f32 %v6360_v8, %v6360_v8 }
 0x423   :  { %v4085_v63 = vadd.f32 %v3985_v35, %v3885_v10  ;;  %v3986_v14 = vmul.f32 %v6361_v46, %v6361_v46  ;;  %v10106_v46 = vld [vmem:[#allocation83_spill] sm:$0xff] }
 0x425   :  { %v4086_v3 = vadd.f32 %v3986_v14, %v3886_v1  ;;  %v3380_v49 = vpop.f32.mrb[96].mxu0 }
 0x426   :  { %v6362_v5 = vadd.f32 %v3380_v49, %v10102_v41  ;;  %v3382_v62 = vpop.f32.mrb[97].mxu0  ;;  %v10107_v49 = vld [vmem:[#allocation84_spill] sm:$0xff] }
 0x427   :  { %v6363_v28 = vadd.f32 %v3382_v62, %v10103_v27  ;;  %v3384_v4 = vpop.f32.mrb[98].mxu0  ;;  %v4162_v26 = vpack.c.bf16 %v4086_v3, %v4085_v63 }
 0x428   :  { %v3887_v2 = vmul.f32 %v6362_v5, %v6362_v5  ;;  %v6364_v7 = vadd.f32 %v3384_v4, %v10104_v18  ;;  %v3386_v33 = vpop.f32.mrb[99].mxu0  ;;  %v10108_v5 = vld [vmem:[#allocation85_spill] sm:$0xff]  ;;  %v10109_v18 = vld [vmem:[#allocation86_spill] sm:$0xff] }
 0x429   :  { %v3987_v37 = vmul.f32 %v6363_v28, %v6363_v28  ;;  %v6365_v36 = vadd.f32 %v3386_v33, %v10105_v55  ;;  %6143 = vmatmul.mubr.bf16.gmra.mrb[244].mxu1 %v4162_v26 }
 0x42a   :  { %v3888_v31 = vmul.f32 %v6364_v7, %v6364_v7 }
 0x42b   :  { %v4087_v35 = vadd.f32 %v3987_v37, %v3887_v2  ;;  %v3988_v10 = vmul.f32 %v6365_v36, %v6365_v36  ;;  %v10110_v36 = vld [vmem:[#allocation87_spill] sm:$0xff] }
 0x42d   :  { %v4088_v8 = vadd.f32 %v3988_v10, %v3888_v31  ;;  %v3390_v9 = vpop.f32.mrb[100].mxu0 }
 0x42e   :  { %v6366_v1 = vadd.f32 %v3390_v9, %v10106_v46  ;;  %v3392_v14 = vpop.f32.mrb[101].mxu0  ;;  %v10111_v9 = vld [vmem:[#allocation88_spill] sm:$0xff] }
 0x42f   :  { %v6367_v41 = vadd.f32 %v3392_v14, %v10107_v49  ;;  %v3394_v62 = vpop.f32.mrb[102].mxu0  ;;  %v4163_v63 = vpack.c.bf16 %v4088_v8, %v4087_v35 }
 0x430   :  { %v3889_v3 = vmul.f32 %v6366_v1, %v6366_v1  ;;  %v6368_v27 = vadd.f32 %v3394_v62, %v10108_v5  ;;  %v3396_v4 = vpop.f32.mrb[103].mxu0  ;;  %v10112_v1 = vld [vmem:[#allocation89_spill] sm:$0xff]  ;;  %v10113_v5 = vld [vmem:[#allocation90_spill] sm:$0xff] }
 0x431   :  { %v3989_v28 = vmul.f32 %v6367_v41, %v6367_v41  ;;  %v6369_v33 = vadd.f32 %v3396_v4, %v10109_v18  ;;  %6146 = vmatprep.mubr.bf16.mxu1 %v4163_v63 }
 0x432   :  { %v3890_v26 = vmul.f32 %v6368_v27, %v6368_v27 }
 0x433   :  { %v4089_v2 = vadd.f32 %v3989_v28, %v3889_v3  ;;  %v3990_v7 = vmul.f32 %v6369_v33, %v6369_v33 }
 0x435   :  { %v4090_v37 = vadd.f32 %v3990_v7, %v3890_v26  ;;  %v3400_v55 = vpop.f32.mrb[104].mxu0 }
 0x436   :  { %v6370_v31 = vadd.f32 %v3400_v55, %v10110_v36  ;;  %v3402_v10 = vpop.f32.mrb[105].mxu0 }
 0x437   :  { %v6371_v46 = vadd.f32 %v3402_v10, %v10111_v9  ;;  %v3404_v14 = vpop.f32.mrb[106].mxu0  ;;  %v4164_v35 = vpack.c.bf16 %v4090_v37, %v4089_v2 }
 0x438   :  { %v3891_v8 = vmul.f32 %v6370_v31, %v6370_v31  ;;  %v6372_v49 = vadd.f32 %v3404_v14, %v10112_v1  ;;  %v3406_v62 = vpop.f32.mrb[107].mxu0 }
 0x439   :  { %v3991_v41 = vmul.f32 %v6371_v46, %v6371_v46  ;;  %v6373_v4 = vadd.f32 %v3406_v62, %v10113_v5  ;;  %6147 = vmatmul.mubr.bf16.gmra.mrb[248].mxu1 %v4164_v35 }
 0x43a   :  { %v3892_v63 = vmul.f32 %v6372_v49, %v6372_v49 }
 0x43b   :  { %v4091_v3 = vadd.f32 %v3991_v41, %v3891_v8  ;;  %v3992_v27 = vmul.f32 %v6373_v4, %v6373_v4 }
 0x43d   :  { %v4092_v28 = vadd.f32 %v3992_v27, %v3892_v63  ;;  %v3410_v18 = vpop.f32.mrb[108].mxu0 }
 0x43e   :  { %v6374_v33 = vadd.f32 %v3410_v18, %v9206_v15  ;;  %v3412_v26 = vpop.f32.mrb[109].mxu0 }
 0x43f   :  { %v6375_v7 = vadd.f32 %v3412_v26, %v9209_v23  ;;  %v3414_v55 = vpop.f32.mrb[110].mxu0  ;;  %v4165_v2 = vpack.c.bf16 %v4092_v28, %v4091_v3 }
 0x440   :  { %v3893_v37 = vmul.f32 %v6374_v33, %v6374_v33  ;;  %v6376_v36 = vadd.f32 %v3414_v55, %v9212_v25  ;;  %v3416_v31 = vpop.f32.mrb[111].mxu0 }
 0x441   :  { %v3993_v10 = vmul.f32 %v6375_v7, %v6375_v7  ;;  %v6377_v9 = vadd.f32 %v3416_v31, %v9215_v22  ;;  %6150 = vmatprep.mubr.bf16.mxu1 %v4165_v2 }
 0x442   :  { %v3894_v46 = vmul.f32 %v6376_v36, %v6376_v36 }
 0x443   :  { %v4093_v14 = vadd.f32 %v3993_v10, %v3893_v37  ;;  %v3994_v35 = vmul.f32 %v6377_v9, %v6377_v9 }
 0x445   :  { %v4094_v8 = vadd.f32 %v3994_v35, %v3894_v46  ;;  %v3420_v1 = vpop.f32.mrb[112].mxu0  ;;  %v10114_v46 = vld [vmem:[#allocation91_spill] sm:$0xff] }
 0x446   :  { %v6378_v15 = vadd.f32 %v3420_v1, %v9219_v58  ;;  %v3422_v49 = vpop.f32.mrb[113].mxu0 }
 0x447   :  { %v6379_v23 = vadd.f32 %v3422_v49, %v9221_v45  ;;  %v3424_v62 = vpop.f32.mrb[114].mxu0  ;;  %v4166_v41 = vpack.c.bf16 %v4094_v8, %v4093_v14 }
 0x448   :  { %v3895_v5 = vmul.f32 %v6378_v15, %v6378_v15  ;;  %v6380_v25 = vadd.f32 %v3424_v62, %v9224_v50  ;;  %v3426_v4 = vpop.f32.mrb[115].mxu0  ;;  %v10115_v15 = vld [vmem:[#allocation92_spill] sm:$0xff] }
 0x449   :  { %v3995_v63 = vmul.f32 %v6379_v23, %v6379_v23  ;;  %v6381_v22 = vadd.f32 %v3426_v4, %v9227_v54  ;;  %6151 = vmatmul.mubr.bf16.gmra.mrb[252].mxu1 %v4166_v41 }
 0x44a   :  { %v3896_v3 = vmul.f32 %v6380_v25, %v6380_v25 }
 0x44b   :  { %v4095_v27 = vadd.f32 %v3995_v63, %v3895_v5  ;;  %v3996_v28 = vmul.f32 %v6381_v22, %v6381_v22  ;;  %v10116_v5 = vld [vmem:[#allocation93_spill] sm:$0xff]  ;;  %v10117_v22 = vld [vmem:[#allocation94_spill] sm:$0xff] }
 0x44c   :  { %v6100_v18 = vpop.f32.mrb[200].mxu1 }
 0x44d   :  { %v4096_v33 = vadd.f32 %v3996_v28, %v3896_v3  ;;  %v4688_v26 = vmax.f32 %v6100_v18, 1e-10  ;;  %v3430_v58 = vpop.f32.mrb[116].mxu0  ;;  %v4287_v7 = vpop.f32.mrb[201].mxu1  ;;  %v10118_v18 = vld [vmem:[#allocation95_spill] sm:$0xff] }
 0x44e   :  { %v6382_v45 = vadd.f32 %v3430_v58, %v9230_v57  ;;  %v4686_v55 = vmax.f32 %v4287_v7, 1e-10  ;;  %v3432_v2 = vpop.f32.mrb[117].mxu0  ;;  %v6101_v37 = vpop.f32.mrb[202].mxu1 }
 0x44f   :  { %6861 = vlog2.f32 %v4688_v26  ;;  %v6383_v50 = vadd.f32 %v3432_v2, %v9233_v44  ;;  %v4689_v36 = vmax.f32 %v6101_v37, 1e-10  ;;  %v3434_v31 = vpop.f32.mrb[118].mxu0  ;;  %v4290_v54 = vpop.f32.mrb[203].mxu1  ;;  %v4167_v10 = vpack.c.bf16 %v4096_v33, %v4095_v27 }
 0x450   :  { %v3897_v9 = vmul.f32 %v6382_v45, %v6382_v45  ;;  %6863 = vlog2.f32 %v4686_v55  ;;  %v6384_v14 = vadd.f32 %v3434_v31, %v10114_v46  ;;  %v4687_v35 = vmax.f32 %v4290_v54, 1e-10  ;;  %v3436_v8 = vpop.f32.mrb[119].mxu0 }
 0x451   :  { %v3997_v1 = vmul.f32 %v6383_v50, %v6383_v50  ;;  %6865 = vlog2.f32 %v4689_v36  ;;  %v6385_v57 = vadd.f32 %v3436_v8, %v10115_v15  ;;  %6154 = vmatprep.mubr.bf16.mxu1 %v4167_v10 }
 0x452   :  { %v3898_v49 = vmul.f32 %v6384_v14, %v6384_v14  ;;  %6867 = vlog2.f32 %v4687_v35 }
 0x453   :  { %v4097_v23 = vadd.f32 %v3997_v1, %v3897_v9  ;;  %v3998_v62 = vmul.f32 %v6385_v57, %v6385_v57 }
 0x455   :  { %v4098_v44 = vadd.f32 %v3998_v62, %v3898_v49  ;;  %v3440_v41 = vpop.f32.mrb[120].mxu0 }
 0x456   :  { %v6386_v25 = vadd.f32 %v3440_v41, %v10116_v5  ;;  %v3442_v4 = vpop.f32.mrb[121].mxu0 }
 0x457   :  { %v4168_v63 = vpack.c.bf16 %v4098_v44, %v4097_v23  ;;  %v6387_v3 = vadd.f32 %v3442_v4, %v10117_v22  ;;  %v3444_v27 = vpop.f32.mrb[122].mxu0 }
 0x458   :  { %v3899_v28 = vmul.f32 %v6386_v25, %v6386_v25  ;;  %v6388_v33 = vadd.f32 %v3444_v27, %v10118_v18  ;;  %v3446_v26 = vpop.f32.mrb[123].mxu0 }
 0x459   :  { %v6862_v58 = vpop.eup %6861  ;;  %v3999_v7 = vmul.f32 %v6387_v3, %v6387_v3  ;;  %v6389_v45 = vadd.f32 %v3446_v26, %v9248_v42  ;;  %6155 = vmatmul.mubr.bf16.gmra.mrb[0].mxu1 %v4168_v63 }
 0x45a   :  { %v6864_v55 = vpop.eup %6863  ;;  %v4791_v2 = vmul.f32 0.6931472, %v6862_v58  ;;  %v3900_v37 = vmul.f32 %v6388_v33, %v6388_v33 }
 0x45b   :  { %v6866_v50 = vpop.eup %6865  ;;  %v4787_v36 = vmul.f32 0.6931472, %v6864_v55  ;;  %v4099_v31 = vadd.f32 %v3999_v7, %v3899_v28  ;;  %v4000_v54 = vmul.f32 %v6389_v45, %v6389_v45  ;;  %v10119_v7 = vld [vmem:[#allocation96_spill] sm:$0xff] }
 0x45c   :  { %v6868_v10 = vpop.eup %6867  ;;  %v4793_v9 = vmul.f32 0.6931472, %v6866_v50  ;;  %v6104_v46 = vpop.f32.mrb[204].mxu1  ;;  %v9531_v14 = vmul.f32 4.3429446, %v4791_v2 }
 0x45d   :  { %v4789_v35 = vmul.f32 0.6931472, %v6868_v10  ;;  %v4100_v8 = vadd.f32 %v4000_v54, %v3900_v37  ;;  %v4692_v1 = vmax.f32 %v6104_v46, 1e-10  ;;  %v9533_v15 = vmul.f32 4.3429446, %v4787_v36 }
 0x45e   :  { %v9535_v57 = vmul.f32 4.3429446, %v4793_v9  ;;  %v3450_v42 = vpop.f32.mrb[124].mxu0  ;;  %v4303_v49 = vpop.f32.mrb[205].mxu1  ;;  %v10120_v36 = vld [vmem:[#allocation97_spill] sm:$0xff]  ;;  %v10121_v10 = vld [vmem:[#allocation98_spill] sm:$0xff] }
 0x45f   :  { %v9537_v23 = vmul.f32 4.3429446, %v4789_v35  ;;  %6869 = vlog2.f32 %v4692_v1  ;;  %v6390_v62 = vadd.f32 %v3450_v42, %v9251_v56  ;;  %v4690_v44 = vmax.f32 %v4303_v49, 1e-10  ;;  %v3452_v41 = vpop.f32.mrb[125].mxu0  ;;  %v6105_v5 = vpop.f32.mrb[206].mxu1 }
 0x460   :  { %v5091_v25 = vpack.c.bf16 %v9535_v57, %v9531_v14  ;;  %v6391_v4 = vadd.f32 %v3452_v41, %v9254_v51  ;;  %v4693_v63 = vmax.f32 %v6105_v5, 1e-10  ;;  %v3454_v22 = vpop.f32.mrb[126].mxu0  ;;  %v4306_v3 = vpop.f32.mrb[207].mxu1  ;;  %v4169_v27 = vpack.c.bf16 %v4100_v8, %v4099_v31  ;;  %v10122_v8 = vld [vmem:[#allocation99_spill] sm:$0xff] }
 0x461   :  { %v5090_v28 = vpack.c.bf16 %v9537_v23, %v9533_v15  ;;  %v3901_v18 = vmul.f32 %v6390_v62, %v6390_v62  ;;  %6871 = vlog2.f32 %v4690_v44  ;;  %v6392_v33 = vadd.f32 %v3454_v22, %v9256_v43  ;;  %v3456_v56 = vpop.f32.mrb[127].mxu0 }
 0x462   :  { %v4001_v26 = vmul.f32 %v6391_v4, %v6391_v4  ;;  %6873 = vlog2.f32 %v4693_v63  ;;  %v4691_v58 = vmax.f32 %v4306_v3, 1e-10  ;;  %v6393_v45 = vadd.f32 %v3456_v56, %v10119_v7  ;;  %6158 = vmatprep.mubr.bf16.mxu1 %v4169_v27 }
 0x463   :  { %v3902_v55 = vmul.f32 %v6392_v33, %v6392_v33 }
 0x464   :  { %v4101_v51 = vadd.f32 %v4001_v26, %v3901_v18  ;;  %6875 = vlog2.f32 %v4691_v58  ;;  %v4002_v2 = vmul.f32 %v6393_v45, %v6393_v45 }
 0x465   :  { %v3460_v37 = vpop.f32.mrb[128].mxu0 }
 0x466   :  { %v4102_v50 = vadd.f32 %v4002_v2, %v3902_v55  ;;  %v6394_v31 = vadd.f32 %v3460_v37, %v10120_v36  ;;  %v3462_v54 = vpop.f32.mrb[129].mxu0 }
 0x467   :  { %v6395_v9 = vadd.f32 %v3462_v54, %v10121_v10  ;;  %v3464_v46 = vpop.f32.mrb[130].mxu0 }
 0x468   :  { %v4170_v43 = vpack.c.bf16 %v4102_v50, %v4101_v51  ;;  %v3903_v35 = vmul.f32 %v6394_v31, %v6394_v31  ;;  %v6396_v1 = vadd.f32 %v3464_v46, %v10122_v8  ;;  %v3466_v42 = vpop.f32.mrb[131].mxu0 }
 0x469   :  { %v6870_v49 = vpop.eup %6869  ;;  %v4003_v62 = vmul.f32 %v6395_v9, %v6395_v9  ;;  %v6397_v44 = vadd.f32 %v3466_v42, %v9269_v59 }
 0x46a   :  { %v4799_v41 = vmul.f32 0.6931472, %v6870_v49  ;;  %v3904_v5 = vmul.f32 %v6396_v1, %v6396_v1  ;;  %6159 = vmatmul.mubr.bf16.gmra.mrb[4].mxu1 %v4170_v43 }
 0x46b   :  { %v6872_v4 = vpop.eup %6871  ;;  %v4103_v63 = vadd.f32 %v4003_v62, %v3903_v35  ;;  %v4004_v22 = vmul.f32 %v6397_v44, %v6397_v44  ;;  %v10123_v44 = vld [vmem:[#allocation100_spill] sm:$0xff] }
 0x46c   :  { %v6874_v3 = vpop.eup %6873  ;;  %v9551_v27 = vmul.f32 4.3429446, %v4799_v41  ;;  %v4795_v18 = vmul.f32 0.6931472, %v6872_v4  ;;  %v6108_v33 = vpop.f32.mrb[208].mxu1 }
 0x46d   :  { %v4801_v56 = vmul.f32 0.6931472, %v6874_v3  ;;  %v4104_v26 = vadd.f32 %v4004_v22, %v3904_v5  ;;  %v4696_v58 = vmax.f32 %v6108_v33, 1e-10  ;;  %v3470_v7 = vpop.f32.mrb[132].mxu0  ;;  %v4319_v45 = vpop.f32.mrb[209].mxu1 }
 0x46e   :  { %v6876_v55 = vpop.eup %6875  ;;  %v9553_v51 = vmul.f32 4.3429446, %v4795_v18  ;;  %v6398_v59 = vadd.f32 %v3470_v7, %v9272_v29  ;;  %v4694_v2 = vmax.f32 %v4319_v45, 1e-10  ;;  %v3472_v37 = vpop.f32.mrb[133].mxu0  ;;  %v10124_v18 = vld [vmem:[#allocation101_spill] sm:$0xff] }
 0x46f   :  { %v6109_v50 = vpop.f32.mrb[210].mxu1  ;;  %v9556_v36 = vmul.f32 4.3429446, %v4801_v56  ;;  %v4797_v31 = vmul.f32 0.6931472, %v6876_v55  ;;  %6877 = vlog2.f32 %v4696_v58  ;;  %v6399_v54 = vadd.f32 %v3472_v37, %v9275_v13  ;;  %v3474_v10 = vpop.f32.mrb[134].mxu0 }
 0x470   :  { %v4322_v9 = vpop.f32.mrb[211].mxu1  ;;  %v3905_v46 = vmul.f32 %v6398_v59, %v6398_v59  ;;  %6879 = vlog2.f32 %v4694_v2  ;;  %v4697_v43 = vmax.f32 %v6109_v50, 1e-10  ;;  %v6400_v35 = vadd.f32 %v3474_v10, %v9277_v6  ;;  %v3476_v8 = vpop.f32.mrb[135].mxu0  ;;  %v10125_v58 = vld [vmem:[#allocation102_spill] sm:$0xff]  ;;  %v10126_v2 = vld [vmem:[#allocation103_spill] sm:$0xff] }
 0x471   :  { %v5093_v29 = vpack.c.bf16 %v9556_v36, %v9551_v27  ;;  %v9562_v1 = vmul.f32 4.3429446, %v4797_v31  ;;  %v4005_v42 = vmul.f32 %v6399_v54, %v6399_v54  ;;  %v4695_v49 = vmax.f32 %v4322_v9, 1e-10 }
 0x472   :  { %6881 = vlog2.f32 %v4697_v43  ;;  %v3906_v62 = vmul.f32 %v6400_v35, %v6400_v35  ;;  %v6401_v41 = vadd.f32 %v3476_v8, %v10123_v44  ;;  %v4171_v13 = vpack.c.bf16 %v4104_v26, %v4103_v63 }
 0x473   :  { %v5092_v5 = vpack.c.bf16 %v9562_v1, %v9553_v51  ;;  %v4105_v4 = vadd.f32 %v4005_v42, %v3905_v46  ;;  %6883 = vlog2.f32 %v4695_v49 }
 0x474   :  { %v4006_v22 = vmul.f32 %v6401_v41, %v6401_v41  ;;  %6162 = vmatprep.mubr.bf16.mxu1 %v4171_v13 }
 0x475   :  { %v3480_v6 = vpop.f32.mrb[136].mxu0 }
 0x476   :  { %v4106_v3 = vadd.f32 %v4006_v22, %v3906_v62  ;;  %v6402_v33 = vadd.f32 %v3480_v6, %v10124_v18  ;;  %v3482_v56 = vpop.f32.mrb[137].mxu0 }
 0x477   :  { %v6403_v7 = vadd.f32 %v3482_v56, %v10125_v58  ;;  %v3484_v45 = vpop.f32.mrb[138].mxu0 }
 0x478   :  { %v4172_v55 = vpack.c.bf16 %v4106_v3, %v4105_v4  ;;  %v3907_v59 = vmul.f32 %v6402_v33, %v6402_v33  ;;  %v6404_v37 = vadd.f32 %v3484_v45, %v10126_v2  ;;  %v3486_v63 = vpop.f32.mrb[139].mxu0 }
 0x479   :  { %v6878_v26 = vpop.eup %6877  ;;  %v4007_v50 = vmul.f32 %v6403_v7, %v6403_v7  ;;  %v6405_v31 = vadd.f32 %v3486_v63, %v9290_v48 }
 0x47a   :  { %v6880_v54 = vpop.eup %6879  ;;  %v4807_v10 = vmul.f32 0.6931472, %v6878_v26  ;;  %v3908_v9 = vmul.f32 %v6404_v37, %v6404_v37  ;;  %6163 = vmatmul.mubr.bf16.gmra.mrb[8].mxu1 %v4172_v55 }
 0x47b   :  { %v4803_v46 = vmul.f32 0.6931472, %v6880_v54  ;;  %v4107_v43 = vadd.f32 %v4007_v50, %v3907_v59  ;;  %v4008_v35 = vmul.f32 %v6405_v31, %v6405_v31 }
 0x47c   :  { %v6882_v8 = vpop.eup %6881  ;;  %v6112_v42 = vpop.f32.mrb[212].mxu1  ;;  %v9571_v62 = vmul.f32 4.3429446, %v4807_v10 }
 0x47d   :  { %v6884_v49 = vpop.eup %6883  ;;  %v4809_v44 = vmul.f32 0.6931472, %v6882_v8  ;;  %v4108_v41 = vadd.f32 %v4008_v35, %v3908_v9  ;;  %v4700_v13 = vmax.f32 %v6112_v42, 1e-10  ;;  %v9573_v4 = vmul.f32 4.3429446, %v4803_v46 }
 0x47e   :  { %v4805_v22 = vmul.f32 0.6931472, %v6884_v49  ;;  %v3490_v6 = vpop.f32.mrb[140].mxu0  ;;  %v4335_v48 = vpop.f32.mrb[213].mxu1  ;;  %v10127_v9 = vld [vmem:[#allocation104_spill] sm:$0xff]  ;;  %v10128_v42 = vld [vmem:[#allocation105_spill] sm:$0xff] }
 0x47f   :  { %v9575_v3 = vmul.f32 4.3429446, %v4809_v44  ;;  %6885 = vlog2.f32 %v4700_v13  ;;  %v6406_v18 = vadd.f32 %v3490_v6, %v9293_v20  ;;  %v4698_v33 = vmax.f32 %v4335_v48, 1e-10  ;;  %v3492_v56 = vpop.f32.mrb[141].mxu0  ;;  %v6113_v58 = vpop.f32.mrb[214].mxu1 }
 0x480   :  { %v9578_v7 = vmul.f32 4.3429446, %v4805_v22  ;;  %v6407_v45 = vadd.f32 %v3492_v56, %v9296_v39  ;;  %v4701_v55 = vmax.f32 %v6113_v58, 1e-10  ;;  %v3494_v59 = vpop.f32.mrb[142].mxu0  ;;  %v4338_v2 = vpop.f32.mrb[215].mxu1  ;;  %v4173_v37 = vpack.c.bf16 %v4108_v41, %v4107_v43 }
 0x481   :  { %v5095_v63 = vpack.c.bf16 %v9575_v3, %v9571_v62  ;;  %v3909_v26 = vmul.f32 %v6406_v18, %v6406_v18  ;;  %6887 = vlog2.f32 %v4698_v33  ;;  %v6408_v50 = vadd.f32 %v3494_v59, %v9298_v12  ;;  %v3496_v31 = vpop.f32.mrb[143].mxu0  ;;  %v10129_v12 = vld [vmem:[#allocation106_spill] sm:$0xff]  ;;  %v10130_v48 = vld [vmem:[#allocation107_spill] sm:$0xff] }
 0x482   :  { %v5094_v20 = vpack.c.bf16 %v9578_v7, %v9573_v4  ;;  %v4009_v54 = vmul.f32 %v6407_v45, %v6407_v45  ;;  %6889 = vlog2.f32 %v4701_v55  ;;  %v4699_v10 = vmax.f32 %v4338_v2, 1e-10  ;;  %6166 = vmatprep.mubr.bf16.mxu1 %v4173_v37 }
 0x483   :  { %v3910_v39 = vmul.f32 %v6408_v50, %v6408_v50  ;;  %v6409_v46 = vadd.f32 %v3496_v31, %v10127_v9 }
 0x484   :  { %v4109_v35 = vadd.f32 %v4009_v54, %v3909_v26  ;;  %6891 = vlog2.f32 %v4699_v10 }
 0x485   :  { %v4010_v43 = vmul.f32 %v6409_v46, %v6409_v46  ;;  %v3500_v8 = vpop.f32.mrb[144].mxu0 }
 0x486   :  { %v6410_v49 = vadd.f32 %v3500_v8, %v10128_v42  ;;  %v3502_v44 = vpop.f32.mrb[145].mxu0 }
 0x487   :  { %v4110_v41 = vadd.f32 %v4010_v43, %v3910_v39  ;;  %v6411_v13 = vadd.f32 %v3502_v44, %v10129_v12  ;;  %v3504_v22 = vpop.f32.mrb[146].mxu0 }
 0x488   :  { %v3911_v6 = vmul.f32 %v6410_v49, %v6410_v49  ;;  %v6412_v18 = vadd.f32 %v3504_v22, %v10130_v48  ;;  %v3506_v33 = vpop.f32.mrb[147].mxu0 }
 0x489   :  { %v6886_v56 = vpop.eup %6885  ;;  %v4174_v58 = vpack.c.bf16 %v4110_v41, %v4109_v35  ;;  %v4011_v45 = vmul.f32 %v6411_v13, %v6411_v13  ;;  %v6413_v55 = vadd.f32 %v3506_v33, %v9311_v21 }
 0x48a   :  { %v4815_v59 = vmul.f32 0.6931472, %v6886_v56  ;;  %v3912_v2 = vmul.f32 %v6412_v18, %v6412_v18 }
 0x48b   :  { %v6888_v37 = vpop.eup %6887  ;;  %v4111_v26 = vadd.f32 %v4011_v45, %v3911_v6  ;;  %v4012_v50 = vmul.f32 %v6413_v55, %v6413_v55  ;;  %6167 = vmatmul.mubr.bf16.gmra.mrb[12].mxu1 %v4174_v58 }
 0x48c   :  { %v6890_v31 = vpop.eup %6889  ;;  %v9591_v54 = vmul.f32 4.3429446, %v4815_v59  ;;  %v4811_v10 = vmul.f32 0.6931472, %v6888_v37  ;;  %v6116_v39 = vpop.f32.mrb[216].mxu1 }
 0x48d   :  { %v4817_v9 = vmul.f32 0.6931472, %v6890_v31  ;;  %v4112_v46 = vadd.f32 %v4012_v50, %v3912_v2  ;;  %v4704_v43 = vmax.f32 %v6116_v39, 1e-10  ;;  %v3510_v8 = vpop.f32.mrb[148].mxu0  ;;  %v4351_v42 = vpop.f32.mrb[217].mxu1 }
 0x48e   :  { %v6892_v35 = vpop.eup %6891  ;;  %v9593_v49 = vmul.f32 4.3429446, %v4811_v10  ;;  %v6414_v21 = vadd.f32 %v3510_v8, %v9314_v47  ;;  %v4702_v44 = vmax.f32 %v4351_v42, 1e-10  ;;  %v3512_v41 = vpop.f32.mrb[149].mxu0  ;;  %v10131_v50 = vld [vmem:[#allocation108_spill] sm:$0xff] }
 0x48f   :  { %v6117_v12 = vpop.f32.mrb[218].mxu1  ;;  %v9596_v13 = vmul.f32 4.3429446, %v4817_v9  ;;  %v4813_v22 = vmul.f32 0.6931472, %v6892_v35  ;;  %6893 = vlog2.f32 %v4704_v43  ;;  %v6415_v6 = vadd.f32 %v3512_v41, %v9317_v17  ;;  %v3514_v48 = vpop.f32.mrb[150].mxu0 }
 0x490   :  { %v4354_v18 = vpop.f32.mrb[219].mxu1  ;;  %v3913_v33 = vmul.f32 %v6414_v21, %v6414_v21  ;;  %6895 = vlog2.f32 %v4702_v44  ;;  %v4705_v56 = vmax.f32 %v6117_v12, 1e-10  ;;  %v6416_v58 = vadd.f32 %v3514_v48, %v9319_v0  ;;  %v3516_v45 = vpop.f32.mrb[151].mxu0  ;;  %v10132_v8 = vld [vmem:[#allocation109_spill] sm:$0xff]  ;;  %v10133_v21 = vld [vmem:[#allocation110_spill] sm:$0xff] }
 0x491   :  { %v5097_v47 = vpack.c.bf16 %v9596_v13, %v9591_v54  ;;  %v9602_v55 = vmul.f32 4.3429446, %v4813_v22  ;;  %v4013_v59 = vmul.f32 %v6415_v6, %v6415_v6  ;;  %v4703_v2 = vmax.f32 %v4354_v18, 1e-10  ;;  %v10134_v6 = vld [vmem:[#allocation111_spill] sm:$0xff]  ;;  %v10155_v13 = vld [vmem:[#allocation132_spill] sm:$0xff] }
 0x492   :  { %6897 = vlog2.f32 %v4705_v56  ;;  %v3914_v37 = vmul.f32 %v6416_v58, %v6416_v58  ;;  %v6417_v31 = vadd.f32 %v3516_v45, %v10131_v50  ;;  %v4175_v17 = vpack.c.bf16 %v4112_v46, %v4111_v26 }
 0x493   :  { %v5096_v10 = vpack.c.bf16 %v9602_v55, %v9593_v49  ;;  %v4113_v39 = vadd.f32 %v4013_v59, %v3913_v33  ;;  %6899 = vlog2.f32 %v4703_v2 }
 0x494   :  { %v4014_v9 = vmul.f32 %v6417_v31, %v6417_v31  ;;  %6170 = vmatprep.mubr.bf16.mxu1 %v4175_v17 }
 0x495   :  { %v3520_v0 = vpop.f32.mrb[152].mxu0 }
 0x496   :  { %v4114_v43 = vadd.f32 %v4014_v9, %v3914_v37  ;;  %v6418_v42 = vadd.f32 %v3520_v0, %v10132_v8  ;;  %v3522_v35 = vpop.f32.mrb[153].mxu0 }
 0x497   :  { %v6419_v44 = vadd.f32 %v3522_v35, %v10133_v21  ;;  %v3524_v41 = vpop.f32.mrb[154].mxu0 }
 0x498   :  { %v4176_v12 = vpack.c.bf16 %v4114_v43, %v4113_v39  ;;  %v3915_v22 = vmul.f32 %v6418_v42, %v6418_v42  ;;  %v6420_v48 = vadd.f32 %v3524_v41, %v10134_v6  ;;  %v3526_v26 = vpop.f32.mrb[155].mxu0 }
 0x499   :  { %v6894_v46 = vpop.eup %6893  ;;  %v4015_v18 = vmul.f32 %v6419_v44, %v6419_v44  ;;  %v6421_v33 = vadd.f32 %v3526_v26, %v9332_v32 }
 0x49a   :  { %v6896_v56 = vpop.eup %6895  ;;  %v4823_v58 = vmul.f32 0.6931472, %v6894_v46  ;;  %v3916_v45 = vmul.f32 %v6420_v48, %v6420_v48  ;;  %6171 = vmatmul.mubr.bf16.gmra.mrb[16].mxu1 %v4176_v12 }
 0x49b   :  { %v4819_v59 = vmul.f32 0.6931472, %v6896_v56  ;;  %v4115_v2 = vadd.f32 %v4015_v18, %v3915_v22  ;;  %v4016_v37 = vmul.f32 %v6421_v33, %v6421_v33 }
 0x49c   :  { %v6898_v50 = vpop.eup %6897  ;;  %v6120_v31 = vpop.f32.mrb[220].mxu1  ;;  %v5004_v9 = vmul.f32 4.3429446, %v4823_v58 }
 0x49d   :  { %v6900_v17 = vpop.eup %6899  ;;  %v4825_v39 = vmul.f32 0.6931472, %v6898_v50  ;;  %v4116_v0 = vadd.f32 %v4016_v37, %v3916_v45  ;;  %v4708_v43 = vmax.f32 %v6120_v31, 1e-10  ;;  %v5002_v8 = vmul.f32 4.3429446, %v4819_v59 }
 0x49e   :  { %v4821_v42 = vmul.f32 0.6931472, %v6900_v17  ;;  %v3530_v35 = vpop.f32.mrb[156].mxu0  ;;  %v4367_v21 = vpop.f32.mrb[221].mxu1  ;;  %v10135_v50 = vld [vmem:[#allocation112_spill] sm:$0xff] }
 0x49f   :  { %v5005_v44 = vmul.f32 4.3429446, %v4825_v39  ;;  %6901 = vlog2.f32 %v4708_v43  ;;  %v6422_v32 = vadd.f32 %v3530_v35, %v9335_v52  ;;  %v4706_v41 = vmax.f32 %v4367_v21, 1e-10  ;;  %v3532_v12 = vpop.f32.mrb[157].mxu0  ;;  %v6121_v6 = vpop.f32.mrb[222].mxu1 }
 0x4a0   :  { %v5003_v22 = vmul.f32 4.3429446, %v4821_v42  ;;  %v6423_v48 = vadd.f32 %v3532_v12, %v9338_v19  ;;  %v4709_v26 = vmax.f32 %v6121_v6, 1e-10  ;;  %v3534_v46 = vpop.f32.mrb[158].mxu0  ;;  %v4370_v18 = vpop.f32.mrb[223].mxu1  ;;  %v4177_v33 = vpack.c.bf16 %v4116_v0, %v4115_v2 }
 0x4a1   :  { %v3917_v56 = vmul.f32 %v6422_v32, %v6422_v32  ;;  %6903 = vlog2.f32 %v4706_v41  ;;  %v6424_v58 = vadd.f32 %v3534_v46, %v9340_v53  ;;  %v4707_v45 = vmax.f32 %v4370_v18, 1e-10  ;;  %v3536_v59 = vpop.f32.mrb[159].mxu0  ;;  %v10136_v0 = vld [vmem:[#allocation113_spill] sm:$0xff]  ;;  %v10137_v21 = vld [vmem:[#allocation114_spill] sm:$0xff]  ;;  %v10138_v6 = vld [vmem:[#allocation115_spill] sm:$0xff] }
 0x4a2   :  { %v4017_v37 = vmul.f32 %v6423_v48, %v6423_v48  ;;  %6905 = vlog2.f32 %v4709_v26  ;;  %v6425_v52 = vadd.f32 %v3536_v59, %v10135_v50  ;;  %6174 = vmatprep.mubr.bf16.mxu1 %v4177_v33  ;;  %v5098_v31 = vpack.c.bf16 %v5003_v22, %v5002_v8 }
 0x4a3   :  { %v3918_v17 = vmul.f32 %v6424_v58, %v6424_v58  ;;  %6907 = vlog2.f32 %v4707_v45  ;;  %v5099_v39 = vpack.c.bf16 %v5005_v44, %v5004_v9 }
 0x4a4   :  { %v4117_v19 = vadd.f32 %v4017_v37, %v3917_v56  ;;  %v4018_v43 = vmul.f32 %v6425_v52, %v6425_v52  ;;  %5986 = vmatprep.subr.bf16.mxu1 %v5098_v31 }
 0x4a5   :  { %5987 = vmatpush3.bf16.msra.mxu1 %v5090_v28  ;;  %v3540_v2 = vpop.f32.mrb[160].mxu0 }
 0x4a6   :  { %v4118_v53 = vadd.f32 %v4018_v43, %v3918_v17  ;;  %v6426_v42 = vadd.f32 %v3540_v2, %v10136_v0  ;;  %5988 = vmatprep.subr.bf16.mxu1 %v5099_v39  ;;  %v3542_v35 = vpop.f32.mrb[161].mxu0 }
 0x4a7   :  { %v6427_v32 = vadd.f32 %v3542_v35, %v10137_v21  ;;  %v3544_v41 = vpop.f32.mrb[162].mxu0 }
 0x4a8   :  { %v4178_v8 = vpack.c.bf16 %v4118_v53, %v4117_v19  ;;  %v3919_v12 = vmul.f32 %v6426_v42, %v6426_v42  ;;  %v6428_v9 = vadd.f32 %v3544_v41, %v10138_v6  ;;  %v3546_v44 = vpop.f32.mrb[163].mxu0 }
 0x4a9   :  { %v6902_v22 = vpop.eup %6901  ;;  %v4019_v48 = vmul.f32 %v6427_v32, %v6427_v32  ;;  %v6429_v26 = vadd.f32 %v3546_v44, %v9353_v30  ;;  %5989 = vmatpush3.bf16.msra.mxu1 %v5091_v25 }
 0x4aa   :  { %v4831_v15 = vmul.f32 0.6931472, %v6902_v22  ;;  %v3920_v23 = vmul.f32 %v6428_v9, %v6428_v9  ;;  %6175 = vmatmul.mubr.bf16.gmra.mrb[20].mxu1 %v4178_v8  ;;  %v10139_v9 = vld [vmem:[#allocation116_spill] sm:$0xff] }
 0x4ab   :  { %v6904_v28 = vpop.eup %6903  ;;  %v4119_v46 = vadd.f32 %v4019_v48, %v3919_v12  ;;  %v4020_v18 = vmul.f32 %v6429_v26, %v6429_v26 }
 0x4ac   :  { %v6906_v33 = vpop.eup %6905  ;;  %v4827_v56 = vmul.f32 0.6931472, %v6904_v28  ;;  %v6124_v58 = vpop.f32.mrb[224].mxu1  ;;  %v5008_v30 = vmul.f32 4.3429446, %v4831_v15 }
 0x4ad   :  { %v6908_v45 = vpop.eup %6907  ;;  %v4833_v59 = vmul.f32 0.6931472, %v6906_v33  ;;  %v4120_v37 = vadd.f32 %v4020_v18, %v3920_v23  ;;  %v4712_v50 = vmax.f32 %v6124_v58, 1e-10  ;;  %v3550_v52 = vpop.f32.mrb[164].mxu0  ;;  %v10140_v23 = vld [vmem:[#allocation117_spill] sm:$0xff] }
 0x4ae   :  { %v4383_v31 = vpop.f32.mrb[225].mxu1  ;;  %v4829_v17 = vmul.f32 0.6931472, %v6908_v45  ;;  %v6430_v14 = vadd.f32 %v3550_v52, %v9356_v60  ;;  %v5006_v25 = vmul.f32 4.3429446, %v4827_v56  ;;  %v3552_v19 = vpop.f32.mrb[165].mxu0 }
 0x4af   :  { %v4710_v57 = vmax.f32 %v4383_v31, 1e-10  ;;  %v5009_v39 = vmul.f32 4.3429446, %v4833_v59  ;;  %6909 = vlog2.f32 %v4712_v50  ;;  %v6125_v43 = vpop.f32.mrb[226].mxu1  ;;  %v4179_v2 = vpack.c.bf16 %v4120_v37, %v4119_v46  ;;  %v3554_v35 = vpop.f32.mrb[166].mxu0 }
 0x4b0   :  { %v5007_v53 = vmul.f32 4.3429446, %v4829_v17  ;;  %v3921_v0 = vmul.f32 %v6430_v14, %v6430_v14  ;;  %v6431_v42 = vadd.f32 %v3552_v19, %v9359_v34  ;;  %v4386_v21 = vpop.f32.mrb[227].mxu1  ;;  %v4713_v32 = vmax.f32 %v6125_v43, 1e-10  ;;  %v3556_v12 = vpop.f32.mrb[167].mxu0 }
 0x4b1   :  { %6911 = vlog2.f32 %v4710_v57  ;;  %v6432_v41 = vadd.f32 %v3554_v35, %v9361_v38  ;;  %v4711_v8 = vmax.f32 %v4386_v21, 1e-10  ;;  %6178 = vmatprep.mubr.bf16.mxu1 %v4179_v2  ;;  %v5101_v60 = vpack.c.bf16 %v5009_v39, %v5008_v30  ;;  %v10141_v18 = vld [vmem:[#allocation118_spill] sm:$0xff]  ;;  %v10142_v59 = vld [vmem:[#allocation119_spill] sm:$0xff] }
 0x4b2   :  { %v4021_v6 = vmul.f32 %v6431_v42, %v6431_v42  ;;  %v6433_v44 = vadd.f32 %v3556_v12, %v10139_v9  ;;  %v5100_v22 = vpack.c.bf16 %v5007_v53, %v5006_v25  ;;  %6913 = vlog2.f32 %v4713_v32 }
 0x4b3   :  { %v3922_v48 = vmul.f32 %v6432_v41, %v6432_v41  ;;  %6915 = vlog2.f32 %v4711_v8 }
 0x4b4   :  { %v4121_v26 = vadd.f32 %v4021_v6, %v3921_v0  ;;  %v4022_v15 = vmul.f32 %v6433_v44, %v6433_v44  ;;  %5990 = vmatprep.subr.bf16.mxu1 %v5100_v22 }
 0x4b5   :  { %5991 = vmatpush3.bf16.msra.mxu1 %v5092_v5  ;;  %v3560_v34 = vpop.f32.mrb[168].mxu0 }
 0x4b6   :  { %v4122_v38 = vadd.f32 %v4022_v15, %v3922_v48  ;;  %v6434_v28 = vadd.f32 %v3560_v34, %v10140_v23  ;;  %5992 = vmatprep.subr.bf16.mxu1 %v5101_v60  ;;  %v3562_v46 = vpop.f32.mrb[169].mxu0  ;;  %v10143_v34 = vld [vmem:[#allocation120_spill] sm:$0xff] }
 0x4b7   :  { %v6435_v33 = vadd.f32 %v3562_v46, %v10141_v18  ;;  %v3564_v56 = vpop.f32.mrb[170].mxu0 }
 0x4b8   :  { %v4180_v58 = vpack.c.bf16 %v4122_v38, %v4121_v26  ;;  %v3923_v45 = vmul.f32 %v6434_v28, %v6434_v28  ;;  %v6436_v37 = vadd.f32 %v3564_v56, %v10142_v59  ;;  %v3566_v50 = vpop.f32.mrb[171].mxu0  ;;  %v10145_v59 = vld [vmem:[#allocation122_spill] sm:$0xff] }
 0x4b9   :  { %v6910_v52 = vpop.eup %6909  ;;  %v4023_v31 = vmul.f32 %v6435_v33, %v6435_v33  ;;  %v6437_v30 = vadd.f32 %v3566_v50, %v9374_v40  ;;  %5993 = vmatpush3.bf16.msra.mxu1 %v5093_v29 }
 0x4ba   :  { %v4839_v1 = vmul.f32 0.6931472, %v6910_v52  ;;  %v3924_v5 = vmul.f32 %v6436_v37, %v6436_v37  ;;  %6179 = vmatmul.mubr.bf16.gmra.mrb[24].mxu1 %v4180_v58 }
 0x4bb   :  { %v6912_v51 = vpop.eup %6911  ;;  %v4123_v14 = vadd.f32 %v4023_v31, %v3923_v45  ;;  %v4024_v57 = vmul.f32 %v6437_v30, %v6437_v30  ;;  %v10146_v30 = vld [vmem:[#allocation123_spill] sm:$0xff] }
 0x4bc   :  { %v4835_v17 = vmul.f32 0.6931472, %v6912_v51  ;;  %v5012_v25 = vmul.f32 4.3429446, %v4839_v1  ;;  %v6128_v39 = vpop.f32.mrb[228].mxu1  ;;  %v6914_v19 = vpop.eup %6913 }
 0x4bd   :  { %v4124_v2 = vadd.f32 %v4024_v57, %v3924_v5  ;;  %v4716_v53 = vmax.f32 %v6128_v39, 1e-10  ;;  %v3570_v0 = vpop.f32.mrb[172].mxu0  ;;  %v4399_v42 = vpop.f32.mrb[229].mxu1  ;;  %v4841_v35 = vmul.f32 0.6931472, %v6914_v19 }
 0x4be   :  { %v5010_v43 = vmul.f32 4.3429446, %v4835_v17  ;;  %v6916_v40 = vpop.eup %6915  ;;  %v6438_v27 = vadd.f32 %v3570_v0, %v9377_v61  ;;  %v4714_v36 = vmax.f32 %v4399_v42, 1e-10  ;;  %v3572_v29 = vpop.f32.mrb[173].mxu0 }
 0x4bf   :  { %v6129_v21 = vpop.f32.mrb[230].mxu1  ;;  %v4837_v32 = vmul.f32 0.6931472, %v6916_v40  ;;  %6917 = vlog2.f32 %v4716_v53  ;;  %v6439_v41 = vadd.f32 %v3572_v29, %v9380_v16  ;;  %v3574_v12 = vpop.f32.mrb[174].mxu0  ;;  %v5013_v6 = vmul.f32 4.3429446, %v4841_v35 }
 0x4c0   :  { %v4717_v8 = vmax.f32 %v6129_v21, 1e-10  ;;  %v4402_v60 = vpop.f32.mrb[231].mxu1  ;;  %v3925_v9 = vmul.f32 %v6438_v27, %v6438_v27  ;;  %6919 = vlog2.f32 %v4714_v36  ;;  %v6440_v44 = vadd.f32 %v3574_v12, %v9382_v24  ;;  %v3576_v22 = vpop.f32.mrb[175].mxu0  ;;  %v10144_v24 = vld [vmem:[#allocation121_spill] sm:$0xff]  ;;  %v10147_v36 = vld [vmem:[#allocation124_spill] sm:$0xff] }
 0x4c1   :  { %v5011_v48 = vmul.f32 4.3429446, %v4837_v32  ;;  %v4025_v26 = vmul.f32 %v6439_v41, %v6439_v41  ;;  %v4715_v61 = vmax.f32 %v4402_v60, 1e-10  ;;  %v6441_v38 = vadd.f32 %v3576_v22, %v10143_v34  ;;  %v10148_v60 = vld [vmem:[#allocation125_spill] sm:$0xff] }
 0x4c2   :  { %6921 = vlog2.f32 %v4717_v8  ;;  %v3926_v15 = vmul.f32 %v6440_v44, %v6440_v44  ;;  %v4181_v23 = vpack.c.bf16 %v4124_v2, %v4123_v14  ;;  %v5103_v28 = vpack.c.bf16 %v5013_v6, %v5012_v25 }
 0x4c3   :  { %v4125_v46 = vadd.f32 %v4025_v26, %v3925_v9  ;;  %6923 = vlog2.f32 %v4715_v61  ;;  %v5102_v16 = vpack.c.bf16 %v5011_v48, %v5010_v43  ;;  %v4026_v18 = vmul.f32 %v6441_v38, %v6441_v38  ;;  %v10149_v48 = vld [vmem:[#allocation126_spill] sm:$0xff] }
 0x4c4   :  { %6182 = vmatprep.mubr.bf16.mxu1 %v4181_v23  ;;  %v10150_v23 = vld [vmem:[#allocation127_spill] sm:$0xff] }
 0x4c5   :  { %5994 = vmatprep.subr.bf16.mxu1 %v5102_v16  ;;  %v3580_v33 = vpop.f32.mrb[176].mxu0  ;;  %v4126_v56 = vadd.f32 %v4026_v18, %v3926_v15 }
 0x4c6   :  { %5995 = vmatpush3.bf16.msra.mxu1 %v5094_v20  ;;  %v6442_v58 = vadd.f32 %v3580_v33, %v10144_v24  ;;  %v3582_v45 = vpop.f32.mrb[177].mxu0 }
 0x4c7   :  { %5996 = vmatprep.subr.bf16.mxu1 %v5103_v28  ;;  %v6443_v37 = vadd.f32 %v3582_v45, %v10145_v59  ;;  %v3584_v50 = vpop.f32.mrb[178].mxu0  ;;  %v4182_v52 = vpack.c.bf16 %v4126_v56, %v4125_v46 }
 0x4c8   :  { %v3927_v31 = vmul.f32 %v6442_v58, %v6442_v58  ;;  %v6444_v51 = vadd.f32 %v3584_v50, %v10146_v30  ;;  %v3586_v1 = vpop.f32.mrb[179].mxu0  ;;  %v10151_v58 = vld [vmem:[#allocation128_spill] sm:$0xff] }
 0x4c9   :  { %v6918_v5 = vpop.eup %6917  ;;  %v4027_v17 = vmul.f32 %v6443_v37, %v6443_v37  ;;  %v6445_v14 = vadd.f32 %v3586_v1, %v9395_v11  ;;  %6183 = vmatmul.mubr.bf16.gmra.mrb[28].mxu1 %v4182_v52  ;;  %v10152_v37 = vld [vmem:[#allocation129_spill] sm:$0xff] }
 0x4ca   :  { %v6920_v57 = vpop.eup %6919  ;;  %v3928_v25 = vmul.f32 %v6444_v51, %v6444_v51  ;;  %5997 = vmatpush3.bf16.msra.mxu1 %v5095_v63  ;;  %v4847_v7 = vmul.f32 0.6931472, %v6918_v5  ;;  %v10153_v51 = vld [vmem:[#allocation130_spill] sm:$0xff] }
 0x4cb   :  { %v4843_v20 = vmul.f32 0.6931472, %v6920_v57  ;;  %v4127_v39 = vadd.f32 %v4027_v17, %v3927_v31  ;;  %v4028_v19 = vmul.f32 %v6445_v14, %v6445_v14  ;;  %v10154_v57 = vld [vmem:[#allocation131_spill] sm:$0xff] }
 0x4cc   :  { %v6922_v4 = vpop.eup %6921  ;;  %v6132_v2 = vpop.f32.mrb[232].mxu1  ;;  %v5016_v62 = vmul.f32 4.3429446, %v4847_v7 }
 0x4cd   :  { %v4849_v43 = vmul.f32 0.6931472, %v6922_v4  ;;  %v6924_v53 = vpop.eup %6923  ;;  %v4128_v0 = vadd.f32 %v4028_v19, %v3928_v25  ;;  %v4720_v42 = vmax.f32 %v6132_v2, 1e-10  ;;  %v3590_v40 = vpop.f32.mrb[180].mxu0 }
 0x4ce   :  { %v4415_v35 = vpop.f32.mrb[233].mxu1  ;;  %v4845_v27 = vmul.f32 0.6931472, %v6924_v53  ;;  %v6446_v29 = vadd.f32 %v3590_v40, %v10147_v36  ;;  %v5014_v3 = vmul.f32 4.3429446, %v4843_v20  ;;  %v3592_v63 = vpop.f32.mrb[181].mxu0 }
 0x4cf   :  { %v5017_v11 = vmul.f32 4.3429446, %v4849_v43  ;;  %v4718_v21 = vmax.f32 %v4415_v35, 1e-10  ;;  %6925 = vlog2.f32 %v4720_v42  ;;  %v6133_v32 = vpop.f32.mrb[234].mxu1  ;;  %v4183_v41 = vpack.c.bf16 %v4128_v0, %v4127_v39  ;;  %v3594_v9 = vpop.f32.mrb[182].mxu0 }
 0x4d0   :  { %v5015_v8 = vmul.f32 4.3429446, %v4845_v27  ;;  %v3929_v12 = vmul.f32 %v6446_v29, %v6446_v29  ;;  %v6447_v6 = vadd.f32 %v3592_v63, %v10148_v60  ;;  %v4418_v44 = vpop.f32.mrb[235].mxu1  ;;  %v4721_v22 = vmax.f32 %v6133_v32, 1e-10  ;;  %v3596_v15 = vpop.f32.mrb[183].mxu0 }
 0x4d1   :  { %6927 = vlog2.f32 %v4718_v21  ;;  %v6448_v26 = vadd.f32 %v3594_v9, %v10149_v48  ;;  %v4719_v61 = vmax.f32 %v4418_v44, 1e-10  ;;  %6186 = vmatprep.mubr.bf16.mxu1 %v4183_v41  ;;  %v5105_v34 = vpack.c.bf16 %v5017_v11, %v5016_v62  ;;  %v10156_v21 = vld [vmem:[#allocation133_spill] sm:$0xff] }
 0x4d2   :  { %v4029_v38 = vmul.f32 %v6447_v6, %v6447_v6  ;;  %v6449_v28 = vadd.f32 %v3596_v15, %v10150_v23  ;;  %v5104_v46 = vpack.c.bf16 %v5015_v8, %v5014_v3  ;;  %6929 = vlog2.f32 %v4721_v22 }
 0x4d3   :  { %v3930_v16 = vmul.f32 %v6448_v26, %v6448_v26  ;;  %6931 = vlog2.f32 %v4719_v61  ;;  %v10158_v61 = vld [vmem:[#allocation135_spill] sm:$0xff] }
 0x4d4   :  { %v4129_v18 = vadd.f32 %v4029_v38, %v3929_v12  ;;  %v4030_v33 = vmul.f32 %v6449_v28, %v6449_v28  ;;  %5998 = vmatprep.subr.bf16.mxu1 %v5104_v46  ;;  %v10157_v12 = vld [vmem:[#allocation134_spill] sm:$0xff] }
 0x4d5   :  { %5999 = vmatpush3.bf16.msra.mxu1 %v5096_v10  ;;  %v3600_v56 = vpop.f32.mrb[184].mxu0 }
 0x4d6   :  { %v4130_v24 = vadd.f32 %v4030_v33, %v3930_v16  ;;  %v6450_v45 = vadd.f32 %v3600_v56, %v10151_v58  ;;  %6000 = vmatprep.subr.bf16.mxu1 %v5105_v34  ;;  %v3602_v59 = vpop.f32.mrb[185].mxu0 }
 0x4d7   :  { %v6451_v50 = vadd.f32 %v3602_v59, %v10152_v37  ;;  %v3604_v52 = vpop.f32.mrb[186].mxu0 }
 0x4d8   :  { %v4184_v31 = vpack.c.bf16 %v4130_v24, %v4129_v18  ;;  %v3931_v30 = vmul.f32 %v6450_v45, %v6450_v45  ;;  %v6452_v1 = vadd.f32 %v3604_v52, %v10153_v51  ;;  %v3606_v5 = vpop.f32.mrb[187].mxu0  ;;  %v10159_v18 = vld [vmem:[#allocation136_spill] sm:$0xff]  ;;  %v10160_v24 = vld [vmem:[#allocation137_spill] sm:$0xff] }
 0x4d9   :  { %v6926_v17 = vpop.eup %6925  ;;  %v4031_v14 = vmul.f32 %v6451_v50, %v6451_v50  ;;  %v6453_v25 = vadd.f32 %v3606_v5, %v10154_v57  ;;  %6001 = vmatpush3.bf16.msra.mxu1 %v5097_v47  ;;  %v10161_v50 = vld [vmem:[#allocation38_spill] sm:$0xff] }
 0x4da   :  { %v4855_v55 = vmul.f32 0.6931472, %v6926_v17  ;;  %v3932_v10 = vmul.f32 %v6452_v1, %v6452_v1  ;;  %6187 = vmatmul.mubr.bf16.gmra.mrb[32].mxu1 %v4184_v31  ;;  %v10162_v1 = vld [vmem:[#allocation33_spill] sm:$0xff] }
 0x4db   :  { %v6928_v49 = vpop.eup %6927  ;;  %v4131_v7 = vadd.f32 %v4031_v14, %v3931_v30  ;;  %v4032_v20 = vmul.f32 %v6453_v25, %v6453_v25 }
 0x4dc   :  { %v4851_v4 = vmul.f32 0.6931472, %v6928_v49  ;;  %v9667_v39 = vmul.f32 4.3429446, %v4855_v55  ;;  %v6136_v19 = vpop.f32.mrb[236].mxu1  ;;  %v6930_v43 = vpop.eup %6929 }
 0x4dd   :  { %v4132_v53 = vadd.f32 %v4032_v20, %v3932_v10  ;;  %v4724_v0 = vmax.f32 %v6136_v19, 1e-10  ;;  %v3610_v42 = vpop.f32.mrb[188].mxu0  ;;  %v4431_v40 = vpop.f32.mrb[237].mxu1  ;;  %v4857_v54 = vmul.f32 0.6931472, %v6930_v43 }
 0x4de   :  { %v9669_v2 = vmul.f32 4.3429446, %v4851_v4  ;;  %v6932_v35 = vpop.eup %6931  ;;  %v6454_v47 = vadd.f32 %v3610_v42, %v10155_v13  ;;  %v4722_v11 = vmax.f32 %v4431_v40, 1e-10  ;;  %v3612_v27 = vpop.f32.mrb[189].mxu0 }
 0x4df   :  { %v6137_v36 = vpop.f32.mrb[238].mxu1  ;;  %v4853_v29 = vmul.f32 0.6931472, %v6932_v35  ;;  %6933 = vlog2.f32 %v4724_v0  ;;  %v6455_v62 = vadd.f32 %v3612_v27, %v10156_v21  ;;  %v3614_v63 = vpop.f32.mrb[190].mxu0  ;;  %v9673_v41 = vmul.f32 4.3429446, %v4857_v54 }
 0x4e0   :  { %v4725_v3 = vmax.f32 %v6137_v36, 1e-10  ;;  %v4434_v32 = vpop.f32.mrb[239].mxu1  ;;  %v3933_v8 = vmul.f32 %v6454_v47, %v6454_v47  ;;  %6935 = vlog2.f32 %v4722_v11  ;;  %v6456_v60 = vadd.f32 %v3614_v63, %v10157_v12  ;;  %v3616_v6 = vpop.f32.mrb[191].mxu0  ;;  %v10163_v54 = vld [vmem:[#allocation34_spill] sm:$0xff] }
 0x4e1   :  { %v9676_v9 = vmul.f32 4.3429446, %v4853_v29  ;;  %v4033_v44 = vmul.f32 %v6455_v62, %v6455_v62  ;;  %v4723_v22 = vmax.f32 %v4434_v32, 1e-10  ;;  %v5107_v48 = vpack.c.bf16 %v9673_v41, %v9667_v39 }
 0x4e2   :  { %6937 = vlog2.f32 %v4725_v3  ;;  %v3934_v26 = vmul.f32 %v6456_v60, %v6456_v60  ;;  %v6457_v15 = vadd.f32 %v3616_v6, %v10158_v61  ;;  %v4185_v34 = vpack.c.bf16 %v4132_v53, %v4131_v7  ;;  %v10165_v6 = vld [vmem:[#allocation138_spill] sm:$0xff] }
 0x4e3   :  { %v5106_v38 = vpack.c.bf16 %v9676_v9, %v9669_v2  ;;  %v4133_v23 = vadd.f32 %v4033_v44, %v3933_v8  ;;  %6939 = vlog2.f32 %v4723_v22  ;;  %v10164_v8 = vld [vmem:[#allocation35_spill] sm:$0xff] }
 0x4e4   :  { %v4034_v28 = vmul.f32 %v6457_v15, %v6457_v15  ;;  %6190 = vmatprep.mubr.bf16.mxu1 %v4185_v34  ;;  %v10166_v15 = vld [vmem:[#allocation139_spill] sm:$0xff] }
 0x4e5   :  { %v3620_v46 = vpop.f32.mrb[192].mxu0 }
 0x4e6   :  { %v4134_v16 = vadd.f32 %v4034_v28, %v3934_v26  ;;  %v6458_v33 = vadd.f32 %v3620_v46, %v10159_v18  ;;  %v3622_v56 = vpop.f32.mrb[193].mxu0 }
 0x4e7   :  { %v6459_v58 = vadd.f32 %v3622_v56, %v10160_v24  ;;  %v3624_v45 = vpop.f32.mrb[194].mxu0 }
 0x4e8   :  { %v4186_v59 = vpack.c.bf16 %v4134_v16, %v4133_v23  ;;  %v3935_v37 = vmul.f32 %v6458_v33, %v6458_v33  ;;  %v6460_v52 = vadd.f32 %v3624_v45, %v10161_v50  ;;  %v3626_v31 = vpop.f32.mrb[195].mxu0  ;;  %v5086_v16 = vld [vmem:[#allocation11] sm:$0xff] }
 0x4e9   :  { %v6934_v30 = vpop.eup %6933  ;;  %v4035_v51 = vmul.f32 %v6459_v58, %v6459_v58  ;;  %v6461_v5 = vadd.f32 %v3626_v31, %v10162_v1  ;;  %v5895_v56 = vcombine.high %v5086_v16, %v5086_v16 }
 0x4ea   :  { %v6936_v17 = vpop.eup %6935  ;;  %v4863_v14 = vmul.f32 0.6931472, %v6934_v30  ;;  %v3936_v57 = vmul.f32 %v6460_v52, %v6460_v52  ;;  %6191 = vmatmul.mubr.bf16.gmra.mrb[36].mxu1 %v4186_v59 }
 0x4eb   :  { %v4859_v49 = vmul.f32 0.6931472, %v6936_v17  ;;  %v4135_v55 = vadd.f32 %v4035_v51, %v3935_v37  ;;  %v4036_v10 = vmul.f32 %v6461_v5, %v6461_v5 }
 0x4ec   :  { %v6938_v25 = vpop.eup %6937  ;;  %v6140_v7 = vpop.f32.mrb[240].mxu1  ;;  %v9687_v19 = vmul.f32 4.3429446, %v4863_v14  ;;  %v5894_v14 = vcombine.low %v5086_v16, %v5086_v16 }
 0x4ed   :  { %v4865_v4 = vmul.f32 0.6931472, %v6938_v25  ;;  %v6940_v20 = vpop.eup %6939  ;;  %v4136_v43 = vadd.f32 %v4036_v10, %v3936_v57  ;;  %v4728_v53 = vmax.f32 %v6140_v7, 1e-10  ;;  %v3630_v0 = vpop.f32.mrb[196].mxu0 }
 0x4ee   :  { %v4447_v42 = vpop.f32.mrb[241].mxu1  ;;  %v4861_v35 = vmul.f32 0.6931472, %v6940_v20  ;;  %v6462_v13 = vadd.f32 %v3630_v0, %v10163_v54  ;;  %v9692_v11 = vmul.f32 4.3429446, %v4859_v49  ;;  %v3632_v27 = vpop.f32.mrb[197].mxu0 }
 0x4ef   :  { %v9689_v40 = vmul.f32 4.3429446, %v4865_v4  ;;  %v4726_v47 = vmax.f32 %v4447_v42, 1e-10  ;;  %6941 = vlog2.f32 %v4728_v53  ;;  %v6141_v36 = vpop.f32.mrb[242].mxu1  ;;  %v4187_v29 = vpack.c.bf16 %v4136_v43, %v4135_v55  ;;  %v3634_v63 = vpop.f32.mrb[198].mxu0 }
 0x4f0   :  { %v9696_v62 = vmul.f32 4.3429446, %v4861_v35  ;;  %v3937_v3 = vmul.f32 %v6462_v13, %v6462_v13  ;;  %v4450_v32 = vpop.f32.mrb[243].mxu1  ;;  %v6463_v12 = vadd.f32 %v3632_v27, %v10164_v8  ;;  %v4729_v60 = vmax.f32 %v6141_v36, 1e-10  ;;  %v3636_v26 = vpop.f32.mrb[199].mxu0 }
 0x4f1   :  { %v5109_v21 = vpack.c.bf16 %v9689_v40, %v9687_v19  ;;  %6943 = vlog2.f32 %v4726_v47  ;;  %v6464_v44 = vadd.f32 %v3634_v63, %v10165_v6  ;;  %v4727_v22 = vmax.f32 %v4450_v32, 1e-10  ;;  %6194 = vmatprep.mubr.bf16.mxu1 %v4187_v29 }
 0x4f2   :  { %v5108_v61 = vpack.c.bf16 %v9696_v62, %v9692_v11  ;;  %v6465_v34 = vadd.f32 %v3636_v26, %v10166_v15  ;;  %v4037_v23 = vmul.f32 %v6463_v12, %v6463_v12  ;;  %6945 = vlog2.f32 %v4729_v60 }
 0x4f3   :  { %v3938_v28 = vmul.f32 %v6464_v44, %v6464_v44  ;;  %6947 = vlog2.f32 %v4727_v22 }
 0x4f4   :  { %v4038_v46 = vmul.f32 %v6465_v34, %v6465_v34  ;;  %v4137_v18 = vadd.f32 %v4037_v23, %v3937_v3 }
 0x4f6   :  { %v4138_v33 = vadd.f32 %v4038_v46, %v3938_v28 }
 0x4f8   :  { %v4188_v24 = vpack.c.bf16 %v4138_v33, %v4137_v18 }
 0x4f9   :  { %v6942_v58 = vpop.eup %6941 }
 0x4fa   :  { %6195 = vmatmul.mubr.bf16.gmra.mrb[40].mxu1 %v4188_v24  ;;  %v4871_v59 = vmul.f32 0.6931472, %v6942_v58 }
 0x4fb   :  { %v6944_v45 = vpop.eup %6943  ;;  %5199 = vmatprep.mubr.bf16.mxu1 %v5895_v56 }
 0x4fc   :  { %v6144_v37 = vpop.f32.mrb[244].mxu1  ;;  %v6946_v50 = vpop.eup %6945  ;;  %v4867_v52 = vmul.f32 0.6931472, %v6944_v45  ;;  %v9703_v55 = vmul.f32 4.3429446, %v4871_v59 }
 0x4fd   :  { %v4732_v31 = vmax.f32 %v6144_v37, 1e-10  ;;  %v4463_v30 = vpop.f32.mrb[245].mxu1  ;;  %v6948_v51 = vpop.eup %6947  ;;  %v4873_v1 = vmul.f32 0.6931472, %v6946_v50 }
 0x4fe   :  { %v4730_v5 = vmax.f32 %v4463_v30, 1e-10  ;;  %v6145_v17 = vpop.f32.mrb[246].mxu1  ;;  %v4869_v57 = vmul.f32 0.6931472, %v6948_v51 }
 0x4ff   :  { %6949 = vlog2.f32 %v4732_v31  ;;  %v4733_v25 = vmax.f32 %v6145_v17, 1e-10  ;;  %v4466_v49 = vpop.f32.mrb[247].mxu1  ;;  %v9705_v10 = vmul.f32 4.3429446, %v4873_v1 }
 0x500   :  { %6951 = vlog2.f32 %v4730_v5  ;;  %v4731_v4 = vmax.f32 %v4466_v49, 1e-10  ;;  %v9707_v7 = vmul.f32 4.3429446, %v4867_v52  ;;  %v9709_v20 = vmul.f32 4.3429446, %v4869_v57 }
 0x501   :  { %6953 = vlog2.f32 %v4733_v25  ;;  %v5111_v43 = vpack.c.bf16 %v9705_v10, %v9703_v55  ;;  %v9727_v25 = vld [vmem:[#allocation11 + $0x8] sm:$0xff] }
 0x502   :  { %6955 = vlog2.f32 %v4731_v4  ;;  %5200 = vmatmul.mubr.bf16.vlgmr.msra.gmra.mrb[44].mxu1 %v5894_v14  ;;  %v5110_v53 = vpack.c.bf16 %v9709_v20, %v9707_v7  ;;  %v5897_v4 = vcombine.high %v9727_v25, %v9727_v25 }
 0x504   :  { %5239 = vmatprep.mubr.bf16.mxu1 %v5897_v4 }
 0x509   :  { %v6950_v0 = vpop.eup %6949 }
 0x50a   :  { %v6952_v42 = vpop.eup %6951  ;;  %v4879_v35 = vmul.f32 0.6931472, %v6950_v0 }
 0x50b   :  { %v6954_v54 = vpop.eup %6953  ;;  %v4875_v13 = vmul.f32 0.6931472, %v6952_v42 }
 0x50c   :  { %v6956_v47 = vpop.eup %6955  ;;  %v4881_v27 = vmul.f32 0.6931472, %v6954_v54  ;;  %v6148_v36 = vpop.f32.mrb[248].mxu1  ;;  %v9715_v29 = vmul.f32 4.3429446, %v4879_v35 }
 0x50d   :  { %v4877_v3 = vmul.f32 0.6931472, %v6956_v47  ;;  %v4736_v63 = vmax.f32 %v6148_v36, 1e-10  ;;  %v9717_v32 = vmul.f32 4.3429446, %v4875_v13 }
 0x50e   :  { %v9719_v8 = vmul.f32 4.3429446, %v4881_v27  ;;  %v4479_v12 = vpop.f32.mrb[249].mxu1 }
 0x50f   :  { %v9721_v60 = vmul.f32 4.3429446, %v4877_v3  ;;  %6957 = vlog2.f32 %v4736_v63  ;;  %v4734_v6 = vmax.f32 %v4479_v12, 1e-10  ;;  %v6149_v44 = vpop.f32.mrb[250].mxu1 }
 0x510   :  { %v5113_v22 = vpack.c.bf16 %v9719_v8, %v9715_v29  ;;  %v4737_v26 = vmax.f32 %v6149_v44, 1e-10  ;;  %v4482_v15 = vpop.f32.mrb[251].mxu1 }
 0x511   :  { %v5112_v34 = vpack.c.bf16 %v9721_v60, %v9717_v32  ;;  %6959 = vlog2.f32 %v4734_v6  ;;  %v4735_v23 = vmax.f32 %v4482_v15, 1e-10 }
 0x512   :  { %6961 = vlog2.f32 %v4737_v26 }
 0x513   :  { %6963 = vlog2.f32 %v4735_v23 }
 0x519   :  { %v6958_v28 = vpop.eup %6957 }
 0x51a   :  { %v4887_v46 = vmul.f32 0.6931472, %v6958_v28 }
 0x51b   :  { %v6960_v16 = vpop.eup %6959 }
 0x51c   :  { %v6962_v18 = vpop.eup %6961  ;;  %v4883_v33 = vmul.f32 0.6931472, %v6960_v16  ;;  %v6152_v56 = vpop.f32.mrb[252].mxu1  ;;  %v5036_v37 = vmul.f32 4.3429446, %v4887_v46 }
 0x51d   :  { %v6964_v24 = vpop.eup %6963  ;;  %v4889_v58 = vmul.f32 0.6931472, %v6962_v18  ;;  %v4740_v45 = vmax.f32 %v6152_v56, 1e-10  ;;  %v4495_v59 = vpop.f32.mrb[253].mxu1 }
 0x51e   :  { %v4885_v50 = vmul.f32 0.6931472, %v6964_v24  ;;  %v4738_v52 = vmax.f32 %v4495_v59, 1e-10  ;;  %v5034_v31 = vmul.f32 4.3429446, %v4883_v33 }
 0x51f   :  { %v5037_v30 = vmul.f32 4.3429446, %v4889_v58  ;;  %6965 = vlog2.f32 %v4740_v45  ;;  %v6153_v51 = vpop.f32.mrb[254].mxu1 }
 0x520   :  { %v5035_v1 = vmul.f32 4.3429446, %v4885_v50  ;;  %6967 = vlog2.f32 %v4738_v52  ;;  %v4741_v5 = vmax.f32 %v6153_v51, 1e-10  ;;  %v4498_v17 = vpop.f32.mrb[255].mxu1 }
 0x521   :  { %v4739_v14 = vmax.f32 %v4498_v17, 1e-10  ;;  %v5115_v57 = vpack.c.bf16 %v5037_v30, %v5036_v37 }
 0x522   :  { %6969 = vlog2.f32 %v4741_v5  ;;  %v5114_v49 = vpack.c.bf16 %v5035_v1, %v5034_v31 }
 0x523   :  { %6971 = vlog2.f32 %v4739_v14 }
 0x524   :  { %6008 = vmatprep.subr.bf16.mxu1 %v5114_v49 }
 0x525   :  { %6009 = vmatpush3.bf16.msra.mxu1 %v5106_v38 }
 0x526   :  { %6010 = vmatprep.subr.bf16.mxu1 %v5115_v57 }
 0x529   :  { %v6966_v0 = vpop.eup %6965  ;;  %6011 = vmatpush3.bf16.msra.mxu1 %v5107_v48 }
 0x52a   :  { %v6968_v42 = vpop.eup %6967  ;;  %v4895_v35 = vmul.f32 0.6931472, %v6966_v0 }
 0x52b   :  { %v4891_v54 = vmul.f32 0.6931472, %v6968_v42 }
 0x52c   :  { %v6970_v13 = vpop.eup %6969  ;;  %v6156_v47 = vpop.f32.mrb[0].mxu1  ;;  %v5040_v36 = vmul.f32 4.3429446, %v4895_v35 }
 0x52d   :  { %v6972_v27 = vpop.eup %6971  ;;  %v4897_v3 = vmul.f32 0.6931472, %v6970_v13  ;;  %v4744_v63 = vmax.f32 %v6156_v47, 1e-10  ;;  %v5038_v12 = vmul.f32 4.3429446, %v4891_v54 }
 0x52e   :  { %v4893_v6 = vmul.f32 0.6931472, %v6972_v27  ;;  %v4511_v44 = vpop.f32.mrb[1].mxu1 }
 0x52f   :  { %v5041_v2 = vmul.f32 4.3429446, %v4897_v3  ;;  %6973 = vlog2.f32 %v4744_v63  ;;  %v4742_v9 = vmax.f32 %v4511_v44, 1e-10  ;;  %v6157_v38 = vpop.f32.mrb[2].mxu1  ;;  %v5896_v63 = vcombine.low %v9727_v25, %v9727_v25 }
 0x530   :  { %v5039_v26 = vmul.f32 4.3429446, %v4893_v6  ;;  %v4745_v15 = vmax.f32 %v6157_v38, 1e-10  ;;  %v4514_v39 = vpop.f32.mrb[3].mxu1  ;;  %v9757_v6 = vld [vmem:[#allocation11 + $0x10] sm:$0xff] }
 0x531   :  { %6975 = vlog2.f32 %v4742_v9  ;;  %v4743_v41 = vmax.f32 %v4514_v39, 1e-10  ;;  %v5117_v48 = vpack.c.bf16 %v5041_v2, %v5040_v36  ;;  %v5899_v9 = vcombine.high %v9757_v6, %v9757_v6 }
 0x532   :  { %6977 = vlog2.f32 %v4745_v15  ;;  %v5116_v23 = vpack.c.bf16 %v5039_v26, %v5038_v12 }
 0x533   :  { %6979 = vlog2.f32 %v4743_v41 }
 0x534   :  { %6012 = vmatprep.subr.bf16.mxu1 %v5116_v23 }
 0x535   :  { %6013 = vmatpush3.bf16.msra.mxu1 %v5108_v61 }
 0x536   :  { %6014 = vmatprep.subr.bf16.mxu1 %v5117_v48 }
 0x539   :  { %v6974_v28 = vpop.eup %6973  ;;  %6015 = vmatpush3.bf16.msra.mxu1 %v5109_v21 }
 0x53a   :  { %v4903_v46 = vmul.f32 0.6931472, %v6974_v28 }
 0x53b   :  { %v6976_v16 = vpop.eup %6975 }
 0x53c   :  { %v6978_v18 = vpop.eup %6977  ;;  %v4899_v33 = vmul.f32 0.6931472, %v6976_v16  ;;  %v5044_v45 = vmul.f32 4.3429446, %v4903_v46 }
 0x53d   :  { %v6980_v56 = vpop.eup %6979  ;;  %v4905_v24 = vmul.f32 0.6931472, %v6978_v18  ;;  %v6160_v58 = vpop.f32.mrb[4].mxu1 }
 0x53e   :  { %v4901_v59 = vmul.f32 0.6931472, %v6980_v56  ;;  %v4748_v37 = vmax.f32 %v6160_v58, 1e-10  ;;  %v5042_v50 = vmul.f32 4.3429446, %v4899_v33 }
 0x53f   :  { %v5045_v52 = vmul.f32 4.3429446, %v4905_v24  ;;  %v4527_v11 = vpop.f32.mrb[5].mxu1 }
 0x540   :  { %v5043_v62 = vmul.f32 4.3429446, %v4901_v59  ;;  %6981 = vlog2.f32 %v4748_v37  ;;  %v4746_v61 = vmax.f32 %v4527_v11, 1e-10  ;;  %v6161_v31 = vpop.f32.mrb[6].mxu1 }
 0x541   :  { %v4749_v30 = vmax.f32 %v6161_v31, 1e-10  ;;  %v4530_v19 = vpop.f32.mrb[7].mxu1  ;;  %v5119_v40 = vpack.c.bf16 %v5045_v52, %v5044_v45 }
 0x542   :  { %6983 = vlog2.f32 %v4746_v61  ;;  %v4747_v21 = vmax.f32 %v4530_v19, 1e-10  ;;  %v5118_v51 = vpack.c.bf16 %v5043_v62, %v5042_v50 }
 0x543   :  { %6985 = vlog2.f32 %v4749_v30 }
 0x544   :  { %6987 = vlog2.f32 %v4747_v21  ;;  %6016 = vmatprep.subr.bf16.mxu1 %v5118_v51 }
 0x545   :  { %6017 = vmatpush3.bf16.msra.mxu1 %v5110_v53 }
 0x546   :  { %6018 = vmatprep.subr.bf16.mxu1 %v5119_v40 }
 0x549   :  { %6019 = vmatpush3.bf16.msra.mxu1 %v5111_v43 }
 0x54a   :  { %v6982_v1 = vpop.eup %6981 }
 0x54b   :  { %v4911_v5 = vmul.f32 0.6931472, %v6982_v1 }
 0x54c   :  { %v6984_v17 = vpop.eup %6983 }
 0x54d   :  { %v6986_v14 = vpop.eup %6985  ;;  %v4907_v57 = vmul.f32 0.6931472, %v6984_v17  ;;  %v6164_v49 = vpop.f32.mrb[8].mxu1  ;;  %v5048_v54 = vmul.f32 4.3429446, %v4911_v5 }
 0x54e   :  { %v6988_v4 = vpop.eup %6987  ;;  %v4913_v0 = vmul.f32 0.6931472, %v6986_v14  ;;  %v4752_v42 = vmax.f32 %v6164_v49, 1e-10  ;;  %v4543_v35 = vpop.f32.mrb[9].mxu1 }
 0x54f   :  { %v4909_v13 = vmul.f32 0.6931472, %v6988_v4  ;;  %v4750_v47 = vmax.f32 %v4543_v35, 1e-10  ;;  %v5046_v7 = vmul.f32 4.3429446, %v4907_v57 }
 0x550   :  { %v5049_v20 = vmul.f32 4.3429446, %v4913_v0  ;;  %6989 = vlog2.f32 %v4752_v42  ;;  %v6165_v53 = vpop.f32.mrb[10].mxu1 }
 0x551   :  { %v5047_v27 = vmul.f32 4.3429446, %v4909_v13  ;;  %6991 = vlog2.f32 %v4750_v47  ;;  %v4753_v55 = vmax.f32 %v6165_v53, 1e-10  ;;  %v4546_v10 = vpop.f32.mrb[11].mxu1 }
 0x552   :  { %v4751_v43 = vmax.f32 %v4546_v10, 1e-10  ;;  %v5121_v36 = vpack.c.bf16 %v5049_v20, %v5048_v54 }
 0x553   :  { %6993 = vlog2.f32 %v4753_v55  ;;  %v5120_v3 = vpack.c.bf16 %v5047_v27, %v5046_v7 }
 0x554   :  { %6995 = vlog2.f32 %v4751_v43 }
 0x555   :  { %6020 = vmatprep.subr.bf16.mxu1 %v5120_v3 }
 0x556   :  { %6021 = vmatpush3.bf16.msra.mxu1 %v5112_v34 }
 0x557   :  { %6022 = vmatprep.subr.bf16.mxu1 %v5121_v36 }
 0x55a   :  { %v6990_v12 = vpop.eup %6989  ;;  %6023 = vmatpush3.bf16.msra.mxu1 %v5113_v22 }
 0x55b   :  { %v6992_v44 = vpop.eup %6991  ;;  %v4919_v2 = vmul.f32 0.6931472, %v6990_v12 }
 0x55c   :  { %v4915_v38 = vmul.f32 0.6931472, %v6992_v44 }
 0x55d   :  { %v6994_v26 = vpop.eup %6993  ;;  %v9761_v32 = vmul.f32 4.3429446, %v4919_v2  ;;  %5240 = vmatmul.mubr.bf16.vlgmr.msra.gmra.mrb[48].mxu1 %v5896_v63 }
 0x55e   :  { %v6996_v60 = vpop.eup %6995  ;;  %v9763_v34 = vmul.f32 4.3429446, %v4915_v38  ;;  %v4921_v25 = vmul.f32 0.6931472, %v6994_v26  ;;  %v6168_v15 = vpop.f32.mrb[12].mxu1  ;;  %5279 = vmatprep.mubr.bf16.mxu1 %v5899_v9 }
 0x55f   :  { %v4917_v29 = vmul.f32 0.6931472, %v6996_v60  ;;  %v4756_v8 = vmax.f32 %v6168_v15, 1e-10  ;;  %v4559_v22 = vpop.f32.mrb[13].mxu1 }
 0x560   :  { %v9765_v39 = vmul.f32 4.3429446, %v4921_v25  ;;  %v4754_v41 = vmax.f32 %v4559_v22, 1e-10  ;;  %v6169_v48 = vpop.f32.mrb[14].mxu1 }
 0x561   :  { %v9767_v23 = vmul.f32 4.3429446, %v4917_v29  ;;  %6997 = vlog2.f32 %v4756_v8  ;;  %v4757_v28 = vmax.f32 %v6169_v48, 1e-10  ;;  %v4562_v46 = vpop.f32.mrb[15].mxu1 }
 0x562   :  { %v5123_v16 = vpack.c.bf16 %v9765_v39, %v9761_v32  ;;  %6999 = vlog2.f32 %v4754_v41  ;;  %v4755_v18 = vmax.f32 %v4562_v46, 1e-10 }
 0x563   :  { %v5122_v33 = vpack.c.bf16 %v9767_v23, %v9763_v34  ;;  %7001 = vlog2.f32 %v4757_v28 }
 0x564   :  { %7003 = vlog2.f32 %v4755_v18 }
 0x56b   :  { %v6998_v56 = vpop.eup %6997 }
 0x56c   :  { %v7000_v24 = vpop.eup %6999  ;;  %v4927_v58 = vmul.f32 0.6931472, %v6998_v56 }
 0x56d   :  { %v7002_v45 = vpop.eup %7001  ;;  %v4923_v59 = vmul.f32 0.6931472, %v7000_v24  ;;  %v6172_v37 = vpop.f32.mrb[16].mxu1 }
 0x56e   :  { %v7004_v50 = vpop.eup %7003  ;;  %v9773_v52 = vmul.f32 4.3429446, %v4927_v58  ;;  %v4929_v11 = vmul.f32 0.6931472, %v7002_v45  ;;  %v4760_v62 = vmax.f32 %v6172_v37, 1e-10 }
 0x56f   :  { %v9775_v61 = vmul.f32 4.3429446, %v4923_v59  ;;  %v4925_v31 = vmul.f32 0.6931472, %v7004_v50  ;;  %v4575_v30 = vpop.f32.mrb[17].mxu1 }
 0x570   :  { %v9777_v19 = vmul.f32 4.3429446, %v4929_v11  ;;  %7005 = vlog2.f32 %v4760_v62  ;;  %v4758_v40 = vmax.f32 %v4575_v30, 1e-10  ;;  %v6173_v21 = vpop.f32.mrb[18].mxu1 }
 0x571   :  { %v9779_v51 = vmul.f32 4.3429446, %v4925_v31  ;;  %v4761_v1 = vmax.f32 %v6173_v21, 1e-10  ;;  %v4578_v5 = vpop.f32.mrb[19].mxu1 }
 0x572   :  { %v5125_v17 = vpack.c.bf16 %v9777_v19, %v9773_v52  ;;  %7007 = vlog2.f32 %v4758_v40  ;;  %v4759_v14 = vmax.f32 %v4578_v5, 1e-10 }
 0x573   :  { %v5124_v57 = vpack.c.bf16 %v9779_v51, %v9775_v61  ;;  %7009 = vlog2.f32 %v4761_v1 }
 0x574   :  { %7011 = vlog2.f32 %v4759_v14 }
 0x57a   :  { %v7006_v49 = vpop.eup %7005 }
 0x57b   :  { %v4935_v4 = vmul.f32 0.6931472, %v7006_v49 }
 0x57c   :  { %v7008_v0 = vpop.eup %7007 }
 0x57d   :  { %v7010_v42 = vpop.eup %7009  ;;  %v4931_v35 = vmul.f32 0.6931472, %v7008_v0  ;;  %v6176_v54 = vpop.f32.mrb[20].mxu1  ;;  %v9785_v53 = vmul.f32 4.3429446, %v4935_v4 }
 0x57e   :  { %v7012_v13 = vpop.eup %7011  ;;  %v4937_v47 = vmul.f32 0.6931472, %v7010_v42  ;;  %v4764_v7 = vmax.f32 %v6176_v54, 1e-10  ;;  %v4591_v20 = vpop.f32.mrb[21].mxu1 }
 0x57f   :  { %v4933_v27 = vmul.f32 0.6931472, %v7012_v13  ;;  %v4762_v55 = vmax.f32 %v4591_v20, 1e-10  ;;  %v9787_v10 = vmul.f32 4.3429446, %v4931_v35 }
 0x580   :  { %v9789_v43 = vmul.f32 4.3429446, %v4937_v47  ;;  %7013 = vlog2.f32 %v4764_v7  ;;  %v6177_v36 = vpop.f32.mrb[22].mxu1 }
 0x581   :  { %v9791_v3 = vmul.f32 4.3429446, %v4933_v27  ;;  %7015 = vlog2.f32 %v4762_v55  ;;  %v4765_v63 = vmax.f32 %v6177_v36, 1e-10  ;;  %v4594_v12 = vpop.f32.mrb[23].mxu1 }
 0x582   :  { %v5127_v44 = vpack.c.bf16 %v9789_v43, %v9785_v53  ;;  %v4763_v2 = vmax.f32 %v4594_v12, 1e-10 }
 0x583   :  { %v5126_v9 = vpack.c.bf16 %v9791_v3, %v9787_v10  ;;  %7017 = vlog2.f32 %v4765_v63 }
 0x584   :  { %7019 = vlog2.f32 %v4763_v2 }
 0x58a   :  { %v7014_v38 = vpop.eup %7013 }
 0x58b   :  { %v7016_v26 = vpop.eup %7015  ;;  %v4943_v60 = vmul.f32 0.6931472, %v7014_v38 }
 0x58c   :  { %v4939_v25 = vmul.f32 0.6931472, %v7016_v26 }
 0x58d   :  { %v7018_v15 = vpop.eup %7017  ;;  %v6180_v29 = vpop.f32.mrb[24].mxu1  ;;  %v9797_v22 = vmul.f32 4.3429446, %v4943_v60 }
 0x58e   :  { %v7020_v8 = vpop.eup %7019  ;;  %v4945_v41 = vmul.f32 0.6931472, %v7018_v15  ;;  %v4768_v48 = vmax.f32 %v6180_v29, 1e-10  ;;  %v9799_v28 = vmul.f32 4.3429446, %v4939_v25 }
 0x58f   :  { %v4941_v46 = vmul.f32 0.6931472, %v7020_v8  ;;  %v4607_v18 = vpop.f32.mrb[25].mxu1 }
 0x590   :  { %v9801_v56 = vmul.f32 4.3429446, %v4945_v41  ;;  %7021 = vlog2.f32 %v4768_v48  ;;  %v4766_v24 = vmax.f32 %v4607_v18, 1e-10  ;;  %v6181_v58 = vpop.f32.mrb[26].mxu1 }
 0x591   :  { %v9803_v45 = vmul.f32 4.3429446, %v4941_v46  ;;  %v4769_v59 = vmax.f32 %v6181_v58, 1e-10  ;;  %v4610_v37 = vpop.f32.mrb[27].mxu1 }
 0x592   :  { %v5129_v50 = vpack.c.bf16 %v9801_v56, %v9797_v22  ;;  %7023 = vlog2.f32 %v4766_v24  ;;  %v4767_v11 = vmax.f32 %v4610_v37, 1e-10 }
 0x593   :  { %v5128_v62 = vpack.c.bf16 %v9803_v45, %v9799_v28  ;;  %7025 = vlog2.f32 %v4769_v59 }
 0x594   :  { %7027 = vlog2.f32 %v4767_v11 }
 0x59a   :  { %v7022_v31 = vpop.eup %7021 }
 0x59b   :  { %v4951_v30 = vmul.f32 0.6931472, %v7022_v31 }
 0x59c   :  { %v7024_v40 = vpop.eup %7023  ;;  %v6184_v49 = vpop.f32.mrb[28].mxu1 }
 0x59d   :  { %v7026_v21 = vpop.eup %7025  ;;  %v4947_v1 = vmul.f32 0.6931472, %v7024_v40  ;;  %v5068_v4 = vmul.f32 4.3429446, %v4951_v30  ;;  %v4772_v42 = vmax.f32 %v6184_v49, 1e-10 }
 0x59e   :  { %v7028_v5 = vpop.eup %7027  ;;  %v4953_v14 = vmul.f32 0.6931472, %v7026_v21  ;;  %v4623_v13 = vpop.f32.mrb[29].mxu1 }
 0x59f   :  { %v4949_v0 = vmul.f32 0.6931472, %v7028_v5  ;;  %v5066_v35 = vmul.f32 4.3429446, %v4947_v1  ;;  %7029 = vlog2.f32 %v4772_v42  ;;  %v4770_v7 = vmax.f32 %v4623_v13, 1e-10 }
 0x5a0   :  { %v5069_v54 = vmul.f32 4.3429446, %v4953_v14  ;;  %v6185_v20 = vpop.f32.mrb[30].mxu1 }
 0x5a1   :  { %v5067_v47 = vmul.f32 4.3429446, %v4949_v0  ;;  %v4773_v27 = vmax.f32 %v6185_v20, 1e-10  ;;  %v4626_v55 = vpop.f32.mrb[31].mxu1  ;;  %7031 = vlog2.f32 %v4770_v7 }
 0x5a2   :  { %v5131_v36 = vpack.c.bf16 %v5069_v54, %v5068_v4  ;;  %v4771_v63 = vmax.f32 %v4626_v55, 1e-10 }
 0x5a3   :  { %v5130_v12 = vpack.c.bf16 %v5067_v47, %v5066_v35  ;;  %7033 = vlog2.f32 %v4773_v27 }
 0x5a4   :  { %7035 = vlog2.f32 %v4771_v63 }
 0x5a5   :  { %6030 = vmatprep.subr.bf16.mxu1 %v5130_v12 }
 0x5a6   :  { %6031 = vmatpush3.bf16.msra.mxu1 %v5122_v33 }
 0x5a7   :  { %6032 = vmatprep.subr.bf16.mxu1 %v5131_v36 }
 0x5a9   :  { %v7030_v2 = vpop.eup %7029 }
 0x5aa   :  { %6033 = vmatpush3.bf16.msra.mxu1 %v5123_v16  ;;  %v4959_v38 = vmul.f32 0.6931472, %v7030_v2 }
 0x5ab   :  { %v7032_v26 = vpop.eup %7031 }
 0x5ac   :  { %v4955_v15 = vmul.f32 0.6931472, %v7032_v26  ;;  %v5072_v46 = vmul.f32 4.3429446, %v4959_v38 }
 0x5ad   :  { %v6188_v60 = vpop.f32.mrb[32].mxu1  ;;  %v7034_v25 = vpop.eup %7033 }
 0x5ae   :  { %v4776_v29 = vmax.f32 %v6188_v60, 1e-10  ;;  %v7036_v8 = vpop.eup %7035  ;;  %v4961_v41 = vmul.f32 0.6931472, %v7034_v25  ;;  %v4639_v48 = vpop.f32.mrb[33].mxu1 }
 0x5af   :  { %v4957_v18 = vmul.f32 0.6931472, %v7036_v8  ;;  %v4774_v34 = vmax.f32 %v4639_v48, 1e-10  ;;  %v5070_v23 = vmul.f32 4.3429446, %v4955_v15 }
 0x5b0   :  { %7037 = vlog2.f32 %v4776_v29  ;;  %v5073_v33 = vmul.f32 4.3429446, %v4961_v41  ;;  %v6189_v24 = vpop.f32.mrb[34].mxu1 }
 0x5b1   :  { %v5071_v58 = vmul.f32 4.3429446, %v4957_v18  ;;  %7039 = vlog2.f32 %v4774_v34  ;;  %v4777_v32 = vmax.f32 %v6189_v24, 1e-10  ;;  %v4642_v39 = vpop.f32.mrb[35].mxu1 }
 0x5b2   :  { %v4775_v16 = vmax.f32 %v4642_v39, 1e-10  ;;  %v5133_v59 = vpack.c.bf16 %v5073_v33, %v5072_v46  ;;  %v5898_v33 = vcombine.low %v9757_v6, %v9757_v6 }
 0x5b3   :  { %7041 = vlog2.f32 %v4777_v32  ;;  %v5132_v37 = vpack.c.bf16 %v5071_v58, %v5070_v23  ;;  %v7382_v58 = vmov 0.0  }
 0x5b4   :  { %7043 = vlog2.f32 %v4775_v16 }
 0x5b5   :  { %6034 = vmatprep.subr.bf16.mxu1 %v5132_v37 }
 0x5b6   :  { %6035 = vmatpush3.bf16.msra.mxu1 %v5124_v57 }
 0x5b7   :  { %6036 = vmatprep.subr.bf16.mxu1 %v5133_v59 }
 0x5ba   :  { %v7038_v11 = vpop.eup %7037  ;;  %6037 = vmatpush3.bf16.msra.mxu1 %v5125_v17 }
 0x5bb   :  { %v7040_v31 = vpop.eup %7039  ;;  %v4967_v30 = vmul.f32 0.6931472, %v7038_v11 }
 0x5bc   :  { %v4963_v1 = vmul.f32 0.6931472, %v7040_v31  ;;  %v6836_v31 = vld [vmem:[#allocation11 + $0x18] ss:$0 sps:$4 sm:$0xff]  }
 0x5bd   :  { %v6192_v40 = vpop.f32.mrb[36].mxu1  ;;  %v7042_v21 = vpop.eup %7041  ;;  %v5076_v42 = vmul.f32 4.3429446, %v4967_v30  ;;  %v6837_v30 = vld [vmem:[#allocation14] sm:$0xff]  }
 0x5be   :  { %v4780_v5 = vmax.f32 %v6192_v40, 1e-10  ;;  %v4655_v14 = vpop.f32.mrb[37].mxu1  ;;  %v7044_v49 = vpop.eup %7043  ;;  %v4969_v4 = vmul.f32 0.6931472, %v7042_v21  ;;  %v6838_v40 = vld [vmem:[#allocation14 + $0x8] sm:$0xff]  }
 0x5bf   :  { %v4778_v0 = vmax.f32 %v4655_v14, 1e-10  ;;  %v4965_v35 = vmul.f32 0.6931472, %v7044_v49  ;;  %v6193_v61 = vpop.f32.mrb[38].mxu1  ;;  %v6839_v21 = vld [vmem:[#allocation14 + $0x10] sm:$0xff]  }
 0x5c0   :  { %7045 = vlog2.f32 %v4780_v5  ;;  %v5077_v51 = vmul.f32 4.3429446, %v4969_v4  ;;  %v4781_v57 = vmax.f32 %v6193_v61, 1e-10  ;;  %v4658_v54 = vpop.f32.mrb[39].mxu1  ;;  %v6840_v4 = vld [vmem:[#allocation14 + $0x18] sm:$0xff]  }
 0x5c1   :  { %7047 = vlog2.f32 %v4778_v0  ;;  %v5074_v52 = vmul.f32 4.3429446, %v4963_v1  ;;  %v5075_v19 = vmul.f32 4.3429446, %v4965_v35  ;;  %v4779_v17 = vmax.f32 %v4658_v54, 1e-10 }
 0x5c2   :  { %7049 = vlog2.f32 %v4781_v57  ;;  %v5135_v13 = vpack.c.bf16 %v5077_v51, %v5076_v42  ;;  %v6841_v35 = vld [vmem:[#allocation14 + $0x20] sm:$0xff]   ;;  %v6842_v61 = vld [vmem:[#allocation14 + $0x28] sm:$0xff]   ;;  %v6843_v51 = vld [vmem:[#allocation14 + $0x30] sm:$0xff]  }
 0x5c3   :  { %7051 = vlog2.f32 %v4779_v17  ;;  %v5134_v47 = vpack.c.bf16 %v5075_v19, %v5074_v52  ;;  %v6844_v57 = vld [vmem:[#allocation14 + $0x38] sm:$0xff]  }
 0x5c5   :  { %6038 = vmatprep.subr.bf16.mxu1 %v5134_v47 }
 0x5c6   :  { %6039 = vmatpush3.bf16.msra.mxu1 %v5126_v9 }
 0x5c7   :  { %6040 = vmatprep.subr.bf16.mxu1 %v5135_v13 }
 0x5ca   :  { %v7046_v7 = vpop.eup %7045  ;;  %6041 = vmatpush3.bf16.msra.mxu1 %v5127_v44 }
 0x5cb   :  { %v7048_v20 = vpop.eup %7047  ;;  %v4975_v27 = vmul.f32 0.6931472, %v7046_v7 }
 0x5cc   :  { %v4971_v55 = vmul.f32 0.6931472, %v7048_v20  ;;  %v7050_v36 = vpop.eup %7049 }
 0x5cd   :  { %v6196_v63 = vpop.f32.mrb[40].mxu1  ;;  %v7052_v12 = vpop.eup %7051  ;;  %v5080_v2 = vmul.f32 4.3429446, %v4975_v27  ;;  %v4977_v38 = vmul.f32 0.6931472, %v7050_v36 }
 0x5ce   :  { %v4784_v26 = vmax.f32 %v6196_v63, 1e-10  ;;  %v5078_v60 = vmul.f32 4.3429446, %v4971_v55  ;;  %v4973_v25 = vmul.f32 0.6931472, %v7052_v12 }
 0x5cf   :  { %v4671_v15 = vpop.f32.mrb[41].mxu1  ;;  %v5081_v10 = vmul.f32 4.3429446, %v4977_v38  ;;  %v6845_v12 = vld [vmem:[#allocation17] sm:$0xff]   ;;  %v6846_v38 = vld [vmem:[#allocation17 + $0x8] sm:$0xff]  }
 0x5d0   :  { %7053 = vlog2.f32 %v4784_v26  ;;  %v4782_v3 = vmax.f32 %v4671_v15, 1e-10  ;;  %v6197_v9 = vpop.f32.mrb[42].mxu1  ;;  %v5079_v29 = vmul.f32 4.3429446, %v4973_v25  ;;  %v6847_v26 = vld [vmem:[#allocation17 + $0x10] sm:$0xff]  }
 0x5d1   :  { %v4785_v8 = vmax.f32 %v6197_v9, 1e-10  ;;  %v4674_v41 = vpop.f32.mrb[43].mxu1  ;;  %v5137_v43 = vpack.c.bf16 %v5081_v10, %v5080_v2  ;;  %v6849_v25 = vld [vmem:[#allocation17 + $0x20] sm:$0xff]   ;;  %v6850_v15 = vld [vmem:[#allocation17 + $0x28] sm:$0xff]   ;;  %v6851_v10 = vld [vmem:[#allocation17 + $0x30] sm:$0xff]  }
 0x5d2   :  { %7055 = vlog2.f32 %v4782_v3  ;;  %v4783_v53 = vmax.f32 %v4674_v41, 1e-10  ;;  %v5136_v44 = vpack.c.bf16 %v5079_v29, %v5078_v60  ;;  %v6848_v60 = vld [vmem:[#allocation17 + $0x18] sm:$0xff]  }
 0x5d3   :  { %7057 = vlog2.f32 %v4785_v8  ;;  %v6852_v3 = vld [vmem:[#allocation17 + $0x38] sm:$0xff]  }
 0x5d4   :  { %7059 = vlog2.f32 %v4783_v53  ;;  %6042 = vmatprep.subr.bf16.mxu1 %v5136_v44  ;;  %v5902_v9 = vld [vmem:[#allocation16] ss:$0 sm:$0xff] }
 0x5d5   :  { %v6002_v48 = vpop.f32.mrb[44].mxu1  ;;  %6043 = vmatpush3.bf16.msra.mxu1 %v5128_v62 }
 0x5d6   :  { %v6003_v46 = vpop.f32.mrb[45].mxu1  ;;  %6044 = vmatprep.subr.bf16.mxu1 %v5137_v43 }
 0x5d7   :  { %v6004_v18 = vadd.f32 %v6003_v46, %v6002_v48  ;;  %v6005_v34 = vpop.f32.mrb[46].mxu1  ;;  %v6853_v48 = vld [vmem:[#allocation20] sm:$0xff]  }
 0x5d8   :  { %v6006_v23 = vpop.f32.mrb[47].mxu1  ;;  %v6855_v34 = vld [vmem:[#allocation20 + $0x10] sm:$0xff]  }
 0x5d9   :  { %6045 = vmatpush3.bf16.msra.mxu1 %v5129_v50  ;;  %v6856_v23 = vld [vmem:[#allocation20 + $0x18] sm:$0xff]  }
 0x5da   :  { %v7054_v24 = vpop.eup %7053  ;;  %6198 = vmatprep.subr.bf16.mxu1 %v7382_v58 }
 0x5db   :  { %v4983_v39 = vmul.f32 0.6931472, %v7054_v24  ;;  %v6858_v24 = vld [vmem:[#allocation20 + $0x28] sm:$0xff]  }
 0x5dc   :  { %v7056_v32 = vpop.eup %7055  ;;  %5280 = vmatmul.mubr.bf16.vlgmr.msra.gmra.mrb[52].mxu1 %v5898_v33  ;;  %v6857_v33 = vld [vmem:[#allocation20 + $0x20] sm:$0xff]  }
 0x5dd   :  { %v7058_v28 = vpop.eup %7057  ;;  %v4979_v45 = vmul.f32 0.6931472, %v7056_v32  ;;  %6202 = vmatprep.mubr.msk.bf16.mxu1 %vm7383_vm2, %v7382_v58  ;;  %v5084_v59 = vmul.f32 4.3429446, %v4983_v39  ;;  %v6859_v32 = vld [vmem:[#allocation20 + $0x30] sm:$0xff]   ;;  %v6860_v39 = vld [vmem:[#allocation20 + $0x38] sm:$0xff]  }
 0x5de   :  { %v7060_v62 = vpop.eup %7059  ;;  %v4985_v16 = vmul.f32 0.6931472, %v7058_v28  ;;  %v5911_v28 = vld [vmem:[#allocation19] ss:$0 sm:$0xff] }
 0x5df   :  { %v4981_v6 = vmul.f32 0.6931472, %v7060_v62  ;;  %v5082_v11 = vmul.f32 4.3429446, %v4979_v45 }
 0x5e0   :  { %v5085_v37 = vmul.f32 4.3429446, %v4985_v16 }
 0x5e1   :  { %v5083_v22 = vmul.f32 4.3429446, %v4981_v6 }
 0x5e2   :  { %v5139_v56 = vpack.c.bf16 %v5085_v37, %v5084_v59 }
 0x5e3   :  { %v5138_v50 = vpack.c.bf16 %v5083_v22, %v5082_v11 }
 0x5e5   :  { %6199 = vmatpush3.bf16.msra.mxu1 %v5138_v50 }
 0x5e6   :  { %6200 = vmatprep.subr.bf16.mxu1 %v7382_v58 }
 0x5e9   :  { %6201 = vmatpush3.bf16.msra.mxu1 %v5139_v56 }
 0x5ea   :  { %6206 = vmatprep.subr.bf16.mxu1 %v7382_v58 }
 0x5ec   :  { %6203 = vmatmul.mubr.msk.bf16.vlgmr.msra.gmra.mrb[56].mxu1 %vm1143_vm0, %v6836_v31 }
 0x5ed   :  { %6207 = vmatpush3.bf16.msra.mxu1 %v6837_v30  ;;  %6222 = vmatprep.mubr.msk.bf16.mxu1 %vm7383_vm2, %v7382_v58 }
 0x5ee   :  { %6208 = vmatprep.subr.bf16.mxu1 %v7382_v58 }
 0x5f1   :  { %6209 = vmatpush3.bf16.msra.mxu1 %v6838_v40 }
 0x5f2   :  { %6210 = vmatprep.subr.bf16.mxu1 %v7382_v58 }
 0x5f5   :  { %6211 = vmatpush3.bf16.msra.mxu1 %v6839_v21 }
 0x5f6   :  { %6212 = vmatprep.subr.bf16.mxu1 %v7382_v58 }
 0x5f9   :  { %6213 = vmatpush3.bf16.msra.mxu1 %v6840_v4 }
 0x5fa   :  { %6214 = vmatprep.subr.bf16.mxu1 %v7382_v58 }
 0x5fd   :  { %6215 = vmatpush3.bf16.msra.mxu1 %v6841_v35 }
 0x5fe   :  { %6216 = vmatprep.subr.bf16.mxu1 %v7382_v58 }
 0x601   :  { %6217 = vmatpush3.bf16.msra.mxu1 %v6842_v61 }
 0x602   :  { %6218 = vmatprep.subr.bf16.mxu1 %v7382_v58 }
 0x605   :  { %6219 = vmatpush3.bf16.msra.mxu1 %v6843_v51 }
 0x606   :  { %6220 = vmatprep.subr.bf16.mxu1 %v7382_v58 }
 0x609   :  { %6221 = vmatpush3.bf16.msra.mxu1 %v6844_v57 }
 0x60a   :  { %6226 = vmatprep.subr.bf16.mxu1 %v7382_v58 }
 0x630   :  { %v6024_v1 = vpop.f32.mrb[48].mxu1 }
 0x631   :  { %v6025_v5 = vpop.f32.mrb[49].mxu1 }
 0x632   :  { %v6026_v14 = vadd.f32 %v6025_v5, %v6024_v1  ;;  %v6027_v49 = vpop.f32.mrb[50].mxu1 }
 0x633   :  { %v6028_v0 = vpop.f32.mrb[51].mxu1 }
 0x634   :  { %v5242_v42 = vadd.f32 %v6026_v14, %v6004_v18  ;;  %v6854_v18 = vld [vmem:[#allocation20 + $0x8] sm:$0xff]  }
 0x6af   :  { %v6046_v54 = vpop.f32.mrb[52].mxu1 }
 0x6b0   :  { %v6047_v52 = vpop.f32.mrb[53].mxu1 }
 0x6b1   :  { %v6048_v19 = vadd.f32 %v6047_v52, %v6046_v54  ;;  %v6049_v17 = vpop.f32.mrb[54].mxu1 }
 0x6b2   :  { %v6050_v13 = vpop.f32.mrb[55].mxu1 }
 0x6b3   :  { %v5282_v47 = vadd.f32 %v6048_v19, %v5242_v42 }
 0x6bf   :  { %v5321_v7 = vpop.f32.mrb[56].mxu1 }
 0x6c0   :  { %v5322_v20 = vadd.f32 %v5321_v7, %v5282_v47  ;;  %v6204_v27 = vpop.f32.mrb[57].mxu1 }
 0x6c1   :  { %v5324_v55 = vpop.f32.mrb[58].mxu1 }
 0x6c2   :  { %v5327_v36 = vmul.f32 0.01010101, %v5322_v20  ;;  %v6205_v63 = vpop.f32.mrb[59].mxu1 }
 0x6c4   :  { %v5328_v2 = vpack.c.bf16 %v5327_v36, %v5327_v36 }
 0x6c6   :  { %6223 = vmatmul.mubr.bf16.vlgmr.msra.gmra.mrb[60].mxu1 %v5328_v2 }
 0x6c7   :  { %6227 = vmatpush3.bf16.msra.mxu1 %v6845_v12  ;;  %6242 = vmatprep.mubr.msk.bf16.mxu1 %vm7383_vm2, %v7382_v58 }
 0x6c8   :  { %6228 = vmatprep.subr.bf16.mxu1 %v7382_v58 }
 0x6cb   :  { %6229 = vmatpush3.bf16.msra.mxu1 %v6846_v38 }
 0x6cc   :  { %6230 = vmatprep.subr.bf16.mxu1 %v7382_v58 }
 0x6cf   :  { %6231 = vmatpush3.bf16.msra.mxu1 %v6847_v26 }
 0x6d0   :  { %6232 = vmatprep.subr.bf16.mxu1 %v7382_v58 }
 0x6d3   :  { %6233 = vmatpush3.bf16.msra.mxu1 %v6848_v60 }
 0x6d4   :  { %6234 = vmatprep.subr.bf16.mxu1 %v7382_v58 }
 0x6d7   :  { %6235 = vmatpush3.bf16.msra.mxu1 %v6849_v25 }
 0x6d8   :  { %6236 = vmatprep.subr.bf16.mxu1 %v7382_v58 }
 0x6db   :  { %6237 = vmatpush3.bf16.msra.mxu1 %v6850_v15 }
 0x6dc   :  { %6238 = vmatprep.subr.bf16.mxu1 %v7382_v58 }
 0x6df   :  { %6239 = vmatpush3.bf16.msra.mxu1 %v6851_v10 }
 0x6e0   :  { %6240 = vmatprep.subr.bf16.mxu1 %v7382_v58 }
 0x6e3   :  { %6241 = vmatpush3.bf16.msra.mxu1 %v6852_v3 }
 0x6e4   :  { %6246 = vmatprep.subr.bf16.mxu1 %v7382_v58 }
 0x799   :  { %v5434_v29 = vpop.f32.mrb[60].mxu1 }
 0x79a   :  { %v5435_v8 = vadd.f32 %v5902_v9, %v5434_v29  ;;  %v6224_v41 = vpop.f32.mrb[61].mxu1 }
 0x79b   :  { %v5437_v53 = vpop.f32.mrb[62].mxu1 }
 0x79c   :  { %v5440_v43 = vmax.f32 %v5435_v8, 0.0  ;;  %v6225_v44 = vpop.f32.mrb[63].mxu1 }
 0x79e   :  { %v5441_v46 = vpack.c.bf16 %v5440_v43, %v5440_v43 }
 0x7a0   :  { %6243 = vmatmul.mubr.bf16.vlgmr.msra.gmra.mrb[64].mxu1 %v5441_v46 }
 0x7a1   :  { %6247 = vmatpush3.bf16.msra.mxu1 %v6853_v48  ;;  %6262 = vmatprep.mubr.msk.bf16.mxu1 %vm7383_vm2, %v7382_v58 }
 0x7a2   :  { %6248 = vmatprep.subr.bf16.mxu1 %v7382_v58 }
 0x7a5   :  { %6249 = vmatpush3.bf16.msra.mxu1 %v6854_v18 }
 0x7a6   :  { %6250 = vmatprep.subr.bf16.mxu1 %v7382_v58 }
 0x7a9   :  { %6251 = vmatpush3.bf16.msra.mxu1 %v6855_v34 }
 0x7aa   :  { %6252 = vmatprep.subr.bf16.mxu1 %v7382_v58 }
 0x7ad   :  { %6253 = vmatpush3.bf16.msra.mxu1 %v6856_v23 }
 0x7ae   :  { %6254 = vmatprep.subr.bf16.mxu1 %v7382_v58 }
 0x7b1   :  { %6255 = vmatpush3.bf16.msra.mxu1 %v6857_v33 }
 0x7b2   :  { %6256 = vmatprep.subr.bf16.mxu1 %v7382_v58 }
 0x7b5   :  { %6257 = vmatpush3.bf16.msra.mxu1 %v6858_v24 }
 0x7b6   :  { %6258 = vmatprep.subr.bf16.mxu1 %v7382_v58 }
 0x7b9   :  { %6259 = vmatpush3.bf16.msra.mxu1 %v6859_v32 }
 0x7ba   :  { %6260 = vmatprep.subr.bf16.mxu1 %v7382_v58 }
 0x7bd   :  { %6261 = vmatpush3.bf16.msra.mxu1 %v6860_v39 }
 0x873   :  { %v5547_v45 = vpop.f32.mrb[64].mxu1 }
 0x874   :  { %v5548_v62 = vadd.f32 %v5911_v28, %v5547_v45  ;;  %v6244_v16 = vpop.f32.mrb[65].mxu1 }
 0x875   :  { %v5550_v6 = vpop.f32.mrb[66].mxu1 }
 0x876   :  { %v5553_v59 = vpack.c.bf16 %v5548_v62, %v5548_v62  ;;  %v6245_v37 = vpop.f32.mrb[67].mxu1 }
 0x878   :  { %6263 = vmatmul.mubr.bf16.vlgmr.msra.gmra.mrb[68].mxu1 %v5553_v59 }
 0x94b   :  { %v5652_v11 = vpop.f32.mrb[68].mxu1 }
 0x94c   :  { %5658 = vst [vmem:[#allocation22] sm:$0xff] %v5652_v11  ;;  %v6264_v22 = vpop.f32.mrb[69].mxu1 }
 0x94d   :  { %v5655_v56 = vpop.f32.mrb[70].mxu1 }
 0x94e   :  { %7336 = shalt.err (!%p7333_p2)
}
 0x94f   :  { %s7337_s17 = scalar_lea.hbm %s9894_s12, 128 }
 0x950   :  { %p7338_p3 = scmp.ne.s32.totalorder %s9894_s12, %s7337_s17  ;;  %p7341_p4 = scmp.lt.u32.totalorder %s7337_s17, %s9894_s12 }
 0x952   :  { %p7343_p5 = pnand %p7341_p4, %p7338_p3 }
 0x954   :  { %7346 = shalt.err (!%p7343_p5)
}
 0x955   :  { %5668 = dma.vmem_to_hbm [thread:$0]  %s5666_s1, 128, %s9894_s12, [#allocation4]   ;;  %v6265_v58 = vpop.f32.mrb[71].mxu1 }
 0x956   :  { %7361 = dma.done.wait [#allocation4], 128  }
 0x957   :  { %7362 = vsyncadd [#allocation4], 4294967168 }
 0x958   :  { %5672 = vsyncpa [#allocation3], 1 }
 0x959   :  { %5673 = vsyncpa [#allocation6], 1 }
 0x95a   :  { %5674 = vsyncpa [#allocation9], 1 }
 0x95b   :  { %5675 = vsyncpa [#allocation12], 1 }
 0x95c   :  { %5676 = vsyncpa [#allocation15], 1 }
 0x95d   :  { %5677 = vsyncpa [#allocation18], 1 }
 0x95e   :  { %5678 = vsyncpa [#allocation21], 1 }
 0x95f   :  { %5679 = vsyncpa [#allocation4], 1 }

</bundles_post_ra>
